<compile_context>
chip_gen: v7x
topology: tpu7x:2x2x1
jax: 0.10.0
libtpu: 0.0.40
codegen_flags: <defaults>
</compile_context>

<pallas_src>
import jax
import jax.numpy as jnp
from jax.experimental import pallas as pl
from jax.experimental.pallas import tpu as pltpu


# ------------------------------ Pallas kernel -------------------------------

def _fused_net_kernel(
    x_ref,                                                  # (BN*30, 90) f32
    t1_ref, b1_ref, p1_ref, r1e_ref, r1o_ref, s1_ref, h1_ref,
    t2_ref, b2_ref, p2_ref, r2e_ref, r2o_ref, s2_ref, h2_ref,
    wf1_ref, bf1_ref, s3_ref, h3_ref,
    wf2_ref, bf2_ref, wf3_ref, bf3_ref,
    out_ref,                                                # (BN, 128) f32
):
    f32, bf16 = jnp.float32, jnp.bfloat16

    def mxu(a, b):  # bf16 x bf16 matmul with f32 MXU accumulation
        return jnp.dot(a.astype(bf16), b, preferred_element_type=f32)

    rows = x_ref.shape[0]          # BN * 30
    bn = out_ref.shape[0]          # BN
    m1 = rows - 2                  # conv1 rows (incl. unused cross-sample rows)

    # ---- conv1 (3x3, 3->6) as 3 banded matmuls over the whole block --------
    c1 = (mxu(x_ref[0:m1, :], t1_ref[0])
          + mxu(x_ref[1:m1 + 1, :], t1_ref[1])
          + mxu(x_ref[2:m1 + 2, :], t1_ref[2]))
    c1 = jnp.maximum(c1 + b1_ref[...], 0.0)                 # (BN*30-2, 168)

    # ---- 2x2 max-pool + folded bn1: vertical pair-max (VPU), per-sample row
    #      compaction (bf16 0/1 matmul, sample-major rows n*14+i), horizontal
    #      even/odd lane selection (bf16 matmuls) + max -------------------------
    vmax1 = jnp.maximum(c1[0:m1 - 1, :], c1[1:m1, :])
    v1 = jnp.dot(p1_ref[...], vmax1.astype(bf16), preferred_element_type=f32)
    pool1 = jnp.maximum(mxu(v1, r1e_ref[...]), mxu(v1, r1o_ref[...]))
    a1 = pool1 * s1_ref[...] + h1_ref[...]                  # (BN*14, 84)

    # ---- conv2 (3x3, 6->16) + bias + ReLU -----------------------------------
    m2 = a1.shape[0] - 2
    c2 = (mxu(a1[0:m2, :], t2_ref[0])
          + mxu(a1[1:m2 + 1, :], t2_ref[1])
          + mxu(a1[2:m2 + 2, :], t2_ref[2]))
    c2 = jnp.maximum(c2 + b2_ref[...], 0.0)                 # (BN*14-2, 192)

    # ---- 2x2 max-pool + folded bn2 (row compaction is spatial-major i*BN+n) --
    vmax2 = jnp.maximum(c2[0:m2 - 1, :], c2[1:m2, :])
    v2 = jnp.dot(p2_ref[...], vmax2.astype(bf16), preferred_element_type=f32)
    pool2 = jnp.maximum(mxu(v2, r2e_ref[...]), mxu(v2, r2o_ref[...]))
    a2 = pool2 * s2_ref[...] + h2_ref[...]                  # (6*BN, 96)

    # ---- fc1 + ReLU + bn3 (torch NCHW flatten folded into wf1 rows);
    #      batched over the whole block with aligned (BN, 96) row slices ------
    h = mxu(a2[0:bn, :], wf1_ref[0])
    for q in range(1, 6):
        h = h + mxu(a2[q * bn:(q + 1) * bn, :], wf1_ref[q])
    h = jnp.maximum(h + bf1_ref[...], 0.0) * s3_ref[...] + h3_ref[...]
    # TODO(synk): training-mode Dropout (p=0.3 / p=0.1) RNG bitstream is not
    # reproducible from torch; eval-mode identity is used here.

    # ---- fc2 + ReLU, fc3 (output padded to 128 lanes for a dense store) -----
    h = jnp.maximum(mxu(h, wf2_ref[...]) + bf2_ref[...], 0.0)
    out_ref[...] = mxu(h, wf3_ref[...]) + bf3_ref[...]


# ---------------------- wrapper-side layout preparation ---------------------

def _bn_fold(g, b, m, v, eps=1e-5):
    scale = g / jnp.sqrt(v + eps)
    return scale, b - m * scale


def _toeplitz_conv_weight(w_oikk, w_in):
    """PyTorch conv weight (O, C, KH, KW) -> (KH, W_in*C, W_out*O) banded matrices.

    T[kh, w*C + c, j*O + o] = w[o, c, kh, w - j]  if 0 <= w - j < KW else 0,
    so that  conv[i, j*O+o] = sum_kh  x2d[i+kh, :] @ T[kh]  (x2d lanes = w*C+c).
    """
    o_ch, c_ch, kh, kw = w_oikk.shape
    w_out = w_in - kw + 1
    w = jnp.transpose(w_oikk, (2, 3, 1, 0))                      # (KH, KW, C, O)
    d = jnp.arange(w_in)[:, None] - jnp.arange(w_out)[None, :]   # (W_in, W_out)
    valid = ((d >= 0) & (d < kw)).astype(w.dtype)
    g = w[:, jnp.clip(d, 0, kw - 1)]                             # (KH, W_in, W_out, C, O)
    g = g * valid[None, :, :, None, None]
    g = jnp.transpose(g, (0, 1, 3, 2, 4))                        # (KH, W_in, C, W_out, O)
    return g.reshape(kh, w_in * c_ch, w_out * o_ch)


def _vpool_rows(bn, stride, h_out, rows_in, sample_major, dtype):
    """0/1 row-compaction matrix for the vertical 2x2 max-pool.

    Selects source row n*stride + 2*i from the rows_in-row pairwise-max tensor.
    sample_major=True  -> output row n*h_out + i   (per-sample contiguous, conv2)
    sample_major=False -> output row i*bn + n      (spatial-major, batched fc1)
    """
    r = jnp.arange(bn * h_out)
    if sample_major:
        nn, ii = r // h_out, r % h_out
    else:
        ii, nn = r // bn, r % bn
    tgt = nn * stride + 2 * ii
    return (jnp.arange(rows_in)[None, :] == tgt[:, None]).astype(dtype)


def _lane_select(w_full, ch, parity, dtype):
    """(W_full*ch, (W_full//2)*ch) 0/1 matrix picking fused lanes (2m+parity)*ch + c."""
    j = jnp.arange(w_full)[:, None, None, None]
    c = jnp.arange(ch)[None, :, None, None]
    m = jnp.arange(w_full // 2)[None, None, :, None]
    c2 = jnp.arange(ch)[None, None, None, :]
    sel = (j == 2 * m + parity) & (c == c2)
    return sel.astype(dtype).reshape(w_full * ch, (w_full // 2) * ch)


def init_params(key):
    ks = jax.random.split(key, 24)
    nrm = lambda k, shape, fan: jax.random.normal(k, shape, jnp.float32) / jnp.sqrt(fan)

    def bn(k, c):
        k1, k2, k3, k4 = jax.random.split(k, 4)
        return dict(
            g=1.0 + 0.1 * jax.random.normal(k1, (c,), jnp.float32),
            b=0.1 * jax.random.normal(k2, (c,), jnp.float32),
            m=0.05 * jax.random.normal(k3, (c,), jnp.float32),
            v=1.0 + 0.1 * jnp.abs(jax.random.normal(k4, (c,), jnp.float32)),
        )

    return {
        "conv1_w": nrm(ks[0], (6, 3, 3, 3), 3 * 9),
        "conv1_b": 0.05 * jax.random.normal(ks[1], (6,), jnp.float32),
        "conv2_w": nrm(ks[2], (16, 6, 3, 3), 6 * 9),
        "conv2_b": 0.05 * jax.random.normal(ks[3], (16,), jnp.float32),
        # fc weights kept in (in, out) layout; fc1 rows are in torch NCHW
        # flatten order (c*36 + h*6 + w), exactly like the reference module.
        "fc1_w": nrm(ks[4], (576, 120), 576),
        "fc1_b": 0.05 * jax.random.normal(ks[5], (120,), jnp.float32),
        "fc2_w": nrm(ks[6], (120, 84), 120),
        "fc2_b": 0.05 * jax.random.normal(ks[7], (84,), jnp.float32),
        "fc3_w": nrm(ks[8], (84, 10), 84),
        "fc3_b": 0.05 * jax.random.normal(ks[9], (10,), jnp.float32),
        "bn1": bn(ks[10], 6),
        "bn2": bn(ks[11], 16),
        "bn3": bn(ks[12], 120),
    }


def simple_net_forward(x_nchw, p, block_n=8):
    f32, bf16 = jnp.float32, jnp.bfloat16
    n, c_in, h_in, w_in = x_nchw.shape
    assert (c_in, h_in, w_in) == (3, 30, 30), "architecture requires 3x30x30 inputs"
    assert block_n % 8 == 0

    # Input: NCHW -> NHWC -> lane-dense (H, W*C), padded to a batch multiple of
    # block_n and flattened to (Npad*30, 90) so the grid can block rows.
    npad = ((n + block_n - 1) // block_n) * block_n
    x2 = jnp.transpose(x_nchw, (0, 2, 3, 1)).astype(f32).reshape(n, 30, 90)
    if npad != n:
        x2 = jnp.pad(x2, ((0, npad - n), (0, 0), (0, 0)))
    x_rows = x2.reshape(npad * 30, 90)

    # Conv weights as banded (block-Toeplitz) matmul matrices, bf16 for the MXU.
    t1 = _toeplitz_conv_weight(p["conv1_w"], 30).astype(bf16)        # (3, 90, 168)
    t2 = _toeplitz_conv_weight(p["conv2_w"], 14).astype(bf16)        # (3, 84, 192)
    b1t = jnp.tile(p["conv1_b"], 28).reshape(1, 168).astype(f32)
    b2t = jnp.tile(p["conv2_b"], 12).reshape(1, 192).astype(f32)

    # Folded BatchNorm affines, tiled to the fused W*C lane layout (f32).
    s1, sh1 = _bn_fold(p["bn1"]["g"], p["bn1"]["b"], p["bn1"]["m"], p["bn1"]["v"])
    s2, sh2 = _bn_fold(p["bn2"]["g"], p["bn2"]["b"], p["bn2"]["m"], p["bn2"]["v"])
    s3, sh3 = _bn_fold(p["bn3"]["g"], p["bn3"]["b"], p["bn3"]["m"], p["bn3"]["v"])
    s1t, sh1t = jnp.tile(s1, 14).reshape(1, 84), jnp.tile(sh1, 14).reshape(1, 84)
    s2t, sh2t = jnp.tile(s2, 6).reshape(1, 96), jnp.tile(sh2, 6).reshape(1, 96)
    s3t, sh3t = s3.reshape(1, 120), sh3.reshape(1, 120)

    # 0/1 pooling matrices in bf16 (native MXU path; 0/1 is exact in bf16).
    p1 = _vpool_rows(block_n, 30, 14, block_n * 30 - 3, True, bf16)   # (BN*14, BN*30-3)
    p2 = _vpool_rows(block_n, 14, 6, block_n * 14 - 3, False, bf16)   # (6*BN,  BN*14-3)
    r1e, r1o = _lane_select(28, 6, 0, bf16), _lane_select(28, 6, 1, bf16)    # (168, 84)
    r2e, r2o = _lane_select(12, 16, 0, bf16), _lane_select(12, 16, 1, bf16)  # (192, 96)

    # fc1 weight: permute torch NCHW-flatten rows (c*36 + h*6 + w) into the
    # kernel's NHWC layout (h, w*16 + c) once, so no activation transpose.
    wf1 = (p["fc1_w"].reshape(16, 6, 6, 120)
           .transpose(1, 2, 0, 3).reshape(6, 96, 120).astype(bf16))
    bf1 = p["fc1_b"].reshape(1, 120).astype(f32)
    wf2 = p["fc2_w"].astype(bf16)
    bf2 = p["fc2_b"].reshape(1, 84).astype(f32)
    # fc3 padded to 128 output lanes so the kernel's final store is lane-dense.
    wf3 = jnp.pad(p["fc3_w"], ((0, 0), (0, 118))).astype(bf16)        # (84, 128)
    bf3 = jnp.pad(p["fc3_b"], (0, 118)).reshape(1, 128).astype(f32)

    consts = (t1, b1t, p1, r1e, r1o, s1t, sh1t,
              t2, b2t, p2, r2e, r2o, s2t, sh2t,
              wf1, bf1, s3t, sh3t, wf2, bf2, wf3, bf3)

    def _resident(a):                      # full-shape block, constant index_map
        zeros = (0,) * a.ndim
        return pl.BlockSpec(a.shape, lambda i, _z=zeros: _z)

    out = pl.pallas_call(
        _fused_net_kernel,
        out_shape=jax.ShapeDtypeStruct((npad, 128), f32),
        grid=(npad // block_n,),
        in_specs=[pl.BlockSpec((block_n * 30, 90), lambda i: (i, 0))]
                 + [_resident(a) for a in consts],
        out_specs=pl.BlockSpec((block_n, 128), lambda i: (i, 0)),
        compiler_params=pltpu.CompilerParams(
            dimension_semantics=("parallel",)),
    )(x_rows, *consts)

    return out[:n, :10]


if __name__ == "__main__":
    key = jax.random.PRNGKey(0)
    k_params, k_x = jax.random.split(key)
    params = init_params(k_params)
    x = jax.random.normal(k_x, (2, 3, 30, 30), jnp.float32)   # NCHW, like PyTorch

    out = jax.jit(simple_net_forward)(x, params)
    out = jax.block_until_ready(out)
    assert out.shape == (2, 10) and out.dtype == jnp.float32
    print("KERNEL_OK")
</pallas_src>

<mosaic_0001>
module attributes {stable_mosaic.version = 11 : i64} {
  func.func @_fused_net_kernel(%arg0: i32, %arg1: memref<240x90xf32, #tpu.memory_space<vmem>>, %arg2: memref<3x90x168xbf16, #tpu.memory_space<vmem>>, %arg3: memref<1x168xf32, #tpu.memory_space<vmem>>, %arg4: memref<112x237xbf16, #tpu.memory_space<vmem>>, %arg5: memref<168x84xbf16, #tpu.memory_space<vmem>>, %arg6: memref<168x84xbf16, #tpu.memory_space<vmem>>, %arg7: memref<1x84xf32, #tpu.memory_space<vmem>>, %arg8: memref<1x84xf32, #tpu.memory_space<vmem>>, %arg9: memref<3x84x192xbf16, #tpu.memory_space<vmem>>, %arg10: memref<1x192xf32, #tpu.memory_space<vmem>>, %arg11: memref<48x109xbf16, #tpu.memory_space<vmem>>, %arg12: memref<192x96xbf16, #tpu.memory_space<vmem>>, %arg13: memref<192x96xbf16, #tpu.memory_space<vmem>>, %arg14: memref<1x96xf32, #tpu.memory_space<vmem>>, %arg15: memref<1x96xf32, #tpu.memory_space<vmem>>, %arg16: memref<6x96x120xbf16, #tpu.memory_space<vmem>>, %arg17: memref<1x120xf32, #tpu.memory_space<vmem>>, %arg18: memref<1x120xf32, #tpu.memory_space<vmem>>, %arg19: memref<1x120xf32, #tpu.memory_space<vmem>>, %arg20: memref<120x84xbf16, #tpu.memory_space<vmem>>, %arg21: memref<1x84xf32, #tpu.memory_space<vmem>>, %arg22: memref<84x128xbf16, #tpu.memory_space<vmem>>, %arg23: memref<1x128xf32, #tpu.memory_space<vmem>>, %arg24: memref<8x128xf32, #tpu.memory_space<vmem>>) attributes {dimension_semantics = [#tpu.dimension_semantics<parallel>], iteration_bounds = array<i64: 1>, scalar_prefetch = 0 : i64, scratch_operands = 0 : i64, tpu.core_type = #tpu.core_type<tc>, window_params = [{transform_indices = @transform_0, window_bounds = array<i64: 240, 90>}, {pipeline_mode = #tpu.pipeline_mode<synchronous>, transform_indices = @transform_1, window_bounds = array<i64: 3, 90, 168>}, {pipeline_mode = #tpu.pipeline_mode<synchronous>, transform_indices = @transform_2, window_bounds = array<i64: 1, 168>}, {pipeline_mode = #tpu.pipeline_mode<synchronous>, transform_indices = @transform_3, window_bounds = array<i64: 112, 237>}, {pipeline_mode = #tpu.pipeline_mode<synchronous>, transform_indices = @transform_4, window_bounds = array<i64: 168, 84>}, {pipeline_mode = #tpu.pipeline_mode<synchronous>, transform_indices = @transform_5, window_bounds = array<i64: 168, 84>}, {pipeline_mode = #tpu.pipeline_mode<synchronous>, transform_indices = @transform_6, window_bounds = array<i64: 1, 84>}, {pipeline_mode = #tpu.pipeline_mode<synchronous>, transform_indices = @transform_7, window_bounds = array<i64: 1, 84>}, {pipeline_mode = #tpu.pipeline_mode<synchronous>, transform_indices = @transform_8, window_bounds = array<i64: 3, 84, 192>}, {pipeline_mode = #tpu.pipeline_mode<synchronous>, transform_indices = @transform_9, window_bounds = array<i64: 1, 192>}, {pipeline_mode = #tpu.pipeline_mode<synchronous>, transform_indices = @transform_10, window_bounds = array<i64: 48, 109>}, {pipeline_mode = #tpu.pipeline_mode<synchronous>, transform_indices = @transform_11, window_bounds = array<i64: 192, 96>}, {pipeline_mode = #tpu.pipeline_mode<synchronous>, transform_indices = @transform_12, window_bounds = array<i64: 192, 96>}, {pipeline_mode = #tpu.pipeline_mode<synchronous>, transform_indices = @transform_13, window_bounds = array<i64: 1, 96>}, {pipeline_mode = #tpu.pipeline_mode<synchronous>, transform_indices = @transform_14, window_bounds = array<i64: 1, 96>}, {pipeline_mode = #tpu.pipeline_mode<synchronous>, transform_indices = @transform_15, window_bounds = array<i64: 6, 96, 120>}, {pipeline_mode = #tpu.pipeline_mode<synchronous>, transform_indices = @transform_16, window_bounds = array<i64: 1, 120>}, {pipeline_mode = #tpu.pipeline_mode<synchronous>, transform_indices = @transform_17, window_bounds = array<i64: 1, 120>}, {pipeline_mode = #tpu.pipeline_mode<synchronous>, transform_indices = @transform_18, window_bounds = array<i64: 1, 120>}, {pipeline_mode = #tpu.pipeline_mode<synchronous>, transform_indices = @transform_19, window_bounds = array<i64: 120, 84>}, {pipeline_mode = #tpu.pipeline_mode<synchronous>, transform_indices = @transform_20, window_bounds = array<i64: 1, 84>}, {pipeline_mode = #tpu.pipeline_mode<synchronous>, transform_indices = @transform_21, window_bounds = array<i64: 84, 128>}, {pipeline_mode = #tpu.pipeline_mode<synchronous>, transform_indices = @transform_22, window_bounds = array<i64: 1, 128>}, {transform_indices = @transform_23, window_bounds = array<i64: 8, 128>}]} {
    %c0 = arith.constant 0 : index
    %c0_0 = arith.constant 0 : index
    %0 = vector.load %arg1[%c0, %c0_0] : memref<240x90xf32, #tpu.memory_space<vmem>>, vector<238x90xf32>
    %c0_1 = arith.constant 0 : index
    %c0_2 = arith.constant 0 : index
    %c0_3 = arith.constant 0 : index
    %1 = vector.load %arg2[%c0_1, %c0_2, %c0_3] : memref<3x90x168xbf16, #tpu.memory_space<vmem>>, vector<1x90x168xbf16>
    %2 = vector.shape_cast %1 : vector<1x90x168xbf16> to vector<90x168xbf16>
    %3 = arith.truncf %0 : vector<238x90xf32> to vector<238x90xbf16>
    %cst = arith.constant dense<0.000000e+00> : vector<238x168xf32>
    %4 = tpu.matmul %3, %2, %cst {dimension_numbers = #tpu.dot_dimension_numbers<[1], [0], [0], [1], [0, 0, 1, 1], [], []>} : vector<238x90xbf16>, vector<90x168xbf16>, vector<238x168xf32> -> vector<238x168xf32>
    %c1 = arith.constant 1 : index
    %c0_4 = arith.constant 0 : index
    %5 = vector.load %arg1[%c1, %c0_4] : memref<240x90xf32, #tpu.memory_space<vmem>>, vector<238x90xf32>
    %c1_5 = arith.constant 1 : index
    %c0_6 = arith.constant 0 : index
    %c0_7 = arith.constant 0 : index
    %6 = vector.load %arg2[%c1_5, %c0_6, %c0_7] : memref<3x90x168xbf16, #tpu.memory_space<vmem>>, vector<1x90x168xbf16>
    %7 = vector.shape_cast %6 : vector<1x90x168xbf16> to vector<90x168xbf16>
    %8 = arith.truncf %5 : vector<238x90xf32> to vector<238x90xbf16>
    %cst_8 = arith.constant dense<0.000000e+00> : vector<238x168xf32>
    %9 = tpu.matmul %8, %7, %cst_8 {dimension_numbers = #tpu.dot_dimension_numbers<[1], [0], [0], [1], [0, 0, 1, 1], [], []>} : vector<238x90xbf16>, vector<90x168xbf16>, vector<238x168xf32> -> vector<238x168xf32>
    %10 = arith.addf %4, %9 : vector<238x168xf32>
    %c2 = arith.constant 2 : index
    %c0_9 = arith.constant 0 : index
    %11 = vector.load %arg1[%c2, %c0_9] : memref<240x90xf32, #tpu.memory_space<vmem>>, vector<238x90xf32>
    %c2_10 = arith.constant 2 : index
    %c0_11 = arith.constant 0 : index
    %c0_12 = arith.constant 0 : index
    %12 = vector.load %arg2[%c2_10, %c0_11, %c0_12] : memref<3x90x168xbf16, #tpu.memory_space<vmem>>, vector<1x90x168xbf16>
    %13 = vector.shape_cast %12 : vector<1x90x168xbf16> to vector<90x168xbf16>
    %14 = arith.truncf %11 : vector<238x90xf32> to vector<238x90xbf16>
    %cst_13 = arith.constant dense<0.000000e+00> : vector<238x168xf32>
    %15 = tpu.matmul %14, %13, %cst_13 {dimension_numbers = #tpu.dot_dimension_numbers<[1], [0], [0], [1], [0, 0, 1, 1], [], []>} : vector<238x90xbf16>, vector<90x168xbf16>, vector<238x168xf32> -> vector<238x168xf32>
    %16 = arith.addf %10, %15 : vector<238x168xf32>
    %c0_14 = arith.constant 0 : index
    %c0_15 = arith.constant 0 : index
    %17 = vector.load %arg3[%c0_14, %c0_15] : memref<1x168xf32, #tpu.memory_space<vmem>>, vector<1x168xf32>
    %18 = vector.broadcast %17 : vector<1x168xf32> to vector<238x168xf32>
    %19 = arith.addf %16, %18 : vector<238x168xf32>
    %cst_16 = arith.constant 0.000000e+00 : f32
    %20 = vector.broadcast %cst_16 : f32 to vector<238x168xf32>
    %21 = arith.maximumf %19, %20 : vector<238x168xf32>
    %22 = vector.extract_strided_slice %21 {offsets = [0, 0], sizes = [237, 168], strides = [1, 1]} : vector<238x168xf32> to vector<237x168xf32>
    %23 = vector.extract_strided_slice %21 {offsets = [1, 0], sizes = [237, 168], strides = [1, 1]} : vector<238x168xf32> to vector<237x168xf32>
    %24 = arith.maximumf %22, %23 : vector<237x168xf32>
    %c0_17 = arith.constant 0 : index
    %c0_18 = arith.constant 0 : index
    %25 = vector.load %arg4[%c0_17, %c0_18] : memref<112x237xbf16, #tpu.memory_space<vmem>>, vector<112x237xbf16>
    %26 = arith.truncf %24 : vector<237x168xf32> to vector<237x168xbf16>
    %cst_19 = arith.constant dense<0.000000e+00> : vector<112x168xf32>
    %27 = tpu.matmul %25, %26, %cst_19 {dimension_numbers = #tpu.dot_dimension_numbers<[1], [0], [0], [1], [0, 0, 1, 1], [], []>} : vector<112x237xbf16>, vector<237x168xbf16>, vector<112x168xf32> -> vector<112x168xf32>
    %c0_20 = arith.constant 0 : index
    %c0_21 = arith.constant 0 : index
    %28 = vector.load %arg5[%c0_20, %c0_21] : memref<168x84xbf16, #tpu.memory_space<vmem>>, vector<168x84xbf16>
    %29 = arith.truncf %27 : vector<112x168xf32> to vector<112x168xbf16>
    %cst_22 = arith.constant dense<0.000000e+00> : vector<112x84xf32>
    %30 = tpu.matmul %29, %28, %cst_22 {dimension_numbers = #tpu.dot_dimension_numbers<[1], [0], [0], [1], [0, 0, 1, 1], [], []>} : vector<112x168xbf16>, vector<168x84xbf16>, vector<112x84xf32> -> vector<112x84xf32>
    %c0_23 = arith.constant 0 : index
    %c0_24 = arith.constant 0 : index
    %31 = vector.load %arg6[%c0_23, %c0_24] : memref<168x84xbf16, #tpu.memory_space<vmem>>, vector<168x84xbf16>
    %32 = arith.truncf %27 : vector<112x168xf32> to vector<112x168xbf16>
    %cst_25 = arith.constant dense<0.000000e+00> : vector<112x84xf32>
    %33 = tpu.matmul %32, %31, %cst_25 {dimension_numbers = #tpu.dot_dimension_numbers<[1], [0], [0], [1], [0, 0, 1, 1], [], []>} : vector<112x168xbf16>, vector<168x84xbf16>, vector<112x84xf32> -> vector<112x84xf32>
    %34 = arith.maximumf %30, %33 : vector<112x84xf32>
    %c0_26 = arith.constant 0 : index
    %c0_27 = arith.constant 0 : index
    %35 = vector.load %arg7[%c0_26, %c0_27] : memref<1x84xf32, #tpu.memory_space<vmem>>, vector<1x84xf32>
    %36 = vector.broadcast %35 : vector<1x84xf32> to vector<112x84xf32>
    %37 = arith.mulf %34, %36 : vector<112x84xf32>
    %c0_28 = arith.constant 0 : index
    %c0_29 = arith.constant 0 : index
    %38 = vector.load %arg8[%c0_28, %c0_29] : memref<1x84xf32, #tpu.memory_space<vmem>>, vector<1x84xf32>
    %39 = vector.broadcast %38 : vector<1x84xf32> to vector<112x84xf32>
    %40 = arith.addf %37, %39 : vector<112x84xf32>
    %41 = vector.extract_strided_slice %40 {offsets = [0, 0], sizes = [110, 84], strides = [1, 1]} : vector<112x84xf32> to vector<110x84xf32>
    %c0_30 = arith.constant 0 : index
    %c0_31 = arith.constant 0 : index
    %c0_32 = arith.constant 0 : index
    %42 = vector.load %arg9[%c0_30, %c0_31, %c0_32] : memref<3x84x192xbf16, #tpu.memory_space<vmem>>, vector<1x84x192xbf16>
    %43 = vector.shape_cast %42 : vector<1x84x192xbf16> to vector<84x192xbf16>
    %44 = arith.truncf %41 : vector<110x84xf32> to vector<110x84xbf16>
    %cst_33 = arith.constant dense<0.000000e+00> : vector<110x192xf32>
    %45 = tpu.matmul %44, %43, %cst_33 {dimension_numbers = #tpu.dot_dimension_numbers<[1], [0], [0], [1], [0, 0, 1, 1], [], []>} : vector<110x84xbf16>, vector<84x192xbf16>, vector<110x192xf32> -> vector<110x192xf32>
    %46 = vector.extract_strided_slice %40 {offsets = [1, 0], sizes = [110, 84], strides = [1, 1]} : vector<112x84xf32> to vector<110x84xf32>
    %c1_34 = arith.constant 1 : index
    %c0_35 = arith.constant 0 : index
    %c0_36 = arith.constant 0 : index
    %47 = vector.load %arg9[%c1_34, %c0_35, %c0_36] : memref<3x84x192xbf16, #tpu.memory_space<vmem>>, vector<1x84x192xbf16>
    %48 = vector.shape_cast %47 : vector<1x84x192xbf16> to vector<84x192xbf16>
    %49 = arith.truncf %46 : vector<110x84xf32> to vector<110x84xbf16>
    %cst_37 = arith.constant dense<0.000000e+00> : vector<110x192xf32>
    %50 = tpu.matmul %49, %48, %cst_37 {dimension_numbers = #tpu.dot_dimension_numbers<[1], [0], [0], [1], [0, 0, 1, 1], [], []>} : vector<110x84xbf16>, vector<84x192xbf16>, vector<110x192xf32> -> vector<110x192xf32>
    %51 = arith.addf %45, %50 : vector<110x192xf32>
    %52 = vector.extract_strided_slice %40 {offsets = [2, 0], sizes = [110, 84], strides = [1, 1]} : vector<112x84xf32> to vector<110x84xf32>
    %c2_38 = arith.constant 2 : index
    %c0_39 = arith.constant 0 : index
    %c0_40 = arith.constant 0 : index
    %53 = vector.load %arg9[%c2_38, %c0_39, %c0_40] : memref<3x84x192xbf16, #tpu.memory_space<vmem>>, vector<1x84x192xbf16>
    %54 = vector.shape_cast %53 : vector<1x84x192xbf16> to vector<84x192xbf16>
    %55 = arith.truncf %52 : vector<110x84xf32> to vector<110x84xbf16>
    %cst_41 = arith.constant dense<0.000000e+00> : vector<110x192xf32>
    %56 = tpu.matmul %55, %54, %cst_41 {dimension_numbers = #tpu.dot_dimension_numbers<[1], [0], [0], [1], [0, 0, 1, 1], [], []>} : vector<110x84xbf16>, vector<84x192xbf16>, vector<110x192xf32> -> vector<110x192xf32>
    %57 = arith.addf %51, %56 : vector<110x192xf32>
    %c0_42 = arith.constant 0 : index
    %c0_43 = arith.constant 0 : index
    %58 = vector.load %arg10[%c0_42, %c0_43] : memref<1x192xf32, #tpu.memory_space<vmem>>, vector<1x192xf32>
    %59 = vector.broadcast %58 : vector<1x192xf32> to vector<110x192xf32>
    %60 = arith.addf %57, %59 : vector<110x192xf32>
    %cst_44 = arith.constant 0.000000e+00 : f32
    %61 = vector.broadcast %cst_44 : f32 to vector<110x192xf32>
    %62 = arith.maximumf %60, %61 : vector<110x192xf32>
    %63 = vector.extract_strided_slice %62 {offsets = [0, 0], sizes = [109, 192], strides = [1, 1]} : vector<110x192xf32> to vector<109x192xf32>
    %64 = vector.extract_strided_slice %62 {offsets = [1, 0], sizes = [109, 192], strides = [1, 1]} : vector<110x192xf32> to vector<109x192xf32>
    %65 = arith.maximumf %63, %64 : vector<109x192xf32>
    %c0_45 = arith.constant 0 : index
    %c0_46 = arith.constant 0 : index
    %66 = vector.load %arg11[%c0_45, %c0_46] : memref<48x109xbf16, #tpu.memory_space<vmem>>, vector<48x109xbf16>
    %67 = arith.truncf %65 : vector<109x192xf32> to vector<109x192xbf16>
    %cst_47 = arith.constant dense<0.000000e+00> : vector<48x192xf32>
    %68 = tpu.matmul %66, %67, %cst_47 {dimension_numbers = #tpu.dot_dimension_numbers<[1], [0], [0], [1], [0, 0, 1, 1], [], []>} : vector<48x109xbf16>, vector<109x192xbf16>, vector<48x192xf32> -> vector<48x192xf32>
    %c0_48 = arith.constant 0 : index
    %c0_49 = arith.constant 0 : index
    %69 = vector.load %arg12[%c0_48, %c0_49] : memref<192x96xbf16, #tpu.memory_space<vmem>>, vector<192x96xbf16>
    %70 = arith.truncf %68 : vector<48x192xf32> to vector<48x192xbf16>
    %cst_50 = arith.constant dense<0.000000e+00> : vector<48x96xf32>
    %71 = tpu.matmul %70, %69, %cst_50 {dimension_numbers = #tpu.dot_dimension_numbers<[1], [0], [0], [1], [0, 0, 1, 1], [], []>} : vector<48x192xbf16>, vector<192x96xbf16>, vector<48x96xf32> -> vector<48x96xf32>
    %c0_51 = arith.constant 0 : index
    %c0_52 = arith.constant 0 : index
    %72 = vector.load %arg13[%c0_51, %c0_52] : memref<192x96xbf16, #tpu.memory_space<vmem>>, vector<192x96xbf16>
    %73 = arith.truncf %68 : vector<48x192xf32> to vector<48x192xbf16>
    %cst_53 = arith.constant dense<0.000000e+00> : vector<48x96xf32>
    %74 = tpu.matmul %73, %72, %cst_53 {dimension_numbers = #tpu.dot_dimension_numbers<[1], [0], [0], [1], [0, 0, 1, 1], [], []>} : vector<48x192xbf16>, vector<192x96xbf16>, vector<48x96xf32> -> vector<48x96xf32>
    %75 = arith.maximumf %71, %74 : vector<48x96xf32>
    %c0_54 = arith.constant 0 : index
    %c0_55 = arith.constant 0 : index
    %76 = vector.load %arg14[%c0_54, %c0_55] : memref<1x96xf32, #tpu.memory_space<vmem>>, vector<1x96xf32>
    %77 = vector.broadcast %76 : vector<1x96xf32> to vector<48x96xf32>
    %78 = arith.mulf %75, %77 : vector<48x96xf32>
    %c0_56 = arith.constant 0 : index
    %c0_57 = arith.constant 0 : index
    %79 = vector.load %arg15[%c0_56, %c0_57] : memref<1x96xf32, #tpu.memory_space<vmem>>, vector<1x96xf32>
    %80 = vector.broadcast %79 : vector<1x96xf32> to vector<48x96xf32>
    %81 = arith.addf %78, %80 : vector<48x96xf32>
    %82 = vector.extract_strided_slice %81 {offsets = [0, 0], sizes = [8, 96], strides = [1, 1]} : vector<48x96xf32> to vector<8x96xf32>
    %c0_58 = arith.constant 0 : index
    %c0_59 = arith.constant 0 : index
    %c0_60 = arith.constant 0 : index
    %83 = vector.load %arg16[%c0_58, %c0_59, %c0_60] : memref<6x96x120xbf16, #tpu.memory_space<vmem>>, vector<1x96x120xbf16>
    %84 = vector.shape_cast %83 : vector<1x96x120xbf16> to vector<96x120xbf16>
    %85 = arith.truncf %82 : vector<8x96xf32> to vector<8x96xbf16>
    %cst_61 = arith.constant dense<0.000000e+00> : vector<8x120xf32>
    %86 = tpu.matmul %85, %84, %cst_61 {dimension_numbers = #tpu.dot_dimension_numbers<[1], [0], [0], [1], [0, 0, 1, 1], [], []>} : vector<8x96xbf16>, vector<96x120xbf16>, vector<8x120xf32> -> vector<8x120xf32>
    %87 = vector.extract_strided_slice %81 {offsets = [8, 0], sizes = [8, 96], strides = [1, 1]} : vector<48x96xf32> to vector<8x96xf32>
    %c1_62 = arith.constant 1 : index
    %c0_63 = arith.constant 0 : index
    %c0_64 = arith.constant 0 : index
    %88 = vector.load %arg16[%c1_62, %c0_63, %c0_64] : memref<6x96x120xbf16, #tpu.memory_space<vmem>>, vector<1x96x120xbf16>
    %89 = vector.shape_cast %88 : vector<1x96x120xbf16> to vector<96x120xbf16>
    %90 = arith.truncf %87 : vector<8x96xf32> to vector<8x96xbf16>
    %cst_65 = arith.constant dense<0.000000e+00> : vector<8x120xf32>
    %91 = tpu.matmul %90, %89, %cst_65 {dimension_numbers = #tpu.dot_dimension_numbers<[1], [0], [0], [1], [0, 0, 1, 1], [], []>} : vector<8x96xbf16>, vector<96x120xbf16>, vector<8x120xf32> -> vector<8x120xf32>
    %92 = arith.addf %86, %91 : vector<8x120xf32>
    %93 = vector.extract_strided_slice %81 {offsets = [16, 0], sizes = [8, 96], strides = [1, 1]} : vector<48x96xf32> to vector<8x96xf32>
    %c2_66 = arith.constant 2 : index
    %c0_67 = arith.constant 0 : index
    %c0_68 = arith.constant 0 : index
    %94 = vector.load %arg16[%c2_66, %c0_67, %c0_68] : memref<6x96x120xbf16, #tpu.memory_space<vmem>>, vector<1x96x120xbf16>
    %95 = vector.shape_cast %94 : vector<1x96x120xbf16> to vector<96x120xbf16>
    %96 = arith.truncf %93 : vector<8x96xf32> to vector<8x96xbf16>
    %cst_69 = arith.constant dense<0.000000e+00> : vector<8x120xf32>
    %97 = tpu.matmul %96, %95, %cst_69 {dimension_numbers = #tpu.dot_dimension_numbers<[1], [0], [0], [1], [0, 0, 1, 1], [], []>} : vector<8x96xbf16>, vector<96x120xbf16>, vector<8x120xf32> -> vector<8x120xf32>
    %98 = arith.addf %92, %97 : vector<8x120xf32>
    %99 = vector.extract_strided_slice %81 {offsets = [24, 0], sizes = [8, 96], strides = [1, 1]} : vector<48x96xf32> to vector<8x96xf32>
    %c3 = arith.constant 3 : index
    %c0_70 = arith.constant 0 : index
    %c0_71 = arith.constant 0 : index
    %100 = vector.load %arg16[%c3, %c0_70, %c0_71] : memref<6x96x120xbf16, #tpu.memory_space<vmem>>, vector<1x96x120xbf16>
    %101 = vector.shape_cast %100 : vector<1x96x120xbf16> to vector<96x120xbf16>
    %102 = arith.truncf %99 : vector<8x96xf32> to vector<8x96xbf16>
    %cst_72 = arith.constant dense<0.000000e+00> : vector<8x120xf32>
    %103 = tpu.matmul %102, %101, %cst_72 {dimension_numbers = #tpu.dot_dimension_numbers<[1], [0], [0], [1], [0, 0, 1, 1], [], []>} : vector<8x96xbf16>, vector<96x120xbf16>, vector<8x120xf32> -> vector<8x120xf32>
    %104 = arith.addf %98, %103 : vector<8x120xf32>
    %105 = vector.extract_strided_slice %81 {offsets = [32, 0], sizes = [8, 96], strides = [1, 1]} : vector<48x96xf32> to vector<8x96xf32>
    %c4 = arith.constant 4 : index
    %c0_73 = arith.constant 0 : index
    %c0_74 = arith.constant 0 : index
    %106 = vector.load %arg16[%c4, %c0_73, %c0_74] : memref<6x96x120xbf16, #tpu.memory_space<vmem>>, vector<1x96x120xbf16>
    %107 = vector.shape_cast %106 : vector<1x96x120xbf16> to vector<96x120xbf16>
    %108 = arith.truncf %105 : vector<8x96xf32> to vector<8x96xbf16>
    %cst_75 = arith.constant dense<0.000000e+00> : vector<8x120xf32>
    %109 = tpu.matmul %108, %107, %cst_75 {dimension_numbers = #tpu.dot_dimension_numbers<[1], [0], [0], [1], [0, 0, 1, 1], [], []>} : vector<8x96xbf16>, vector<96x120xbf16>, vector<8x120xf32> -> vector<8x120xf32>
    %110 = arith.addf %104, %109 : vector<8x120xf32>
    %111 = vector.extract_strided_slice %81 {offsets = [40, 0], sizes = [8, 96], strides = [1, 1]} : vector<48x96xf32> to vector<8x96xf32>
    %c5 = arith.constant 5 : index
    %c0_76 = arith.constant 0 : index
    %c0_77 = arith.constant 0 : index
    %112 = vector.load %arg16[%c5, %c0_76, %c0_77] : memref<6x96x120xbf16, #tpu.memory_space<vmem>>, vector<1x96x120xbf16>
    %113 = vector.shape_cast %112 : vector<1x96x120xbf16> to vector<96x120xbf16>
    %114 = arith.truncf %111 : vector<8x96xf32> to vector<8x96xbf16>
    %cst_78 = arith.constant dense<0.000000e+00> : vector<8x120xf32>
    %115 = tpu.matmul %114, %113, %cst_78 {dimension_numbers = #tpu.dot_dimension_numbers<[1], [0], [0], [1], [0, 0, 1, 1], [], []>} : vector<8x96xbf16>, vector<96x120xbf16>, vector<8x120xf32> -> vector<8x120xf32>
    %116 = arith.addf %110, %115 : vector<8x120xf32>
    %c0_79 = arith.constant 0 : index
    %c0_80 = arith.constant 0 : index
    %117 = vector.load %arg17[%c0_79, %c0_80] : memref<1x120xf32, #tpu.memory_space<vmem>>, vector<1x120xf32>
    %118 = vector.broadcast %117 : vector<1x120xf32> to vector<8x120xf32>
    %119 = arith.addf %116, %118 : vector<8x120xf32>
    %cst_81 = arith.constant 0.000000e+00 : f32
    %120 = vector.broadcast %cst_81 : f32 to vector<8x120xf32>
    %121 = arith.maximumf %119, %120 : vector<8x120xf32>
    %c0_82 = arith.constant 0 : index
    %c0_83 = arith.constant 0 : index
    %122 = vector.load %arg18[%c0_82, %c0_83] : memref<1x120xf32, #tpu.memory_space<vmem>>, vector<1x120xf32>
    %123 = vector.broadcast %122 : vector<1x120xf32> to vector<8x120xf32>
    %124 = arith.mulf %121, %123 : vector<8x120xf32>
    %c0_84 = arith.constant 0 : index
    %c0_85 = arith.constant 0 : index
    %125 = vector.load %arg19[%c0_84, %c0_85] : memref<1x120xf32, #tpu.memory_space<vmem>>, vector<1x120xf32>
    %126 = vector.broadcast %125 : vector<1x120xf32> to vector<8x120xf32>
    %127 = arith.addf %124, %126 : vector<8x120xf32>
    %c0_86 = arith.constant 0 : index
    %c0_87 = arith.constant 0 : index
    %128 = vector.load %arg20[%c0_86, %c0_87] : memref<120x84xbf16, #tpu.memory_space<vmem>>, vector<120x84xbf16>
    %129 = arith.truncf %127 : vector<8x120xf32> to vector<8x120xbf16>
    %cst_88 = arith.constant dense<0.000000e+00> : vector<8x84xf32>
    %130 = tpu.matmul %129, %128, %cst_88 {dimension_numbers = #tpu.dot_dimension_numbers<[1], [0], [0], [1], [0, 0, 1, 1], [], []>} : vector<8x120xbf16>, vector<120x84xbf16>, vector<8x84xf32> -> vector<8x84xf32>
    %c0_89 = arith.constant 0 : index
    %c0_90 = arith.constant 0 : index
    %131 = vector.load %arg21[%c0_89, %c0_90] : memref<1x84xf32, #tpu.memory_space<vmem>>, vector<1x84xf32>
    %132 = vector.broadcast %131 : vector<1x84xf32> to vector<8x84xf32>
    %133 = arith.addf %130, %132 : vector<8x84xf32>
    %cst_91 = arith.constant 0.000000e+00 : f32
    %134 = vector.broadcast %cst_91 : f32 to vector<8x84xf32>
    %135 = arith.maximumf %133, %134 : vector<8x84xf32>
    %c0_92 = arith.constant 0 : index
    %c0_93 = arith.constant 0 : index
    %136 = vector.load %arg22[%c0_92, %c0_93] : memref<84x128xbf16, #tpu.memory_space<vmem>>, vector<84x128xbf16>
    %137 = arith.truncf %135 : vector<8x84xf32> to vector<8x84xbf16>
    %cst_94 = arith.constant dense<0.000000e+00> : vector<8x128xf32>
    %138 = tpu.matmul %137, %136, %cst_94 {dimension_numbers = #tpu.dot_dimension_numbers<[1], [0], [0], [1], [0, 0, 1, 1], [], []>} : vector<8x84xbf16>, vector<84x128xbf16>, vector<8x128xf32> -> vector<8x128xf32>
    %c0_95 = arith.constant 0 : index
    %c0_96 = arith.constant 0 : index
    %139 = vector.load %arg23[%c0_95, %c0_96] : memref<1x128xf32, #tpu.memory_space<vmem>>, vector<1x128xf32>
    %140 = vector.broadcast %139 : vector<1x128xf32> to vector<8x128xf32>
    %141 = arith.addf %138, %140 : vector<8x128xf32>
    %c0_97 = arith.constant 0 : index
    %c0_98 = arith.constant 0 : index
    %142 = vector.load %arg24[%c0_97, %c0_98] : memref<8x128xf32, #tpu.memory_space<vmem>>, vector<8x128xf32>
    tpu.vector_store %arg24[%c0_97, %c0_98], %141 {strides = array<i32>} : memref<8x128xf32, #tpu.memory_space<vmem>>, vector<8x128xf32>,
    return
  }
  func.func @transform_0(%arg0: i32) -> (i32, i32) {
    %c0_i32 = arith.constant 0 : i32
    %c0_i32_0 = arith.constant 0 : i32
    return %arg0, %c0_i32 : i32, i32
  }
  func.func @transform_1(%arg0: i32) -> (i32, i32, i32) {
    %c0_i32 = arith.constant 0 : i32
    %c0_i32_0 = arith.constant 0 : i32
    %c0_i32_1 = arith.constant 0 : i32
    %c0_i32_2 = arith.constant 0 : i32
    return %c0_i32, %c0_i32_0, %c0_i32_1 : i32, i32, i32
  }
  func.func @transform_2(%arg0: i32) -> (i32, i32) {
    %c0_i32 = arith.constant 0 : i32
    %c0_i32_0 = arith.constant 0 : i32
    %c0_i32_1 = arith.constant 0 : i32
    return %c0_i32, %c0_i32_0 : i32, i32
  }
  func.func @transform_3(%arg0: i32) -> (i32, i32) {
    %c0_i32 = arith.constant 0 : i32
    %c0_i32_0 = arith.constant 0 : i32
    %c0_i32_1 = arith.constant 0 : i32
    return %c0_i32, %c0_i32_0 : i32, i32
  }
  func.func @transform_4(%arg0: i32) -> (i32, i32) {
    %c0_i32 = arith.constant 0 : i32
    %c0_i32_0 = arith.constant 0 : i32
    %c0_i32_1 = arith.constant 0 : i32
    return %c0_i32, %c0_i32_0 : i32, i32
  }
  func.func @transform_5(%arg0: i32) -> (i32, i32) {
    %c0_i32 = arith.constant 0 : i32
    %c0_i32_0 = arith.constant 0 : i32
    %c0_i32_1 = arith.constant 0 : i32
    return %c0_i32, %c0_i32_0 : i32, i32
  }
  func.func @transform_6(%arg0: i32) -> (i32, i32) {
    %c0_i32 = arith.constant 0 : i32
    %c0_i32_0 = arith.constant 0 : i32
    %c0_i32_1 = arith.constant 0 : i32
    return %c0_i32, %c0_i32_0 : i32, i32
  }
  func.func @transform_7(%arg0: i32) -> (i32, i32) {
    %c0_i32 = arith.constant 0 : i32
    %c0_i32_0 = arith.constant 0 : i32
    %c0_i32_1 = arith.constant 0 : i32
    return %c0_i32, %c0_i32_0 : i32, i32
  }
  func.func @transform_8(%arg0: i32) -> (i32, i32, i32) {
    %c0_i32 = arith.constant 0 : i32
    %c0_i32_0 = arith.constant 0 : i32
    %c0_i32_1 = arith.constant 0 : i32
    %c0_i32_2 = arith.constant 0 : i32
    return %c0_i32, %c0_i32_0, %c0_i32_1 : i32, i32, i32
  }
  func.func @transform_9(%arg0: i32) -> (i32, i32) {
    %c0_i32 = arith.constant 0 : i32
    %c0_i32_0 = arith.constant 0 : i32
    %c0_i32_1 = arith.constant 0 : i32
    return %c0_i32, %c0_i32_0 : i32, i32
  }
  func.func @transform_10(%arg0: i32) -> (i32, i32) {
    %c0_i32 = arith.constant 0 : i32
    %c0_i32_0 = arith.constant 0 : i32
    %c0_i32_1 = arith.constant 0 : i32
    return %c0_i32, %c0_i32_0 : i32, i32
  }
  func.func @transform_11(%arg0: i32) -> (i32, i32) {
    %c0_i32 = arith.constant 0 : i32
    %c0_i32_0 = arith.constant 0 : i32
    %c0_i32_1 = arith.constant 0 : i32
    return %c0_i32, %c0_i32_0 : i32, i32
  }
  func.func @transform_12(%arg0: i32) -> (i32, i32) {
    %c0_i32 = arith.constant 0 : i32
    %c0_i32_0 = arith.constant 0 : i32
    %c0_i32_1 = arith.constant 0 : i32
    return %c0_i32, %c0_i32_0 : i32, i32
  }
  func.func @transform_13(%arg0: i32) -> (i32, i32) {
    %c0_i32 = arith.constant 0 : i32
    %c0_i32_0 = arith.constant 0 : i32
    %c0_i32_1 = arith.constant 0 : i32
    return %c0_i32, %c0_i32_0 : i32, i32
  }
  func.func @transform_14(%arg0: i32) -> (i32, i32) {
    %c0_i32 = arith.constant 0 : i32
    %c0_i32_0 = arith.constant 0 : i32
    %c0_i32_1 = arith.constant 0 : i32
    return %c0_i32, %c0_i32_0 : i32, i32
  }
  func.func @transform_15(%arg0: i32) -> (i32, i32, i32) {
    %c0_i32 = arith.constant 0 : i32
    %c0_i32_0 = arith.constant 0 : i32
    %c0_i32_1 = arith.constant 0 : i32
    %c0_i32_2 = arith.constant 0 : i32
    return %c0_i32, %c0_i32_0, %c0_i32_1 : i32, i32, i32
  }
  func.func @transform_16(%arg0: i32) -> (i32, i32) {
    %c0_i32 = arith.constant 0 : i32
    %c0_i32_0 = arith.constant 0 : i32
    %c0_i32_1 = arith.constant 0 : i32
    return %c0_i32, %c0_i32_0 : i32, i32
  }
  func.func @transform_17(%arg0: i32) -> (i32, i32) {
    %c0_i32 = arith.constant 0 : i32
    %c0_i32_0 = arith.constant 0 : i32
    %c0_i32_1 = arith.constant 0 : i32
    return %c0_i32, %c0_i32_0 : i32, i32
  }
  func.func @transform_18(%arg0: i32) -> (i32, i32) {
    %c0_i32 = arith.constant 0 : i32
    %c0_i32_0 = arith.constant 0 : i32
    %c0_i32_1 = arith.constant 0 : i32
    return %c0_i32, %c0_i32_0 : i32, i32
  }
  func.func @transform_19(%arg0: i32) -> (i32, i32) {
    %c0_i32 = arith.constant 0 : i32
    %c0_i32_0 = arith.constant 0 : i32
    %c0_i32_1 = arith.constant 0 : i32
    return %c0_i32, %c0_i32_0 : i32, i32
  }
  func.func @transform_20(%arg0: i32) -> (i32, i32) {
    %c0_i32 = arith.constant 0 : i32
    %c0_i32_0 = arith.constant 0 : i32
    %c0_i32_1 = arith.constant 0 : i32
    return %c0_i32, %c0_i32_0 : i32, i32
  }
  func.func @transform_21(%arg0: i32) -> (i32, i32) {
    %c0_i32 = arith.constant 0 : i32
    %c0_i32_0 = arith.constant 0 : i32
    %c0_i32_1 = arith.constant 0 : i32
    return %c0_i32, %c0_i32_0 : i32, i32
  }
  func.func @transform_22(%arg0: i32) -> (i32, i32) {
    %c0_i32 = arith.constant 0 : i32
    %c0_i32_0 = arith.constant 0 : i32
    %c0_i32_1 = arith.constant 0 : i32
    return %c0_i32, %c0_i32_0 : i32, i32
  }
  func.func @transform_23(%arg0: i32) -> (i32, i32) {
    %c0_i32 = arith.constant 0 : i32
    %c0_i32_0 = arith.constant 0 : i32
    return %arg0, %c0_i32 : i32, i32
  }
}

</mosaic_0001>

<bundles_post_ra>
// kernel: tile.33
= control target key start
LH: loop header
LB: loop body
LE: loop exit
PB: predicated region body
PF: predicated region fallthrough
CT: control target
= control target key end

     0   :  { %s40_s0 = inlined_call_operand.vmem [shape: f32[6], index: 0, kind: input, shape index: {}]   ;;  %s41_s1 = inlined_call_operand.vmem [shape: f32[28,6], index: 1, kind: output, shape index: {}]  }
   0x1   :  { %v4_v0 = vld [vmem:[%s40_s0] ss:$0 sm:$0xff] }
   0x2   :  { %5 = vst [vmem:[%s41_s1] sm:$0xff] %v4_v0  ;;  %12 = vst [vmem:[%s41_s1 + $0x8] sm:$0xff] %v4_v0 }
   0x3   :  { %13 = vst [vmem:[%s41_s1 + $0x10] sm:$0xff] %v4_v0  ;;  %14 = vst [vmem:[%s41_s1 + $0x18] sm:$0xff] %v4_v0 }

// kernel: tile.34
= control target key start
LH: loop header
LB: loop body
LE: loop exit
PB: predicated region body
PF: predicated region fallthrough
CT: control target
= control target key end

     0   :  { %vm9_vm0 = vcmask 15360   ;;  %s247_s12 = smov 126   ;;  %s248_s13 = smov 114   ;;  %vm3_vm1 = vcmask 48128   ;;  %vm13_vm2 = vcmask 31744   ;;  %vm16_vm3 = vcmask 1048560   ;;  %s377_s0 = inlined_call_operand.vmem [shape: f32[28,6], index: 0, kind: input, shape index: {}]   ;;  %s378_s1 = inlined_call_operand.vmem [shape: f32[1,168], index: 1, kind: output, shape index: {}]  }
   0x1   :  { %v191_v0 = vld [vmem:[%s377_s0 + $0x15] sm:$0x1]   ;;  %v194_v3 = vld [vmem:[%s377_s0 + $0x13] sm:$0x1]   ;;  %v193_v4 = vld [vmem:[%s377_s0 + $0x14] sm:$0x1]  }
   0x2   :  { %v192_v1 = vld [vmem:[%s377_s0 + $0x15] sm:$0x1]   ;;  %26 = vrot.lane.b32.xlu1 %v194_v3, %s248_s13  ;;  %v195_v5 = vld [vmem:[%s377_s0 + $0x12] sm:$0x1]   ;;  %s249_s18 = smov 120   ;;  %s250_s19 = smov 108  }
   0x3   :  { %v10_v2 = vsel %vm9_vm0, %v192_v1, %v191_v0  ;;  %v196_v6 = vld [vmem:[%s377_s0 + $0x11] sm:$0x1]   ;;  %v197_v7 = vld [vmem:[%s377_s0 + $0x10] sm:$0x1]   ;;  %s251_s24 = smov 102   ;;  %s252_s25 = smov 96  }
   0x4   :  { %11 = vrot.lane.b32.xlu0 %v10_v2, %s247_s12  ;;  %v198_v8 = vld [vmem:[%s377_s0 + $0xf] sm:$0x1]   ;;  %v199_v9 = vld [vmem:[%s377_s0 + $0xe] sm:$0x1]   ;;  %s253_s30 = smov 90   ;;  %s254_s2 = smov 84  }
   0x5   :  { %v2_v10 = vld [vmem:[%s377_s0] sm:$0x1]   ;;  %v200_v11 = vld [vmem:[%s377_s0 + $0xd] sm:$0x1]   ;;  %v201_v12 = vld [vmem:[%s377_s0 + $0xc] sm:$0x1]  }
   0x6   :  { %32 = vrot.lane.b32.xlu1 %v195_v5, %s250_s19  ;;  %4 = vst.msk [vmem:[#allocation0] sm:$0x1] %vm3_vm1, %v2_v10   ;;  %s255_s9 = smov 78   ;;  %s256_s10 = smov 72   ;;  %v202_v13 = vld [vmem:[%s377_s0 + $0xb] sm:$0x1]  }
   0x7   :  { %v203_v14 = vld [vmem:[%s377_s0 + $0xa] sm:$0x1]   ;;  %s257_s15 = smov 66   ;;  %s258_s16 = smov 60   ;;  %v204_v15 = vld [vmem:[%s377_s0 + $0x9] sm:$0x1]  }
   0x8   :  { %20 = vrot.lane.b32.xlu0 %v193_v4, %s249_s18  ;;  %v205_v16 = vld [vmem:[%s377_s0 + $0x8] sm:$0x1]   ;;  %s259_s21 = smov 54   ;;  %s260_s22 = smov 48   ;;  %v206_v17 = vld [vmem:[%s377_s0 + $0x7] sm:$0x1]  }
   0x9   :  { %v207_v18 = vld [vmem:[%s377_s0 + $0x6] sm:$0x1]   ;;  %s261_s27 = smov 42   ;;  %s262_s28 = smov 36   ;;  %v208_v19 = vld [vmem:[%s377_s0 + $0x1b] sm:$0x1]  }
   0xa   :  { %44 = vrot.lane.b32.xlu1 %v197_v7, %s252_s25  ;;  %v209_v20 = vld [vmem:[%s377_s0 + $0x5] sm:$0x1]   ;;  %s263_s4 = smov 34   ;;  %s264_s5 = smov 30   ;;  %v210_v21 = vld [vmem:[%s377_s0 + $0x1a] sm:$0x1]  }
   0xb   :  { %v211_v22 = vld [vmem:[%s377_s0 + $0x4] sm:$0x1]   ;;  %s266_s11 = smov 24   ;;  %v212_v23 = vld [vmem:[%s377_s0 + $0x19] sm:$0x1]   ;;  %s268_s17 = smov 18  }
   0xc   :  { %38 = vrot.lane.b32.xlu0 %v196_v6, %s251_s24  ;;  %v213_v24 = vld [vmem:[%s377_s0 + $0x3] sm:$0x1]   ;;  %v214_v25 = vld [vmem:[%s377_s0 + $0x18] sm:$0x1]   ;;  %v215_v26 = vld [vmem:[%s377_s0 + $0x2] sm:$0x1]  }
   0xd   :  { %s270_s23 = smov 12   ;;  %v216_v27 = vld [vmem:[%s377_s0 + $0x17] sm:$0x1]   ;;  %v217_v28 = vld [vmem:[%s377_s0 + $0x1] sm:$0x1]   ;;  %s272_s29 = smov 6  }
   0xe   :  { %56 = vrot.lane.b32.xlu1 %v199_v9, %s254_s2  ;;  %v218_v29 = vld [vmem:[%s377_s0 + $0x16] sm:$0x1]   ;;  %s273_s0 = smov 4   ;;  %vm22_vm4 = vcmask 1032128   ;;  %vm28_vm5 = vcmask 982928   ;;  %vm34_vm6 = vcmask 933728  }
   0xf   :  { %vm40_vm7 = vcmask 884528   ;;  %vm46_vm8 = vcmask 835328   ;;  %vm52_vm9 = vcmask 786128   ;;  %vm58_vm10 = vcmask 736928  }
  0x10   :  { %50 = vrot.lane.b32.xlu0 %v198_v8, %s253_s30  ;;  %vm64_vm11 = vcmask 687728   ;;  %vm70_vm12 = vcmask 638528   ;;  %vm76_vm13 = vcmask 589328   ;;  %vm82_vm14 = vcmask 540128  }
  0x11   :  { %vm88_vm15 = vcmask 490928   ;;  %vm94_vm0 = vcmask 441728   ;;  %vm100_vm1 = vcmask 392528  }
  0x12   :  { %68 = vrot.lane.b32.xlu1 %v201_v12, %s256_s10  ;;  %s265_s10 = smov 28  }
  0x14   :  { %62 = vrot.lane.b32.xlu0 %v200_v11, %s255_s9 }
  0x16   :  { %80 = vrot.lane.b32.xlu1 %v203_v14, %s258_s16  ;;  %s267_s16 = smov 22  }
  0x18   :  { %74 = vrot.lane.b32.xlu0 %v202_v13, %s257_s15 }
  0x1a   :  { %92 = vrot.lane.b32.xlu1 %v205_v16, %s260_s22  ;;  %s269_s22 = smov 16  }
  0x1c   :  { %86 = vrot.lane.b32.xlu0 %v204_v15, %s259_s21 }
  0x1e   :  { %104 = vrot.lane.b32.xlu1 %v207_v18, %s262_s28  ;;  %s271_s28 = smov 10  }
  0x20   :  { %98 = vrot.lane.b32.xlu0 %v206_v17, %s261_s27 }
  0x22   :  { %117 = vrot.lane.b32.xlu1 %v209_v20, %s264_s5 }
  0x24   :  { %110 = vrot.lane.b32.xlu0 %v208_v19, %s263_s4 }
  0x26   :  { %130 = vrot.lane.b32.xlu1 %v211_v22, %s266_s11 }
  0x28   :  { %123 = vrot.lane.b32.xlu0 %v210_v21, %s265_s10 }
  0x2a   :  { %143 = vrot.lane.b32.xlu1 %v213_v24, %s268_s17 }
  0x2c   :  { %136 = vrot.lane.b32.xlu0 %v212_v23, %s267_s16 }
  0x2e   :  { %156 = vrot.lane.b32.xlu1 %v215_v26, %s270_s23 }
  0x30   :  { %149 = vrot.lane.b32.xlu0 %v214_v25, %s269_s22 }
  0x32   :  { %169 = vrot.lane.b32.xlu1 %v217_v28, %s272_s29 }
  0x34   :  { %162 = vrot.lane.b32.xlu0 %v216_v27, %s271_s28 }
  0x38   :  { %175 = vrot.lane.b32.xlu0 %v218_v29, %s273_s0 }
  0x74   :  { %v27_v31 = vpop.permute.xlu1 %26  }
  0x76   :  { %v12_v30 = vpop.permute.xlu0 %11  }
  0x77   :  { %15 = vst.msk [vmem:[#allocation0 + $0x8] sm:$0x1] %vm13_vm2, %v12_v30   ;;  %vm106_vm2 = vcmask 343328  }
  0x78   :  { %17 = vst.msk [vmem:[#allocation0] sm:$0x1] %vm16_vm3, %v12_v30   ;;  %v33_v33 = vpop.permute.xlu1 %32   ;;  %vm112_vm3 = vcmask 326928  }
  0x7a   :  { %v21_v32 = vpop.permute.xlu0 %20  }
  0x7b   :  { %23 = vst.msk [vmem:[#allocation0] sm:$0x1] %vm22_vm4, %v21_v32   ;;  %vm119_vm4 = vcmask 294128  }
  0x7c   :  { %29 = vst.msk [vmem:[#allocation0] sm:$0x1] %vm28_vm5, %v27_v31   ;;  %v45_v35 = vpop.permute.xlu1 %44   ;;  %vm125_vm5 = vcmask 277728  }
  0x7d   :  { %35 = vst.msk [vmem:[#allocation0] sm:$0x1] %vm34_vm6, %v33_v33   ;;  %vm132_vm6 = vcmask 244928  }
  0x7e   :  { %v39_v34 = vpop.permute.xlu0 %38  }
  0x7f   :  { %41 = vst.msk [vmem:[#allocation0] sm:$0x1] %vm40_vm7, %v39_v34   ;;  %vm138_vm7 = vcmask 228528  }
  0x80   :  { %47 = vst.msk [vmem:[#allocation0] sm:$0x1] %vm46_vm8, %v45_v35   ;;  %v57_v37 = vpop.permute.xlu1 %56   ;;  %vm145_vm8 = vcmask 195728  }
  0x82   :  { %v51_v36 = vpop.permute.xlu0 %50  }
  0x83   :  { %53 = vst.msk [vmem:[#allocation0] sm:$0x1] %vm52_vm9, %v51_v36   ;;  %vm151_vm9 = vcmask 179328  }
  0x84   :  { %59 = vst.msk [vmem:[#allocation0] sm:$0x1] %vm58_vm10, %v57_v37   ;;  %v69_v39 = vpop.permute.xlu1 %68   ;;  %vm158_vm10 = vcmask 146528  }
  0x86   :  { %v63_v38 = vpop.permute.xlu0 %62  }
  0x87   :  { %65 = vst.msk [vmem:[#allocation0] sm:$0x1] %vm64_vm11, %v63_v38   ;;  %vm164_vm11 = vcmask 130128  }
  0x88   :  { %71 = vst.msk [vmem:[#allocation0] sm:$0x1] %vm70_vm12, %v69_v39   ;;  %v81_v41 = vpop.permute.xlu1 %80   ;;  %vm171_vm12 = vcmask 97328  }
  0x8a   :  { %v75_v40 = vpop.permute.xlu0 %74  }
  0x8b   :  { %77 = vst.msk [vmem:[#allocation0] sm:$0x1] %vm76_vm13, %v75_v40   ;;  %vm177_vm13 = vcmask 80928  }
  0x8c   :  { %83 = vst.msk [vmem:[#allocation0] sm:$0x1] %vm82_vm14, %v81_v41   ;;  %v93_v43 = vpop.permute.xlu1 %92  }
  0x8e   :  { %v87_v42 = vpop.permute.xlu0 %86  }
  0x8f   :  { %89 = vst.msk [vmem:[#allocation0] sm:$0x1] %vm88_vm15, %v87_v42  }
  0x90   :  { %95 = vst.msk [vmem:[#allocation0] sm:$0x1] %vm94_vm0, %v93_v43   ;;  %v105_v45 = vpop.permute.xlu1 %104  }
  0x92   :  { %v99_v44 = vpop.permute.xlu0 %98  }
  0x93   :  { %101 = vst.msk [vmem:[#allocation0] sm:$0x1] %vm100_vm1, %v99_v44  }
  0x94   :  { %107 = vst.msk [vmem:[#allocation0] sm:$0x1] %vm106_vm2, %v105_v45   ;;  %v118_v47 = vpop.permute.xlu1 %117  }
  0x95   :  { %120 = vst.msk [vmem:[#allocation0] sm:$0x1] %vm119_vm4, %v118_v47  }
  0x96   :  { %v111_v46 = vpop.permute.xlu0 %110  }
  0x97   :  { %114 = vst.msk [vmem:[#allocation0 + $0x8] sm:$0x1] %vm112_vm3, %v111_v46  }
  0x98   :  { %v131_v49 = vpop.permute.xlu1 %130  }
  0x99   :  { %133 = vst.msk [vmem:[#allocation0] sm:$0x1] %vm132_vm6, %v131_v49  }
  0x9a   :  { %v124_v48 = vpop.permute.xlu0 %123  }
  0x9b   :  { %127 = vst.msk [vmem:[#allocation0 + $0x8] sm:$0x1] %vm125_vm5, %v124_v48  }
  0x9c   :  { %v144_v51 = vpop.permute.xlu1 %143  }
  0x9d   :  { %146 = vst.msk [vmem:[#allocation0] sm:$0x1] %vm145_vm8, %v144_v51  }
  0x9e   :  { %v137_v50 = vpop.permute.xlu0 %136  }
  0x9f   :  { %140 = vst.msk [vmem:[#allocation0 + $0x8] sm:$0x1] %vm138_vm7, %v137_v50  }
  0xa0   :  { %v157_v53 = vpop.permute.xlu1 %156  }
  0xa1   :  { %159 = vst.msk [vmem:[#allocation0] sm:$0x1] %vm158_vm10, %v157_v53  }
  0xa2   :  { %v150_v52 = vpop.permute.xlu0 %149  }
  0xa3   :  { %153 = vst.msk [vmem:[#allocation0 + $0x8] sm:$0x1] %vm151_vm9, %v150_v52  }
  0xa4   :  { %v170_v55 = vpop.permute.xlu1 %169  }
  0xa5   :  { %172 = vst.msk [vmem:[#allocation0] sm:$0x1] %vm171_vm12, %v170_v55  }
  0xa6   :  { %v163_v54 = vpop.permute.xlu0 %162  }
  0xa7   :  { %166 = vst.msk [vmem:[#allocation0 + $0x8] sm:$0x1] %vm164_vm11, %v163_v54  }
  0xaa   :  { %v176_v56 = vpop.permute.xlu0 %175  }
  0xab   :  { %179 = vst.msk [vmem:[#allocation0 + $0x8] sm:$0x1] %vm177_vm13, %v176_v56  }
  0xac   :  { %v183_v57 = vld [vmem:[#allocation0] sm:$0x1] }
  0xad   :  { %185 = vst [vmem:[%s378_s1] sm:$0x1] %v183_v57 }
  0xb2   :  { %v187_v58 = vld [vmem:[#allocation0 + $0x8] sm:$0x1] }
  0xb3   :  { %219 = vst [vmem:[%s378_s1 + $0x1] sm:$0x1] %v187_v58 }

// kernel: tile.43
= control target key start
LH: loop header
LB: loop body
LE: loop exit
PB: predicated region body
PF: predicated region fallthrough
CT: control target
= control target key end

     0   :  { %s28_s0 = inlined_call_operand.vmem [shape: f32[6], index: 0, kind: input, shape index: {}]   ;;  %s29_s1 = inlined_call_operand.vmem [shape: f32[14,6], index: 1, kind: output, shape index: {}]  }
   0x1   :  { %v4_v0 = vld [vmem:[%s28_s0] ss:$0 sm:$0xff] }
   0x2   :  { %5 = vst [vmem:[%s29_s1] sm:$0xff] %v4_v0  ;;  %8 = vst [vmem:[%s29_s1 + $0x8] sm:$0xff] %v4_v0 }

// kernel: tile.44
= control target key start
LH: loop header
LB: loop body
LE: loop exit
PB: predicated region body
PF: predicated region fallthrough
CT: control target
= control target key end

     0   :  { %s115_s10 = smov 78   ;;  %s116_s11 = smov 66   ;;  %vm3_vm0 = vcmask 48128   ;;  %vm9_vm1 = vcmask 687728   ;;  %vm15_vm2 = vcmask 638528   ;;  %vm21_vm3 = vcmask 589328   ;;  %s183_s0 = inlined_call_operand.vmem [shape: f32[14,6], index: 0, kind: input, shape index: {}]   ;;  %s184_s1 = inlined_call_operand.vmem [shape: f32[1,84], index: 1, kind: output, shape index: {}]  }
   0x1   :  { %v89_v0 = vld [vmem:[%s183_s0 + $0xd] sm:$0x1]   ;;  %v91_v1 = vld [vmem:[%s183_s0 + $0xb] sm:$0x1]   ;;  %v90_v2 = vld [vmem:[%s183_s0 + $0xc] sm:$0x1]  }
   0x2   :  { %7 = vrot.lane.b32.xlu0 %v89_v0, %s115_s10  ;;  %19 = vrot.lane.b32.xlu1 %v91_v1, %s116_s11  ;;  %v92_v3 = vld [vmem:[%s183_s0 + $0xa] sm:$0x1]   ;;  %s117_s16 = smov 72   ;;  %s118_s17 = smov 60   ;;  %v93_v4 = vld [vmem:[%s183_s0 + $0x9] sm:$0x1]  }
   0x3   :  { %v94_v5 = vld [vmem:[%s183_s0 + $0x8] sm:$0x1]   ;;  %v2_v6 = vld [vmem:[%s183_s0] sm:$0x1]   ;;  %s119_s24 = smov 54   ;;  %s120_s25 = smov 48  }
   0x4   :  { %4 = vst.msk [vmem:[#allocation0] sm:$0x1] %vm3_vm0, %v2_v6   ;;  %v95_v7 = vld [vmem:[%s183_s0 + $0x7] sm:$0x1]   ;;  %v96_v8 = vld [vmem:[%s183_s0 + $0x6] sm:$0x1]  }
   0x5   :  { %s121_s30 = smov 42   ;;  %s122_s2 = smov 36   ;;  %v97_v9 = vld [vmem:[%s183_s0 + $0x5] sm:$0x1]   ;;  %v98_v10 = vld [vmem:[%s183_s0 + $0x4] sm:$0x1]  }
   0x6   :  { %13 = vrot.lane.b32.xlu0 %v90_v2, %s117_s16  ;;  %25 = vrot.lane.b32.xlu1 %v92_v3, %s118_s17  ;;  %s123_s7 = smov 30   ;;  %s124_s8 = smov 24   ;;  %v99_v11 = vld [vmem:[%s183_s0 + $0x3] sm:$0x1]   ;;  %v100_v12 = vld [vmem:[%s183_s0 + $0x2] sm:$0x1]  }
   0x7   :  { %s125_s13 = smov 18   ;;  %s126_s14 = smov 12   ;;  %v101_v13 = vld [vmem:[%s183_s0 + $0x1] sm:$0x1]   ;;  %vm27_vm4 = vcmask 540128   ;;  %vm33_vm5 = vcmask 490928  }
   0x8   :  { %s127_s0 = smov 6   ;;  %vm39_vm6 = vcmask 441728   ;;  %vm45_vm7 = vcmask 392528   ;;  %vm51_vm8 = vcmask 343328   ;;  %vm57_vm9 = vcmask 294128  }
   0x9   :  { %vm63_vm10 = vcmask 244928   ;;  %vm69_vm11 = vcmask 195728   ;;  %vm75_vm12 = vcmask 146528   ;;  %vm81_vm13 = vcmask 97328  }
   0xa   :  { %31 = vrot.lane.b32.xlu0 %v93_v4, %s119_s24  ;;  %37 = vrot.lane.b32.xlu1 %v94_v5, %s120_s25 }
   0xe   :  { %43 = vrot.lane.b32.xlu0 %v95_v7, %s121_s30  ;;  %49 = vrot.lane.b32.xlu1 %v96_v8, %s122_s2 }
  0x12   :  { %55 = vrot.lane.b32.xlu0 %v97_v9, %s123_s7  ;;  %61 = vrot.lane.b32.xlu1 %v98_v10, %s124_s8 }
  0x16   :  { %67 = vrot.lane.b32.xlu0 %v99_v11, %s125_s13  ;;  %73 = vrot.lane.b32.xlu1 %v100_v12, %s126_s14 }
  0x1a   :  { %79 = vrot.lane.b32.xlu0 %v101_v13, %s127_s0 }
  0x74   :  { %v8_v14 = vpop.permute.xlu0 %7   ;;  %v20_v15 = vpop.permute.xlu1 %19  }
  0x75   :  { %10 = vst.msk [vmem:[#allocation0] sm:$0x1] %vm9_vm1, %v8_v14  }
  0x78   :  { %v14_v16 = vpop.permute.xlu0 %13   ;;  %v26_v17 = vpop.permute.xlu1 %25  }
  0x79   :  { %16 = vst.msk [vmem:[#allocation0] sm:$0x1] %vm15_vm2, %v14_v16  }
  0x7a   :  { %22 = vst.msk [vmem:[#allocation0] sm:$0x1] %vm21_vm3, %v20_v15  }
  0x7b   :  { %28 = vst.msk [vmem:[#allocation0] sm:$0x1] %vm27_vm4, %v26_v17  }
  0x7c   :  { %v32_v18 = vpop.permute.xlu0 %31   ;;  %v38_v19 = vpop.permute.xlu1 %37  }
  0x7d   :  { %34 = vst.msk [vmem:[#allocation0] sm:$0x1] %vm33_vm5, %v32_v18  }
  0x7e   :  { %40 = vst.msk [vmem:[#allocation0] sm:$0x1] %vm39_vm6, %v38_v19  }
  0x80   :  { %v44_v20 = vpop.permute.xlu0 %43   ;;  %v50_v21 = vpop.permute.xlu1 %49  }
  0x81   :  { %46 = vst.msk [vmem:[#allocation0] sm:$0x1] %vm45_vm7, %v44_v20  }
  0x82   :  { %52 = vst.msk [vmem:[#allocation0] sm:$0x1] %vm51_vm8, %v50_v21  }
  0x84   :  { %v56_v22 = vpop.permute.xlu0 %55   ;;  %v62_v23 = vpop.permute.xlu1 %61  }
  0x85   :  { %58 = vst.msk [vmem:[#allocation0] sm:$0x1] %vm57_vm9, %v56_v22  }
  0x86   :  { %64 = vst.msk [vmem:[#allocation0] sm:$0x1] %vm63_vm10, %v62_v23  }
  0x88   :  { %v68_v24 = vpop.permute.xlu0 %67   ;;  %v74_v25 = vpop.permute.xlu1 %73  }
  0x89   :  { %70 = vst.msk [vmem:[#allocation0] sm:$0x1] %vm69_vm11, %v68_v24  }
  0x8a   :  { %76 = vst.msk [vmem:[#allocation0] sm:$0x1] %vm75_vm12, %v74_v25  }
  0x8c   :  { %v80_v26 = vpop.permute.xlu0 %79  }
  0x8d   :  { %82 = vst.msk [vmem:[#allocation0] sm:$0x1] %vm81_vm13, %v80_v26  }
  0x94   :  { %v86_v27 = vld [vmem:[#allocation0] sm:$0x1] }
  0x95   :  { %88 = vst [vmem:[%s184_s1] sm:$0x1] %v86_v27 }

// kernel: tile.38
= control target key start
LH: loop header
LB: loop body
LE: loop exit
PB: predicated region body
PF: predicated region fallthrough
CT: control target
= control target key end

     0   :  { %s28_s0 = inlined_call_operand.vmem [shape: f32[16], index: 0, kind: input, shape index: {}]   ;;  %s29_s1 = inlined_call_operand.vmem [shape: f32[12,16], index: 1, kind: output, shape index: {}]  }
   0x1   :  { %v4_v0 = vld [vmem:[%s28_s0] ss:$0 sm:$0xff] }
   0x2   :  { %5 = vst [vmem:[%s29_s1] sm:$0xff] %v4_v0  ;;  %8 = vst [vmem:[%s29_s1 + $0x8] sm:$0xff] %v4_v0 }

// kernel: tile.39
= control target key start
LH: loop header
LB: loop body
LE: loop exit
PB: predicated region body
PF: predicated region fallthrough
CT: control target
= control target key end

     0   :  { %s77_s10 = smov 112   ;;  %s78_s11 = smov 80   ;;  %vm4_vm0 = vcmask 130048   ;;  %vm10_vm1 = vcmask 1048448   ;;  %vm16_vm2 = vcmask 917248   ;;  %vm22_vm3 = vcmask 786048   ;;  %s124_s0 = inlined_call_operand.vmem [shape: f32[12,16], index: 0, kind: input, shape index: {}]   ;;  %s125_s1 = inlined_call_operand.vmem [shape: f32[1,192], index: 1, kind: output, shape index: {}]  }
   0x1   :  { %v62_v0 = vld [vmem:[%s124_s0 + $0x7] sm:$0x1]   ;;  %v64_v1 = vld [vmem:[%s124_s0 + $0x5] sm:$0x1]   ;;  %v63_v2 = vld [vmem:[%s124_s0 + $0x6] sm:$0x1]  }
   0x2   :  { %8 = vrot.lane.b32.xlu0 %v62_v0, %s77_s10  ;;  %20 = vrot.lane.b32.xlu1 %v64_v1, %s78_s11  ;;  %v65_v3 = vld [vmem:[%s124_s0 + $0x4] sm:$0x1]   ;;  %s31_s16 = smov 3  ;;  %s38_s17 = smov 3  ;;  %vm28_vm4 = vcmask 654848   ;;  %vm35_vm5 = vcmask 523648  }
   0x3   :  { %s79_s18 = smov 96   ;;  %s80_s19 = smov 64   ;;  %v66_v4 = vld [vmem:[%s124_s0 + $0x3] ss:$8 sm:%s31_s16]   ;;  %v67_v5 = vld [vmem:[%s124_s0 + $0x2] ss:$8 sm:%s38_s17]  }
   0x4   :  { %s2_s22 = smov 3  ;;  %s45_s27 = smov 3  ;;  %vm42_vm6 = vcmask 392448   ;;  %vm49_vm7 = vcmask 261248  }
   0x5   :  { %v3_v6 = vld [vmem:[%s124_s0] ss:$8 sm:%s2_s22]   ;;  %s81_s28 = smov 48   ;;  %s82_s29 = smov 32   ;;  %v68_v7 = vld [vmem:[%s124_s0 + $0x1] ss:$8 sm:%s45_s27]  }
   0x6   :  { %14 = vrot.lane.b32.xlu0 %v63_v2, %s79_s18  ;;  %26 = vrot.lane.b32.xlu1 %v65_v3, %s80_s19  ;;  %5 = vst.msk [vmem:[#allocation0] ss:$8 sm:$0x3] %vm4_vm0, %v3_v6   ;;  %s83_s0 = smov 16  }
   0xa   :  { %33 = vrot.lane.b32.xlu0 %v66_v4, %s81_s28  ;;  %40 = vrot.lane.b32.xlu1 %v67_v5, %s82_s29 }
   0xe   :  { %47 = vrot.lane.b32.xlu0 %v68_v7, %s83_s0 }
  0x74   :  { %v9_v8 = vpop.permute.xlu0 %8   ;;  %v21_v9 = vpop.permute.xlu1 %20  }
  0x75   :  { %11 = vst.msk [vmem:[#allocation0] sm:$0x1] %vm10_vm1, %v9_v8  }
  0x78   :  { %v15_v10 = vpop.permute.xlu0 %14   ;;  %v27_v11 = vpop.permute.xlu1 %26  }
  0x79   :  { %17 = vst.msk [vmem:[#allocation0] sm:$0x1] %vm16_vm2, %v15_v10  }
  0x7a   :  { %23 = vst.msk [vmem:[#allocation0] sm:$0x1] %vm22_vm3, %v21_v9  }
  0x7b   :  { %29 = vst.msk [vmem:[#allocation0] sm:$0x1] %vm28_vm4, %v27_v11  }
  0x7c   :  { %v34_v12 = vpop.permute.xlu0 %33   ;;  %v41_v13 = vpop.permute.xlu1 %40  }
  0x7d   :  { %36 = vst.msk [vmem:[#allocation0] ss:$8 sm:$0x3] %vm35_vm5, %v34_v12  }
  0x7e   :  { %43 = vst.msk [vmem:[#allocation0] ss:$8 sm:$0x3] %vm42_vm6, %v41_v13  }
  0x80   :  { %v48_v14 = vpop.permute.xlu0 %47  }
  0x81   :  { %50 = vst.msk [vmem:[#allocation0] ss:$8 sm:$0x3] %vm49_vm7, %v48_v14  }
  0x88   :  { %v54_v15 = vld [vmem:[#allocation0] sm:$0x1]  ;;  %v58_v16 = vld [vmem:[#allocation0 + $0x8] sm:$0x1] }
  0x89   :  { %56 = vst [vmem:[%s125_s1] sm:$0x1] %v54_v15  ;;  %69 = vst [vmem:[%s125_s1 + $0x1] sm:$0x1] %v58_v16 }

// kernel: tile.53
= control target key start
LH: loop header
LB: loop body
LE: loop exit
PB: predicated region body
PF: predicated region fallthrough
CT: control target
= control target key end

     0   :  { %s22_s0 = inlined_call_operand.vmem [shape: f32[16], index: 0, kind: input, shape index: {}]   ;;  %s23_s1 = inlined_call_operand.vmem [shape: f32[6,16], index: 1, kind: output, shape index: {}]  }
   0x1   :  { %v4_v0 = vld [vmem:[%s22_s0] ss:$0 sm:$0xff] }
   0x2   :  { %5 = vst [vmem:[%s23_s1] sm:$0xff] %v4_v0 }

// kernel: tile.54
= control target key start
LH: loop header
LB: loop body
LE: loop exit
PB: predicated region body
PF: predicated region fallthrough
CT: control target
= control target key end

     0   :  { %s51_s10 = smov 80   ;;  %s52_s11 = smov 48   ;;  %vm3_vm0 = vcmask 130048   ;;  %vm9_vm1 = vcmask 786048   ;;  %vm15_vm2 = vcmask 654848   ;;  %vm21_vm3 = vcmask 523648   ;;  %s87_s0 = inlined_call_operand.vmem [shape: f32[6,16], index: 0, kind: input, shape index: {}]   ;;  %s88_s1 = inlined_call_operand.vmem [shape: f32[1,96], index: 1, kind: output, shape index: {}]  }
   0x1   :  { %v41_v0 = vld [vmem:[%s87_s0 + $0x5] sm:$0x1]   ;;  %v43_v1 = vld [vmem:[%s87_s0 + $0x3] sm:$0x1]   ;;  %v42_v2 = vld [vmem:[%s87_s0 + $0x4] sm:$0x1]  }
   0x2   :  { %7 = vrot.lane.b32.xlu0 %v41_v0, %s51_s10  ;;  %19 = vrot.lane.b32.xlu1 %v43_v1, %s52_s11  ;;  %v44_v3 = vld [vmem:[%s87_s0 + $0x2] sm:$0x1]   ;;  %v2_v4 = vld [vmem:[%s87_s0] sm:$0x1]   ;;  %s53_s18 = smov 64   ;;  %s54_s19 = smov 32  }
   0x3   :  { %4 = vst.msk [vmem:[#allocation0] sm:$0x1] %vm3_vm0, %v2_v4   ;;  %v45_v5 = vld [vmem:[%s87_s0 + $0x1] sm:$0x1]   ;;  %s55_s0 = smov 16   ;;  %vm27_vm4 = vcmask 392448  }
   0x4   :  { %vm33_vm5 = vcmask 261248  }
   0x6   :  { %13 = vrot.lane.b32.xlu0 %v42_v2, %s53_s18  ;;  %25 = vrot.lane.b32.xlu1 %v44_v3, %s54_s19 }
   0xa   :  { %31 = vrot.lane.b32.xlu0 %v45_v5, %s55_s0 }
  0x74   :  { %v8_v6 = vpop.permute.xlu0 %7   ;;  %v20_v7 = vpop.permute.xlu1 %19  }
  0x75   :  { %10 = vst.msk [vmem:[#allocation0] sm:$0x1] %vm9_vm1, %v8_v6  }
  0x78   :  { %v14_v8 = vpop.permute.xlu0 %13   ;;  %v26_v9 = vpop.permute.xlu1 %25  }
  0x79   :  { %16 = vst.msk [vmem:[#allocation0] sm:$0x1] %vm15_vm2, %v14_v8  }
  0x7a   :  { %22 = vst.msk [vmem:[#allocation0] sm:$0x1] %vm21_vm3, %v20_v7  }
  0x7b   :  { %28 = vst.msk [vmem:[#allocation0] sm:$0x1] %vm27_vm4, %v26_v9  }
  0x7c   :  { %v32_v10 = vpop.permute.xlu0 %31  }
  0x7d   :  { %34 = vst.msk [vmem:[#allocation0] sm:$0x1] %vm33_vm5, %v32_v10  }
  0x84   :  { %v38_v11 = vld [vmem:[#allocation0] sm:$0x1] }
  0x85   :  { %40 = vst [vmem:[%s88_s1] sm:$0x1] %v38_v11 }

// kernel: simple_net_forward.1
= control target key start
LH: loop header
LB: loop body
LE: loop exit
PB: predicated region body
PF: predicated region fallthrough
CT: control target
= control target key end

     0   :  { %v5484_v1 = vmov 0   ;;  %vm294_vm0 = vcmask 1044480   ;;  %vm248_vm1 = vcmask 736256   ;;  %vm1724_vm2 = vcmask 891904   ;;  %s7127_s1 = inlined_call_operand.vmem [shape: bf16[3,90,168], index: 1, kind: input, shape index: {}]   ;;  %s7128_s0 = inlined_call_operand.vmem [shape: f32[240,90], index: 0, kind: input, shape index: {}]   ;;  %s7129_s2 = inlined_call_operand.vmem [shape: f32[1,168], index: 2, kind: input, shape index: {}]   ;;  %s7130_s3 = inlined_call_operand.vmem [shape: bf16[112,237], index: 3, kind: input, shape index: {}]   ;;  %s7131_s4 = inlined_call_operand.vmem [shape: bf16[168,84], index: 4, kind: input, shape index: {}]   ;;  %s7132_s5 = inlined_call_operand.vmem [shape: bf16[168,84], index: 5, kind: input, shape index: {}]   ;;  %s7133_s8 = inlined_call_operand.vmem [shape: bf16[3,84,192], index: 8, kind: input, shape index: {}]   ;;  %s7134_s6 = inlined_call_operand.vmem [shape: f32[1,84], index: 6, kind: input, shape index: {}]   ;;  %s7135_s7 = inlined_call_operand.vmem [shape: f32[1,84], index: 7, kind: input, shape index: {}]   ;;  %s7136_s10 = inlined_call_operand.vmem [shape: bf16[48,109], index: 10, kind: input, shape index: {}]   ;;  %s7137_s11 = inlined_call_operand.vmem [shape: bf16[192,96], index: 11, kind: input, shape index: {}]   ;;  %s7138_s12 = inlined_call_operand.vmem [shape: bf16[192,96], index: 12, kind: input, shape index: {}]   ;;  %s7139_s9 = inlined_call_operand.vmem [shape: f32[1,192], index: 9, kind: input, shape index: {}]   ;;  %s7140_s15 = inlined_call_operand.vmem [shape: bf16[6,96,120], index: 15, kind: input, shape index: {}]   ;;  %s7141_s19 = inlined_call_operand.vmem [shape: bf16[120,84], index: 19, kind: input, shape index: {}]   ;;  %s7142_s13 = inlined_call_operand.vmem [shape: f32[1,96], index: 13, kind: input, shape index: {}]   ;;  %s7143_s14 = inlined_call_operand.vmem [shape: f32[1,96], index: 14, kind: input, shape index: {}]   ;;  %s7144_s21 = inlined_call_operand.vmem [shape: bf16[84,128], index: 21, kind: input, shape index: {}]   ;;  %s7145_s16 = inlined_call_operand.vmem [shape: f32[1,120], index: 16, kind: input, shape index: {}]   ;;  %s7146_s17 = inlined_call_operand.vmem [shape: f32[1,120], index: 17, kind: input, shape index: {}]   ;;  %s7147_s18 = inlined_call_operand.vmem [shape: f32[1,120], index: 18, kind: input, shape index: {}]   ;;  %s7148_s20 = inlined_call_operand.vmem [shape: f32[1,84], index: 20, kind: input, shape index: {}]   ;;  %s7149_s22 = inlined_call_operand.vmem [shape: f32[1,128], index: 22, kind: input, shape index: {}]   ;;  %s7150_s23 = inlined_call_operand.vmem [shape: f32[8,128], index: 23, kind: output, shape index: {}]  }
   0x1   :  { %7157 = sst [smem:[#allocation2_spill]] %s7127_s1  ;;  %333 = vmatprep.mubr.bf16.mxu0 %v5484_v1  ;;  %vm1378_vm3 = vcmask 1046528   ;;  %vm1746_vm4 = vcmask 1045504   ;;  %vm1978_vm5 = vcmask 1043456   ;;  %vm1956_vm6 = vcmask 326656  }
   0x2   :  { %7158 = sst [smem:[#allocation3_spill]] %s7128_s0  ;;  %s7165_s24 = sld [smem:[#allocation2_spill]]  ;;  %vm2466_vm7 = vcmask 1041408   ;;  %vm2333_vm8 = vsmask.f32 7424  ;;  %vm2444_vm9 = vcmask 687104  }
   0x3   :  { %7159 = sst [smem:[#allocation4_spill]] %s7129_s2  ;;  %vm3421_vm10 = vcmask 523264   ;;  %vm5487_vm11 = vmmov 0   ;;  %vm3736_vm12 = vcmask 785408   ;;  %vm4328_vm13 = vcmask 982016  }
   0x4   :  { %7160 = sst [smem:[#allocation5_spill]] %s7130_s3  ;;  %s7166_s3 = sld [smem:[#allocation3_spill]] }
   0x5   :  { %7161 = sst [smem:[#allocation6_spill]] %s7131_s4  ;;  %s7167_s29 = sld [smem:[#allocation4_spill]] }
   0x6   :  { %7162 = sst [smem:[#allocation7_spill]] %s7132_s5  ;;  %s7168_s4 = sld [smem:[#allocation5_spill]] }
   0x7   :  { %7163 = sst [smem:[#allocation8_spill]] %s7133_s8  ;;  %s7169_s2 = sld [smem:[#allocation6_spill]] }
   0x8   :  { %7164 = sst [smem:[#allocation9_spill]] %s7134_s6  ;;  %v5259_v0 = vld [vmem:[%s7165_s24 + $0x64] ss:$8 sps:$4 sm:$0xff]   ;;  %v5261_v2 = vld [vmem:[%s7165_s24 + $0x60] ss:$8 sps:$4 sm:$0xff]   ;;  %s7171_s0 = sld [smem:[#allocation8_spill]] }
   0x9   :  { %301 = vmatprep.subr.bf16.mxu0 %v5259_v0  ;;  %v5262_v3 = vld [vmem:[%s7165_s24 + $0x74] ss:$8 sps:$4 sm:$0xff]   ;;  %v5264_v4 = vld [vmem:[%s7165_s24 + $0x70] ss:$8 sps:$4 sm:$0xff]   ;;  %v5265_v5 = vld [vmem:[%s7165_s24 + $0x84] ss:$8 sps:$4 sm:$0xff]  }
   0xa   :  { %302 = vmatpush1.bf16.msra.mxu0 %v5261_v2  ;;  %v5267_v6 = vld [vmem:[%s7165_s24 + $0x80] ss:$8 sps:$4 sm:$0xff]   ;;  %v5268_v7 = vld [vmem:[%s7165_s24 + $0x94] ss:$8 sps:$4 sm:$0xff]   ;;  %v5270_v8 = vld [vmem:[%s7165_s24 + $0x90] ss:$8 sps:$4 sm:$0xff]  }
   0xb   :  { %303 = vmatprep.subr.bf16.mxu0 %v5262_v3  ;;  %v5271_v9 = vld [vmem:[%s7165_s24 + $0xa4] ss:$8 sps:$4 sm:$0xff]   ;;  %v5273_v10 = vld [vmem:[%s7165_s24 + $0xa0] ss:$8 sps:$4 sm:$0xff]   ;;  %v5282_v19 = vld [vmem:[%s7165_s24 + $0x14] ss:$8 sps:$4 sm:$0xff]  }
   0xc   :  { %v5274_v11 = vld [vmem:[%s7165_s24 + $0xb4] ss:$8 sps:$4 sm:$0x1f]   ;;  %v5276_v12 = vld [vmem:[%s7165_s24 + $0xb0] ss:$8 sps:$4 sm:$0x1f]  }
   0xd   :  { %v132_v13 = vld [vmem:[%s7166_s3 + $0x1] sm:$0xff]  ;;  %v133_v14 = vld [vmem:[%s7166_s3 + $0x9] sm:$0xff]  ;;  %v296_v15 = vsel %vm294_vm0, %v5276_v12, 0  ;;  %v134_v20 = vld [vmem:[%s7166_s3 + $0x11] sm:$0xff]  ;;  %s7172_s25 = sld [smem:[#allocation9_spill]] }
   0xe   :  { %304 = vmatpush1.bf16.msra.mxu0 %v5264_v4  ;;  %v5279_v16 = vld [vmem:[%s7165_s24 + $0x4] ss:$8 sps:$4 sm:$0xff]   ;;  %v175_v17 = vpack.c.bf16 %v133_v14, %v132_v13  ;;  %v5277_v18 = vld [vmem:[%s7165_s24] ss:$8 sps:$4 sm:$0xff]   ;;  %v5280_v22 = vld [vmem:[%s7165_s24 + $0x10] ss:$8 sps:$4 sm:$0xff]  }
   0xf   :  { %305 = vmatprep.subr.bf16.mxu0 %v5265_v5  ;;  %v135_v21 = vld [vmem:[%s7166_s3 + $0x19] sm:$0xff]  ;;  %v5285_v23 = vld [vmem:[%s7165_s24 + $0x24] ss:$8 sps:$4 sm:$0xff]   ;;  %v5294_v34 = vld [vmem:[%s7165_s24 + $0x50] ss:$8 sps:$4 sm:$0x1f]  }
  0x10   :  { %v5283_v24 = vld [vmem:[%s7165_s24 + $0x20] ss:$8 sps:$4 sm:$0xff]   ;;  %v176_v25 = vpack.c.bf16 %v135_v21, %v134_v20  ;;  %v5288_v26 = vld [vmem:[%s7165_s24 + $0x34] ss:$8 sps:$4 sm:$0xff]   ;;  %v5286_v29 = vld [vmem:[%s7165_s24 + $0x30] ss:$8 sps:$4 sm:$0xff]  }
  0x11   :  { %v136_v27 = vld [vmem:[%s7166_s3 + $0x21] sm:$0xff]  ;;  %v137_v28 = vld [vmem:[%s7166_s3 + $0x29] sm:$0xff]  ;;  %v5292_v33 = vld [vmem:[%s7165_s24 + $0x54] ss:$8 sps:$4 sm:$0x1f]   ;;  %v588_v37 = vsel %vm294_vm0, %v5294_v34, 0 }
  0x12   :  { %306 = vmatpush1.bf16.msra.mxu0 %v5267_v6  ;;  %v5291_v30 = vld [vmem:[%s7165_s24 + $0x44] ss:$8 sps:$4 sm:$0xff]   ;;  %v177_v31 = vpack.c.bf16 %v137_v28, %v136_v27  ;;  %v5289_v32 = vld [vmem:[%s7165_s24 + $0x40] ss:$8 sps:$4 sm:$0xff]   ;;  %v138_v35 = vld [vmem:[%s7166_s3 + $0x31] sm:$0xff] }
  0x13   :  { %307 = vmatprep.subr.bf16.mxu0 %v5268_v7  ;;  %v139_v36 = vld [vmem:[%s7166_s3 + $0x39] sm:$0xff]  ;;  %v140_v39 = vld [vmem:[%s7166_s3 + $0x41] sm:$0xff]  ;;  %v141_v40 = vld [vmem:[%s7166_s3 + $0x49] sm:$0xff] }
  0x14   :  { %v178_v38 = vpack.c.bf16 %v139_v36, %v138_v35  ;;  %v179_v41 = vpack.c.bf16 %v141_v40, %v140_v39  ;;  %v142_v42 = vld [vmem:[%s7166_s3 + $0x51] sm:$0xff]  ;;  %v143_v43 = vld [vmem:[%s7166_s3 + $0x59] sm:$0xff]  ;;  %v144_v45 = vld [vmem:[%s7166_s3 + $0x61] sm:$0xff] }
  0x15   :  { %v180_v44 = vpack.c.bf16 %v143_v43, %v142_v42  ;;  %v145_v46 = vld [vmem:[%s7166_s3 + $0x69] sm:$0xff]  ;;  %v146_v48 = vld [vmem:[%s7166_s3 + $0x71] sm:$0xff]  ;;  %v147_v49 = vld [vmem:[%s7166_s3 + $0x79] sm:$0xff] }
  0x16   :  { %308 = vmatpush1.bf16.msra.mxu0 %v5270_v8  ;;  %v181_v47 = vpack.c.bf16 %v145_v46, %v144_v45  ;;  %v182_v50 = vpack.c.bf16 %v147_v49, %v146_v48  ;;  %v148_v51 = vld [vmem:[%s7166_s3 + $0x81] sm:$0xff]  ;;  %v149_v52 = vld [vmem:[%s7166_s3 + $0x89] sm:$0xff]  ;;  %v150_v55 = vld [vmem:[%s7166_s3 + $0x91] sm:$0xff] }
  0x17   :  { %309 = vmatprep.subr.bf16.mxu0 %v5271_v9  ;;  %v183_v53 = vpack.c.bf16 %v149_v52, %v148_v51  ;;  %v5297_v54 = vld [vmem:[%s7165_s24 + $0xc4] ss:$8 sps:$4 sm:$0xff]   ;;  %v151_v56 = vld [vmem:[%s7166_s3 + $0x99] sm:$0xff]  ;;  %v154_v61 = vld [vmem:[%s7166_s3 + $0xb1] sm:$0xff] }
  0x18   :  { %v184_v57 = vpack.c.bf16 %v151_v56, %v150_v55  ;;  %v152_v58 = vld [vmem:[%s7166_s3 + $0xa1] sm:$0xff]  ;;  %v153_v59 = vld [vmem:[%s7166_s3 + $0xa9] sm:$0xff]  ;;  %v155_v62 = vld [vmem:[%s7166_s3 + $0xb9] sm:$0xff] }
  0x19   :  { %v185_v60 = vpack.c.bf16 %v153_v59, %v152_v58  ;;  %v186_v63 = vpack.c.bf16 %v155_v62, %v154_v61  ;;  %v156_v0 = vld [vmem:[%s7166_s3 + $0xc1] sm:$0xff]  ;;  %v157_v2 = vld [vmem:[%s7166_s3 + $0xc9] sm:$0xff]  ;;  %v158_v4 = vld [vmem:[%s7166_s3 + $0xd1] sm:$0xff] }
  0x1a   :  { %310 = vmatpush1.bf16.msra.mxu0 %v5273_v10  ;;  %v187_v3 = vpack.c.bf16 %v157_v2, %v156_v0  ;;  %v159_v5 = vld [vmem:[%s7166_s3 + $0xd9] sm:$0xff]  ;;  %v160_v7 = vld [vmem:[%s7166_s3 + $0xe1] sm:$0xff]  ;;  %v161_v8 = vld [vmem:[%s7166_s3 + $0xe9] sm:$0x3f] }
  0x1b   :  { %4503 = vmatprep.subr.msk.bf16.mxu0 %vm294_vm0, %v5274_v11  ;;  %v188_v6 = vpack.c.bf16 %v159_v5, %v158_v4  ;;  %v189_v9 = vpack.c.bf16 %v161_v8, %v160_v7  ;;  %v75_v10 = vld [vmem:[%s7166_s3] sm:$0xff]  ;;  %v76_v11 = vld [vmem:[%s7166_s3 + $0x8] sm:$0xff]  ;;  %v5300_v14 = vld [vmem:[%s7165_s24 + $0xd4] ss:$8 sps:$4 sm:$0xff]  }
  0x1c   :  { %v117_v12 = vpack.c.bf16 %v76_v11, %v75_v10  ;;  %v5295_v13 = vld [vmem:[%s7165_s24 + $0xc0] ss:$8 sps:$4 sm:$0xff]   ;;  %v5306_v21 = vld [vmem:[%s7165_s24 + $0xf4] ss:$8 sps:$4 sm:$0xff]  }
  0x1d   :  { %v5301_v20 = vld [vmem:[%s7165_s24 + $0xe0] ss:$8 sps:$4 sm:$0xff]   ;;  %v5310_v28 = vld [vmem:[%s7165_s24 + $0x114] ss:$8 sps:$4 sm:$0x1f]  }
  0x1e   :  { %312 = vmatpush1.bf16.msra.mxu0 %v296_v15  ;;  %v77_v15 = vld [vmem:[%s7166_s3 + $0x10] sm:$0xff]  ;;  %v5307_v27 = vld [vmem:[%s7165_s24 + $0x100] ss:$8 sps:$4 sm:$0xff]   ;;  %v98_v56 = vld [vmem:[%s7166_s3 + $0xb8] sm:$0xff] }
  0x1f   :  { %593 = vmatprep.subr.bf16.mxu0 %v5279_v16  ;;  %v78_v16 = vld [vmem:[%s7166_s3 + $0x18] sm:$0xff]  ;;  %v83_v34 = vld [vmem:[%s7166_s3 + $0x40] sm:$0xff]  ;;  %v84_v35 = vld [vmem:[%s7166_s3 + $0x48] sm:$0xff] }
  0x20   :  { %v121_v36 = vpack.c.bf16 %v84_v35, %v83_v34  ;;  %v87_v40 = vld [vmem:[%s7166_s3 + $0x60] sm:$0xff]  ;;  %v89_v43 = vld [vmem:[%s7166_s3 + $0x70] sm:$0xff]  ;;  %v100_v59 = vld [vmem:[%s7166_s3 + $0xc8] sm:$0xff] }
  0x21   :  { %4504 = vmatmul.mubr.msk.bf16.vlgmr.msra.gmra.mrb[0].mxu0 %vm248_vm1, %v175_v17  ;;  %v5298_v17 = vld [vmem:[%s7165_s24 + $0xd0] ss:$8 sps:$4 sm:$0xff]   ;;  %v91_v46 = vld [vmem:[%s7166_s3 + $0x80] sm:$0xff]  ;;  %v104_v2 = vld [vmem:[%s7166_s3 + $0xe8] sm:$0x3f] }
  0x22   :  { %343 = vmatprep.mubr.bf16.mxu0 %v5484_v1  ;;  %594 = vmatpush1.bf16.msra.mxu0 %v5277_v18  ;;  %v5303_v18 = vld [vmem:[%s7165_s24 + $0xe4] ss:$8 sps:$4 sm:$0xff]   ;;  %v93_v49 = vld [vmem:[%s7166_s3 + $0x90] sm:$0xff]  ;;  %v102_v62 = vld [vmem:[%s7166_s3 + $0xd8] sm:$0xff] }
  0x23   :  { %595 = vmatprep.subr.bf16.mxu0 %v5282_v19  ;;  %v118_v19 = vpack.c.bf16 %v78_v16, %v77_v15  ;;  %v95_v52 = vld [vmem:[%s7166_s3 + $0xa0] sm:$0xff]  ;;  %v97_v55 = vld [vmem:[%s7166_s3 + $0xb0] sm:$0xff] }
  0x24   :  { %v99_v58 = vld [vmem:[%s7166_s3 + $0xc0] sm:$0xff]  ;;  %v101_v61 = vld [vmem:[%s7166_s3 + $0xd0] sm:$0xff] }
  0x25   :  { %v103_v0 = vld [vmem:[%s7166_s3 + $0xe0] sm:$0xff]  ;;  %v777_v5 = vld [vmem:[%s7166_s3 + $0xa] sm:$0xff]  ;;  %v778_v7 = vld [vmem:[%s7166_s3 + $0x12] sm:$0xff] }
  0x26   :  { %596 = vmatpush1.bf16.msra.mxu0 %v5280_v22  ;;  %v79_v22 = vld [vmem:[%s7166_s3 + $0x20] sm:$0xff]  ;;  %v781_v11 = vld [vmem:[%s7166_s3 + $0x2a] sm:$0xff] }
  0x27   :  { %597 = vmatprep.subr.bf16.mxu0 %v5285_v23  ;;  %v80_v23 = vld [vmem:[%s7166_s3 + $0x28] sm:$0xff]  ;;  %v779_v8 = vld [vmem:[%s7166_s3 + $0x1a] sm:$0xff] }
  0x28   :  { %v776_v4 = vld [vmem:[%s7166_s3 + $0x2] sm:$0xff]  ;;  %v797_v35 = vld [vmem:[%s7166_s3 + $0xaa] sm:$0xff] }
  0x29   :  { %4505 = vmatmul.mubr.msk.bf16.gmra.mrb[4].mxu0 %vm248_vm1, %v176_v25  ;;  %v5309_v25 = vld [vmem:[%s7165_s24 + $0x104] ss:$8 sps:$4 sm:$0xff]  }
  0x2a   :  { %353 = vmatprep.mubr.bf16.mxu0 %v5484_v1  ;;  %598 = vmatpush1.bf16.msra.mxu0 %v5283_v24  ;;  %v5304_v24 = vld [vmem:[%s7165_s24 + $0xf0] ss:$8 sps:$4 sm:$0xff]   ;;  %v780_v10 = vld [vmem:[%s7166_s3 + $0x22] sm:$0xff] }
  0x2b   :  { %599 = vmatprep.subr.bf16.mxu0 %v5288_v26  ;;  %v119_v26 = vpack.c.bf16 %v80_v23, %v79_v22  ;;  %v784_v16 = vld [vmem:[%s7166_s3 + $0x42] sm:$0xff]  ;;  %v789_v23 = vld [vmem:[%s7166_s3 + $0x6a] sm:$0xff] }
  0x2c   :  { %v788_v22 = vld [vmem:[%s7166_s3 + $0x62] sm:$0xff] }
  0x2d   :  { %v796_v34 = vld [vmem:[%s7166_s3 + $0xa2] sm:$0xff] }
  0x2e   :  { %600 = vmatpush1.bf16.msra.mxu0 %v5286_v29  ;;  %v5312_v29 = vld [vmem:[%s7165_s24 + $0x110] ss:$8 sps:$4 sm:$0x1f]  }
  0x2f   :  { %601 = vmatprep.subr.bf16.mxu0 %v5291_v30  ;;  %v81_v30 = vld [vmem:[%s7166_s3 + $0x30] sm:$0xff] }
  0x31   :  { %4506 = vmatmul.mubr.msk.bf16.gmra.mrb[8].mxu0 %vm248_vm1, %v177_v31  ;;  %v82_v31 = vld [vmem:[%s7166_s3 + $0x38] sm:$0xff] }
  0x32   :  { %363 = vmatprep.mubr.bf16.mxu0 %v5484_v1  ;;  %602 = vmatpush1.bf16.msra.mxu0 %v5289_v32  ;;  %v938_v32 = vsel %vm294_vm0, %v5312_v29, 0  ;;  %v793_v29 = vld [vmem:[%s7166_s3 + $0x8a] sm:$0xff] }
  0x33   :  { %4531 = vmatprep.subr.msk.bf16.mxu0 %vm294_vm0, %v5292_v33  ;;  %v120_v33 = vpack.c.bf16 %v82_v31, %v81_v30  ;;  %v794_v31 = vld [vmem:[%s7166_s3 + $0x92] sm:$0xff] }
  0x36   :  { %604 = vmatpush1.bf16.msra.mxu0 %v588_v37  ;;  %v85_v37 = vld [vmem:[%s7166_s3 + $0x50] sm:$0xff] }
  0x37   :  { %943 = vmatprep.subr.bf16.mxu0 %v5297_v54 }
  0x39   :  { %4507 = vmatmul.mubr.msk.bf16.gmra.mrb[12].mxu0 %vm248_vm1, %v178_v38  ;;  %v86_v38 = vld [vmem:[%s7166_s3 + $0x58] sm:$0xff] }
  0x3a   :  { %373 = vmatprep.mubr.bf16.mxu0 %v5484_v1  ;;  %v122_v39 = vpack.c.bf16 %v86_v38, %v85_v37  ;;  %v798_v37 = vld [vmem:[%s7166_s3 + $0xb2] sm:$0xff]  ;;  %v799_v38 = vld [vmem:[%s7166_s3 + $0xba] sm:$0xff] }
  0x41   :  { %4508 = vmatmul.mubr.msk.bf16.gmra.mrb[16].mxu0 %vm248_vm1, %v179_v41  ;;  %v88_v41 = vld [vmem:[%s7166_s3 + $0x68] sm:$0xff] }
  0x42   :  { %383 = vmatprep.mubr.bf16.mxu0 %v5484_v1  ;;  %v123_v42 = vpack.c.bf16 %v88_v41, %v87_v40  ;;  %v800_v40 = vld [vmem:[%s7166_s3 + $0xc2] sm:$0xff]  ;;  %v801_v41 = vld [vmem:[%s7166_s3 + $0xca] sm:$0xff] }
  0x49   :  { %4509 = vmatmul.mubr.msk.bf16.gmra.mrb[20].mxu0 %vm248_vm1, %v180_v44  ;;  %v90_v44 = vld [vmem:[%s7166_s3 + $0x78] sm:$0xff] }
  0x4a   :  { %393 = vmatprep.mubr.bf16.mxu0 %v5484_v1  ;;  %v124_v45 = vpack.c.bf16 %v90_v44, %v89_v43  ;;  %v802_v43 = vld [vmem:[%s7166_s3 + $0xd2] sm:$0xff]  ;;  %v803_v44 = vld [vmem:[%s7166_s3 + $0xda] sm:$0xff] }
  0x51   :  { %4510 = vmatmul.mubr.msk.bf16.gmra.mrb[24].mxu0 %vm248_vm1, %v181_v47  ;;  %v92_v47 = vld [vmem:[%s7166_s3 + $0x88] sm:$0xff] }
  0x52   :  { %403 = vmatprep.mubr.bf16.mxu0 %v5484_v1  ;;  %v125_v48 = vpack.c.bf16 %v92_v47, %v91_v46  ;;  %v804_v46 = vld [vmem:[%s7166_s3 + $0xe2] sm:$0xff]  ;;  %v805_v47 = vld [vmem:[%s7166_s3 + $0xea] sm:$0x3f] }
  0x59   :  { %4511 = vmatmul.mubr.msk.bf16.gmra.mrb[28].mxu0 %vm248_vm1, %v182_v50  ;;  %v94_v50 = vld [vmem:[%s7166_s3 + $0x98] sm:$0xff] }
  0x5a   :  { %413 = vmatprep.mubr.bf16.mxu0 %v5484_v1  ;;  %v126_v51 = vpack.c.bf16 %v94_v50, %v93_v49  ;;  %v1188_v49 = vlaneseq }
  0x5c   :  { %v6083_v50 = vshrl.u32 %v1188_v49, 7 }
  0x61   :  { %4512 = vmatmul.mubr.msk.bf16.gmra.mrb[32].mxu0 %vm248_vm1, %v183_v53  ;;  %v96_v53 = vld [vmem:[%s7166_s3 + $0xa8] sm:$0xff] }
  0x62   :  { %423 = vmatprep.mubr.bf16.mxu0 %v5484_v1  ;;  %v127_v54 = vpack.c.bf16 %v96_v53, %v95_v52  ;;  %v1186_v52 = vld [vmem:[%s7167_s29] sm:$0x3]  ;;  %v1194_v53 = vsub.s32 1, %v6083_v50  ;;  %s7170_s29 = sld [smem:[#allocation7_spill]] }
  0x69   :  { %4513 = vmatmul.mubr.msk.bf16.gmra.mrb[36].mxu0 %vm248_vm1, %v184_v57  ;;  %v128_v57 = vpack.c.bf16 %v98_v56, %v97_v55  ;;  %v6096_v55 = vrot.slane %v1186_v52, %v1194_v53 }
  0x6a   :  { %433 = vmatprep.mubr.bf16.mxu0 %v5484_v1 }
  0x71   :  { %4514 = vmatmul.mubr.msk.bf16.gmra.mrb[40].mxu0 %vm248_vm1, %v185_v60  ;;  %v129_v60 = vpack.c.bf16 %v100_v59, %v99_v58 }
  0x72   :  { %443 = vmatprep.mubr.bf16.mxu0 %v5484_v1 }
  0x79   :  { %4515 = vmatmul.mubr.msk.bf16.gmra.mrb[44].mxu0 %vm248_vm1, %v186_v63  ;;  %v130_v63 = vpack.c.bf16 %v102_v62, %v101_v61 }
  0x7a   :  { %453 = vmatprep.mubr.bf16.mxu0 %v5484_v1 }
  0x81   :  { %4516 = vmatmul.mubr.msk.bf16.gmra.mrb[48].mxu0 %vm248_vm1, %v187_v3  ;;  %v131_v3 = vpack.c.bf16 %v104_v2, %v103_v0  ;;  %v5315_v0 = vld [vmem:[%s7168_s4 + $0x4] ss:$8 sps:$4 sm:$0xff]  }
  0x82   :  { %463 = vmatprep.mubr.bf16.mxu0 %v5484_v1  ;;  %4601 = vmatprep.mubr.msk.bf16.mxu1 %vm1724_vm2, %v5315_v0 }
  0x89   :  { %4517 = vmatmul.mubr.msk.bf16.gmra.mrb[52].mxu0 %vm248_vm1, %v188_v6  ;;  %v819_v6 = vpack.c.bf16 %v777_v5, %v776_v4 }
  0x8a   :  { %473 = vmatprep.mubr.bf16.mxu0 %v5484_v1 }
  0x91   :  { %4518 = vmatmul.mubr.msk.bf16.gmra.mrb[56].mxu0 %vm248_vm1, %v189_v9  ;;  %v820_v9 = vpack.c.bf16 %v779_v8, %v778_v7 }
  0x92   :  { %625 = vmatprep.mubr.bf16.mxu0 %v5484_v1 }
  0x99   :  { %4532 = vmatmul.mubr.msk.bf16.vlgmr.msra.gmra.mrb[0].mxu0 %vm248_vm1, %v117_v12  ;;  %v821_v12 = vpack.c.bf16 %v781_v11, %v780_v10 }
  0x9a   :  { %635 = vmatprep.mubr.bf16.mxu0 %v5484_v1  ;;  %944 = vmatpush1.bf16.msra.mxu0 %v5295_v13  ;;  %v782_v13 = vld [vmem:[%s7166_s3 + $0x32] sm:$0xff] }
  0x9b   :  { %945 = vmatprep.subr.bf16.mxu0 %v5300_v14  ;;  %v783_v14 = vld [vmem:[%s7166_s3 + $0x3a] sm:$0xff] }
  0x9c   :  { %v822_v15 = vpack.c.bf16 %v783_v14, %v782_v13 }
  0x9e   :  { %946 = vmatpush1.bf16.msra.mxu0 %v5298_v17  ;;  %v785_v17 = vld [vmem:[%s7166_s3 + $0x4a] sm:$0xff] }
  0x9f   :  { %947 = vmatprep.subr.bf16.mxu0 %v5303_v18  ;;  %v823_v18 = vpack.c.bf16 %v785_v17, %v784_v16 }
  0xa1   :  { %4533 = vmatmul.mubr.msk.bf16.gmra.mrb[4].mxu0 %vm248_vm1, %v118_v19  ;;  %v786_v19 = vld [vmem:[%s7166_s3 + $0x52] sm:$0xff] }
  0xa2   :  { %645 = vmatprep.mubr.bf16.mxu0 %v5484_v1  ;;  %948 = vmatpush1.bf16.msra.mxu0 %v5301_v20  ;;  %v787_v20 = vld [vmem:[%s7166_s3 + $0x5a] sm:$0xff] }
  0xa3   :  { %949 = vmatprep.subr.bf16.mxu0 %v5306_v21  ;;  %v824_v21 = vpack.c.bf16 %v787_v20, %v786_v19 }
  0xa6   :  { %950 = vmatpush1.bf16.msra.mxu0 %v5304_v24  ;;  %v825_v24 = vpack.c.bf16 %v789_v23, %v788_v22 }
  0xa7   :  { %951 = vmatprep.subr.bf16.mxu0 %v5309_v25  ;;  %v790_v25 = vld [vmem:[%s7166_s3 + $0x72] sm:$0xff] }
  0xa9   :  { %4534 = vmatmul.mubr.msk.bf16.gmra.mrb[8].mxu0 %vm248_vm1, %v119_v26  ;;  %v791_v26 = vld [vmem:[%s7166_s3 + $0x7a] sm:$0xff] }
  0xaa   :  { %655 = vmatprep.mubr.bf16.mxu0 %v5484_v1  ;;  %952 = vmatpush1.bf16.msra.mxu0 %v5307_v27  ;;  %v826_v27 = vpack.c.bf16 %v791_v26, %v790_v25 }
  0xab   :  { %4571 = vmatprep.subr.msk.bf16.mxu0 %vm294_vm0, %v5310_v28  ;;  %v792_v28 = vld [vmem:[%s7166_s3 + $0x82] sm:$0xff] }
  0xac   :  { %v827_v30 = vpack.c.bf16 %v793_v29, %v792_v28 }
  0xae   :  { %954 = vmatpush1.bf16.msra.mxu0 %v938_v32  ;;  %v795_v32 = vld [vmem:[%s7166_s3 + $0x9a] sm:$0xff] }
  0xb1   :  { %4535 = vmatmul.mubr.msk.bf16.gmra.mrb[12].mxu0 %vm248_vm1, %v120_v33  ;;  %v828_v33 = vpack.c.bf16 %v795_v32, %v794_v31 }
  0xb2   :  { %665 = vmatprep.mubr.bf16.mxu0 %v5484_v1 }
  0xb9   :  { %4536 = vmatmul.mubr.msk.bf16.gmra.mrb[16].mxu0 %vm248_vm1, %v121_v36  ;;  %v829_v36 = vpack.c.bf16 %v797_v35, %v796_v34 }
  0xba   :  { %675 = vmatprep.mubr.bf16.mxu0 %v5484_v1 }
  0xc1   :  { %4537 = vmatmul.mubr.msk.bf16.gmra.mrb[20].mxu0 %vm248_vm1, %v122_v39  ;;  %v830_v39 = vpack.c.bf16 %v799_v38, %v798_v37 }
  0xc2   :  { %685 = vmatprep.mubr.bf16.mxu0 %v5484_v1 }
  0xc9   :  { %4538 = vmatmul.mubr.msk.bf16.gmra.mrb[24].mxu0 %vm248_vm1, %v123_v42  ;;  %v831_v42 = vpack.c.bf16 %v801_v41, %v800_v40 }
  0xca   :  { %695 = vmatprep.mubr.bf16.mxu0 %v5484_v1 }
  0xd1   :  { %4539 = vmatmul.mubr.msk.bf16.gmra.mrb[28].mxu0 %vm248_vm1, %v124_v45  ;;  %v832_v45 = vpack.c.bf16 %v803_v44, %v802_v43 }
  0xd2   :  { %705 = vmatprep.mubr.bf16.mxu0 %v5484_v1 }
  0xd9   :  { %4540 = vmatmul.mubr.msk.bf16.gmra.mrb[32].mxu0 %vm248_vm1, %v125_v48  ;;  %v833_v48 = vpack.c.bf16 %v805_v47, %v804_v46 }
  0xda   :  { %715 = vmatprep.mubr.bf16.mxu0 %v5484_v1 }
  0xe1   :  { %4541 = vmatmul.mubr.msk.bf16.gmra.mrb[36].mxu0 %vm248_vm1, %v126_v51  ;;  %v1190_v51 = vsub.s32 0, %v6083_v50 }
  0xe2   :  { %725 = vmatprep.mubr.bf16.mxu0 %v5484_v1 }
  0xe9   :  { %4542 = vmatmul.mubr.msk.bf16.gmra.mrb[40].mxu0 %vm248_vm1, %v127_v54  ;;  %v6092_v54 = vrot.slane %v1186_v52, %v1190_v51 }
  0xea   :  { %735 = vmatprep.mubr.bf16.mxu0 %v5484_v1 }
  0xf1   :  { %4543 = vmatmul.mubr.msk.bf16.gmra.mrb[44].mxu0 %vm248_vm1, %v128_v57 }
  0xf2   :  { %745 = vmatprep.mubr.bf16.mxu0 %v5484_v1 }
  0xf9   :  { %4544 = vmatmul.mubr.msk.bf16.gmra.mrb[48].mxu0 %vm248_vm1, %v129_v60 }
  0xfa   :  { %755 = vmatprep.mubr.bf16.mxu0 %v5484_v1 }
 0x101   :  { %4545 = vmatmul.mubr.msk.bf16.gmra.mrb[52].mxu0 %vm248_vm1, %v130_v63 }
 0x102   :  { %765 = vmatprep.mubr.bf16.mxu0 %v5484_v1 }
 0x109   :  { %4546 = vmatmul.mubr.msk.bf16.gmra.mrb[56].mxu0 %vm248_vm1, %v131_v3 }
 0x10a   :  { %975 = vmatprep.mubr.bf16.mxu0 %v5484_v1 }
 0x111   :  { %4572 = vmatmul.mubr.msk.bf16.vlgmr.msra.gmra.mrb[0].mxu0 %vm248_vm1, %v819_v6 }
 0x112   :  { %985 = vmatprep.mubr.bf16.mxu0 %v5484_v1 }
 0x119   :  { %4573 = vmatmul.mubr.msk.bf16.gmra.mrb[4].mxu0 %vm248_vm1, %v820_v9 }
 0x11a   :  { %995 = vmatprep.mubr.bf16.mxu0 %v5484_v1 }
 0x121   :  { %4574 = vmatmul.mubr.msk.bf16.gmra.mrb[8].mxu0 %vm248_vm1, %v821_v12 }
 0x122   :  { %1005 = vmatprep.mubr.bf16.mxu0 %v5484_v1 }
 0x129   :  { %4575 = vmatmul.mubr.msk.bf16.gmra.mrb[12].mxu0 %vm248_vm1, %v822_v15 }
 0x12a   :  { %1015 = vmatprep.mubr.bf16.mxu0 %v5484_v1 }
 0x131   :  { %4576 = vmatmul.mubr.msk.bf16.gmra.mrb[16].mxu0 %vm248_vm1, %v823_v18 }
 0x132   :  { %1025 = vmatprep.mubr.bf16.mxu0 %v5484_v1 }
 0x139   :  { %4577 = vmatmul.mubr.msk.bf16.gmra.mrb[20].mxu0 %vm248_vm1, %v824_v21 }
 0x13a   :  { %1035 = vmatprep.mubr.bf16.mxu0 %v5484_v1 }
 0x141   :  { %4578 = vmatmul.mubr.msk.bf16.gmra.mrb[24].mxu0 %vm248_vm1, %v825_v24 }
 0x142   :  { %1045 = vmatprep.mubr.bf16.mxu0 %v5484_v1 }
 0x149   :  { %4579 = vmatmul.mubr.msk.bf16.gmra.mrb[28].mxu0 %vm248_vm1, %v826_v27 }
 0x14a   :  { %1055 = vmatprep.mubr.bf16.mxu0 %v5484_v1 }
 0x151   :  { %4580 = vmatmul.mubr.msk.bf16.gmra.mrb[32].mxu0 %vm248_vm1, %v827_v30 }
 0x152   :  { %1065 = vmatprep.mubr.bf16.mxu0 %v5484_v1 }
 0x159   :  { %4581 = vmatmul.mubr.msk.bf16.gmra.mrb[36].mxu0 %vm248_vm1, %v828_v33 }
 0x15a   :  { %1075 = vmatprep.mubr.bf16.mxu0 %v5484_v1 }
 0x161   :  { %4582 = vmatmul.mubr.msk.bf16.gmra.mrb[40].mxu0 %vm248_vm1, %v829_v36 }
 0x162   :  { %1085 = vmatprep.mubr.bf16.mxu0 %v5484_v1 }
 0x169   :  { %4583 = vmatmul.mubr.msk.bf16.gmra.mrb[44].mxu0 %vm248_vm1, %v830_v39 }
 0x16a   :  { %1095 = vmatprep.mubr.bf16.mxu0 %v5484_v1 }
 0x171   :  { %4584 = vmatmul.mubr.msk.bf16.gmra.mrb[48].mxu0 %vm248_vm1, %v831_v42 }
 0x172   :  { %1105 = vmatprep.mubr.bf16.mxu0 %v5484_v1 }
 0x179   :  { %4585 = vmatmul.mubr.msk.bf16.gmra.mrb[52].mxu0 %vm248_vm1, %v832_v45 }
 0x17a   :  { %1115 = vmatprep.mubr.bf16.mxu0 %v5484_v1 }
 0x181   :  { %4586 = vmatmul.mubr.msk.bf16.gmra.mrb[56].mxu0 %vm248_vm1, %v833_v48 }
 0x182   :  { %3288 = vmatprep.mubr.bf16.mxu0 %v5484_v1 }
 0x1e4   :  { %v977_v56 = vpop.f32.mrb[0].mxu0 }
 0x1e5   :  { %v1198_v57 = vadd.f32 %v6092_v54, %v977_v56  ;;  %v979_v58 = vpop.f32.mrb[1].mxu0 }
 0x1e6   :  { %v1199_v59 = vadd.f32 %v6096_v55, %v979_v58  ;;  %v981_v60 = vpop.f32.mrb[2].mxu0 }
 0x1e7   :  { %v1258_v61 = vmax.f32 %v1198_v57, 0.0  ;;  %v1200_v62 = vadd.f32 %v6092_v54, %v981_v60  ;;  %v983_v63 = vpop.f32.mrb[3].mxu0 }
 0x1e8   :  { %v1259_v2 = vmax.f32 %v1199_v59, 0.0  ;;  %v1201_v3 = vadd.f32 %v6096_v55, %v983_v63 }
 0x1e9   :  { %v1260_v4 = vmax.f32 %v1200_v62, 0.0  ;;  %v1379_v6 = vrot.slane %v1258_v61, 1 }
 0x1ea   :  { %v1261_v5 = vmax.f32 %v1201_v3, 0.0  ;;  %v1382_v8 = vrot.slane %v1259_v2, 1 }
 0x1eb   :  { %v1380_v7 = vrot.slane %v1260_v4, 1 }
 0x1ec   :  { %v1383_v9 = vrot.slane %v1261_v5, 1  ;;  %v987_v10 = vpop.f32.mrb[4].mxu0 }
 0x1ed   :  { %v1202_v11 = vadd.f32 %v6092_v54, %v987_v10  ;;  %v989_v12 = vpop.f32.mrb[5].mxu0  ;;  %v1381_v13 = vsel %vm1378_vm3, %v1379_v6, %v1380_v7 }
 0x1ee   :  { %v1203_v14 = vadd.f32 %v6096_v55, %v989_v12  ;;  %v991_v15 = vpop.f32.mrb[6].mxu0  ;;  %v1384_v16 = vsel %vm1378_vm3, %v1382_v8, %v1383_v9  ;;  %v1557_v17 = vmax.f32 %v1258_v61, %v1381_v13 }
 0x1ef   :  { %v1262_v18 = vmax.f32 %v1202_v11, 0.0  ;;  %v1204_v19 = vadd.f32 %v6092_v54, %v991_v15  ;;  %v993_v20 = vpop.f32.mrb[7].mxu0  ;;  %v1558_v21 = vmax.f32 %v1259_v2, %v1384_v16 }
 0x1f0   :  { %v1263_v22 = vmax.f32 %v1203_v14, 0.0  ;;  %v1205_v23 = vadd.f32 %v6096_v55, %v993_v20 }
 0x1f1   :  { %v1385_v24 = vrot.slane %v1262_v18, 1  ;;  %v1264_v25 = vmax.f32 %v1204_v19, 0.0 }
 0x1f2   :  { %v1387_v26 = vrot.slane %v1263_v22, 1  ;;  %v1265_v27 = vmax.f32 %v1205_v23, 0.0 }
 0x1f3   :  { %v1389_v28 = vrot.slane %v1264_v25, 1  ;;  %v1386_v29 = vsel %vm1378_vm3, %v1380_v7, %v1385_v24 }
 0x1f4   :  { %v1391_v30 = vrot.slane %v1265_v27, 1  ;;  %v997_v31 = vpop.f32.mrb[8].mxu0  ;;  %v1388_v32 = vsel %vm1378_vm3, %v1383_v9, %v1387_v26  ;;  %v1559_v33 = vmax.f32 %v1260_v4, %v1386_v29 }
 0x1f5   :  { %v1206_v34 = vadd.f32 %v6092_v54, %v997_v31  ;;  %v999_v35 = vpop.f32.mrb[9].mxu0  ;;  %v1560_v36 = vmax.f32 %v1261_v5, %v1388_v32  ;;  %v1390_v37 = vsel %vm1378_vm3, %v1385_v24, %v1389_v28 }
 0x1f6   :  { %v1207_v38 = vadd.f32 %v6096_v55, %v999_v35  ;;  %v1001_v39 = vpop.f32.mrb[10].mxu0  ;;  %v1631_v40 = vpack.c.bf16 %v1559_v33, %v1557_v17  ;;  %v1392_v41 = vsel %vm1378_vm3, %v1387_v26, %v1391_v30  ;;  %v1561_v42 = vmax.f32 %v1262_v18, %v1390_v37 }
 0x1f7   :  { %v1266_v43 = vmax.f32 %v1206_v34, 0.0  ;;  %v1208_v44 = vadd.f32 %v6092_v54, %v1001_v39  ;;  %v1003_v45 = vpop.f32.mrb[11].mxu0  ;;  %v1632_v46 = vpack.c.bf16 %v1560_v36, %v1558_v21  ;;  %v1562_v47 = vmax.f32 %v1263_v22, %v1392_v41 }
 0x1f8   :  { %v1267_v48 = vmax.f32 %v1207_v38, 0.0  ;;  %v1209_v49 = vadd.f32 %v6096_v55, %v1003_v45 }
 0x1f9   :  { %v1393_v52 = vrot.slane %v1266_v43, 1  ;;  %v1268_v56 = vmax.f32 %v1208_v44, 0.0  ;;  %1755 = vmatprep.subr.bf16.mxu1 %v1632_v46 }
 0x1fa   :  { %v1395_v57 = vrot.slane %v1267_v48, 1  ;;  %v1269_v58 = vmax.f32 %v1209_v49, 0.0  ;;  %1756 = vmatpush1.bf16.msra.mxu1 %v1631_v40 }
 0x1fb   :  { %v1397_v59 = vrot.slane %v1268_v56, 1  ;;  %v1394_v60 = vsel %vm1378_vm3, %v1389_v28, %v1393_v52 }
 0x1fc   :  { %v1399_v61 = vrot.slane %v1269_v58, 1  ;;  %v1007_v62 = vpop.f32.mrb[12].mxu0  ;;  %v1396_v63 = vsel %vm1378_vm3, %v1391_v30, %v1395_v57  ;;  %v1563_v0 = vmax.f32 %v1264_v25, %v1394_v60 }
 0x1fd   :  { %v1210_v2 = vadd.f32 %v6092_v54, %v1007_v62  ;;  %v1009_v3 = vpop.f32.mrb[13].mxu0  ;;  %v1564_v4 = vmax.f32 %v1265_v27, %v1396_v63  ;;  %v1398_v5 = vsel %vm1378_vm3, %v1393_v52, %v1397_v59 }
 0x1fe   :  { %v1211_v6 = vadd.f32 %v6096_v55, %v1009_v3  ;;  %v1011_v7 = vpop.f32.mrb[14].mxu0  ;;  %v1633_v8 = vpack.c.bf16 %v1563_v0, %v1561_v42  ;;  %v1400_v9 = vsel %vm1378_vm3, %v1395_v57, %v1399_v61  ;;  %v1565_v10 = vmax.f32 %v1266_v43, %v1398_v5 }
 0x1ff   :  { %v1270_v11 = vmax.f32 %v1210_v2, 0.0  ;;  %v1212_v12 = vadd.f32 %v6092_v54, %v1011_v7  ;;  %v1013_v13 = vpop.f32.mrb[15].mxu0  ;;  %v1634_v14 = vpack.c.bf16 %v1564_v4, %v1562_v47  ;;  %v1566_v15 = vmax.f32 %v1267_v48, %v1400_v9 }
 0x200   :  { %v1271_v16 = vmax.f32 %v1211_v6, 0.0  ;;  %v1213_v17 = vadd.f32 %v6096_v55, %v1013_v13 }
 0x201   :  { %v1401_v18 = vrot.slane %v1270_v11, 1  ;;  %v1272_v19 = vmax.f32 %v1212_v12, 0.0  ;;  %1757 = vmatprep.subr.bf16.mxu1 %v1634_v14 }
 0x202   :  { %v1403_v20 = vrot.slane %v1271_v16, 1  ;;  %v1273_v21 = vmax.f32 %v1213_v17, 0.0  ;;  %1758 = vmatpush1.bf16.msra.mxu1 %v1633_v8 }
 0x203   :  { %v1405_v22 = vrot.slane %v1272_v19, 1  ;;  %v1402_v23 = vsel %vm1378_vm3, %v1397_v59, %v1401_v18 }
 0x204   :  { %v1407_v24 = vrot.slane %v1273_v21, 1  ;;  %v1017_v25 = vpop.f32.mrb[16].mxu0  ;;  %v1404_v26 = vsel %vm1378_vm3, %v1399_v61, %v1403_v20  ;;  %v1567_v27 = vmax.f32 %v1268_v56, %v1402_v23 }
 0x205   :  { %v1214_v28 = vadd.f32 %v6092_v54, %v1017_v25  ;;  %v1019_v29 = vpop.f32.mrb[17].mxu0  ;;  %v1568_v30 = vmax.f32 %v1269_v58, %v1404_v26  ;;  %v1406_v31 = vsel %vm1378_vm3, %v1401_v18, %v1405_v22 }
 0x206   :  { %v1215_v32 = vadd.f32 %v6096_v55, %v1019_v29  ;;  %v1021_v33 = vpop.f32.mrb[18].mxu0  ;;  %v1635_v34 = vpack.c.bf16 %v1567_v27, %v1565_v10  ;;  %v1408_v35 = vsel %vm1378_vm3, %v1403_v20, %v1407_v24  ;;  %v1569_v36 = vmax.f32 %v1270_v11, %v1406_v31 }
 0x207   :  { %v1274_v37 = vmax.f32 %v1214_v28, 0.0  ;;  %v1216_v38 = vadd.f32 %v6092_v54, %v1021_v33  ;;  %v1023_v39 = vpop.f32.mrb[19].mxu0  ;;  %v1636_v40 = vpack.c.bf16 %v1568_v30, %v1566_v15  ;;  %v1570_v41 = vmax.f32 %v1271_v16, %v1408_v35 }
 0x208   :  { %v1275_v42 = vmax.f32 %v1215_v32, 0.0  ;;  %v1217_v43 = vadd.f32 %v6096_v55, %v1023_v39 }
 0x209   :  { %v1409_v44 = vrot.slane %v1274_v37, 1  ;;  %v1276_v45 = vmax.f32 %v1216_v38, 0.0  ;;  %1759 = vmatprep.subr.bf16.mxu1 %v1636_v40 }
 0x20a   :  { %v1411_v46 = vrot.slane %v1275_v42, 1  ;;  %v1277_v47 = vmax.f32 %v1217_v43, 0.0  ;;  %1760 = vmatpush1.bf16.msra.mxu1 %v1635_v34 }
 0x20b   :  { %v1413_v48 = vrot.slane %v1276_v45, 1  ;;  %v1410_v49 = vsel %vm1378_vm3, %v1405_v22, %v1409_v44 }
 0x20c   :  { %v1415_v52 = vrot.slane %v1277_v47, 1  ;;  %v1027_v56 = vpop.f32.mrb[20].mxu0  ;;  %v1412_v57 = vsel %vm1378_vm3, %v1407_v24, %v1411_v46  ;;  %v1571_v58 = vmax.f32 %v1272_v19, %v1410_v49 }
 0x20d   :  { %v1218_v59 = vadd.f32 %v6092_v54, %v1027_v56  ;;  %v1029_v60 = vpop.f32.mrb[21].mxu0  ;;  %v1572_v61 = vmax.f32 %v1273_v21, %v1412_v57  ;;  %v1414_v62 = vsel %vm1378_vm3, %v1409_v44, %v1413_v48 }
 0x20e   :  { %v1219_v63 = vadd.f32 %v6096_v55, %v1029_v60  ;;  %v1031_v0 = vpop.f32.mrb[22].mxu0  ;;  %v1637_v2 = vpack.c.bf16 %v1571_v58, %v1569_v36  ;;  %v1416_v3 = vsel %vm1378_vm3, %v1411_v46, %v1415_v52  ;;  %v1573_v4 = vmax.f32 %v1274_v37, %v1414_v62 }
 0x20f   :  { %v1278_v5 = vmax.f32 %v1218_v59, 0.0  ;;  %v1220_v6 = vadd.f32 %v6092_v54, %v1031_v0  ;;  %v1033_v7 = vpop.f32.mrb[23].mxu0  ;;  %v1638_v8 = vpack.c.bf16 %v1572_v61, %v1570_v41  ;;  %v1574_v9 = vmax.f32 %v1275_v42, %v1416_v3 }
 0x210   :  { %v1279_v10 = vmax.f32 %v1219_v63, 0.0  ;;  %v1221_v11 = vadd.f32 %v6096_v55, %v1033_v7 }
 0x211   :  { %v1417_v12 = vrot.slane %v1278_v5, 1  ;;  %v1280_v13 = vmax.f32 %v1220_v6, 0.0  ;;  %1761 = vmatprep.subr.bf16.mxu1 %v1638_v8 }
 0x212   :  { %v1419_v14 = vrot.slane %v1279_v10, 1  ;;  %v1281_v15 = vmax.f32 %v1221_v11, 0.0  ;;  %1762 = vmatpush1.bf16.msra.mxu1 %v1637_v2 }
 0x213   :  { %v1421_v16 = vrot.slane %v1280_v13, 1  ;;  %v1418_v17 = vsel %vm1378_vm3, %v1413_v48, %v1417_v12 }
 0x214   :  { %v1423_v18 = vrot.slane %v1281_v15, 1  ;;  %v1037_v19 = vpop.f32.mrb[24].mxu0  ;;  %v1420_v20 = vsel %vm1378_vm3, %v1415_v52, %v1419_v14  ;;  %v1575_v21 = vmax.f32 %v1276_v45, %v1418_v17 }
 0x215   :  { %v1222_v22 = vadd.f32 %v6092_v54, %v1037_v19  ;;  %v1039_v23 = vpop.f32.mrb[25].mxu0  ;;  %v1576_v24 = vmax.f32 %v1277_v47, %v1420_v20  ;;  %v1422_v25 = vsel %vm1378_vm3, %v1417_v12, %v1421_v16 }
 0x216   :  { %v1223_v26 = vadd.f32 %v6096_v55, %v1039_v23  ;;  %v1041_v27 = vpop.f32.mrb[26].mxu0  ;;  %v1639_v28 = vpack.c.bf16 %v1575_v21, %v1573_v4  ;;  %v1424_v29 = vsel %vm1378_vm3, %v1419_v14, %v1423_v18  ;;  %v1577_v30 = vmax.f32 %v1278_v5, %v1422_v25 }
 0x217   :  { %v1282_v31 = vmax.f32 %v1222_v22, 0.0  ;;  %v1224_v32 = vadd.f32 %v6092_v54, %v1041_v27  ;;  %v1043_v33 = vpop.f32.mrb[27].mxu0  ;;  %v1640_v34 = vpack.c.bf16 %v1576_v24, %v1574_v9  ;;  %v1578_v35 = vmax.f32 %v1279_v10, %v1424_v29 }
 0x218   :  { %v1283_v36 = vmax.f32 %v1223_v26, 0.0  ;;  %v1225_v37 = vadd.f32 %v6096_v55, %v1043_v33 }
 0x219   :  { %v1425_v38 = vrot.slane %v1282_v31, 1  ;;  %v1284_v39 = vmax.f32 %v1224_v32, 0.0  ;;  %1763 = vmatprep.subr.bf16.mxu1 %v1640_v34 }
 0x21a   :  { %v1427_v40 = vrot.slane %v1283_v36, 1  ;;  %v1285_v41 = vmax.f32 %v1225_v37, 0.0  ;;  %1764 = vmatpush1.bf16.msra.mxu1 %v1639_v28 }
 0x21b   :  { %v1429_v42 = vrot.slane %v1284_v39, 1  ;;  %v1426_v43 = vsel %vm1378_vm3, %v1421_v16, %v1425_v38 }
 0x21c   :  { %v1431_v44 = vrot.slane %v1285_v41, 1  ;;  %v1047_v45 = vpop.f32.mrb[28].mxu0  ;;  %v1428_v46 = vsel %vm1378_vm3, %v1423_v18, %v1427_v40  ;;  %v1579_v47 = vmax.f32 %v1280_v13, %v1426_v43 }
 0x21d   :  { %v1226_v48 = vadd.f32 %v6092_v54, %v1047_v45  ;;  %v1049_v49 = vpop.f32.mrb[29].mxu0  ;;  %v1580_v52 = vmax.f32 %v1281_v15, %v1428_v46  ;;  %v1430_v56 = vsel %vm1378_vm3, %v1425_v38, %v1429_v42 }
 0x21e   :  { %v1227_v57 = vadd.f32 %v6096_v55, %v1049_v49  ;;  %v1051_v58 = vpop.f32.mrb[30].mxu0  ;;  %v1641_v59 = vpack.c.bf16 %v1579_v47, %v1577_v30  ;;  %v1432_v60 = vsel %vm1378_vm3, %v1427_v40, %v1431_v44  ;;  %v1581_v61 = vmax.f32 %v1282_v31, %v1430_v56 }
 0x21f   :  { %v1286_v62 = vmax.f32 %v1226_v48, 0.0  ;;  %v1228_v63 = vadd.f32 %v6092_v54, %v1051_v58  ;;  %v1053_v0 = vpop.f32.mrb[31].mxu0  ;;  %v1642_v2 = vpack.c.bf16 %v1580_v52, %v1578_v35  ;;  %v1582_v3 = vmax.f32 %v1283_v36, %v1432_v60 }
 0x220   :  { %v1287_v4 = vmax.f32 %v1227_v57, 0.0  ;;  %v1229_v5 = vadd.f32 %v6096_v55, %v1053_v0 }
 0x221   :  { %v1433_v6 = vrot.slane %v1286_v62, 1  ;;  %v1288_v7 = vmax.f32 %v1228_v63, 0.0  ;;  %1765 = vmatprep.subr.bf16.mxu1 %v1642_v2 }
 0x222   :  { %v1435_v8 = vrot.slane %v1287_v4, 1  ;;  %v1289_v9 = vmax.f32 %v1229_v5, 0.0  ;;  %1766 = vmatpush1.bf16.msra.mxu1 %v1641_v59 }
 0x223   :  { %v1437_v10 = vrot.slane %v1288_v7, 1  ;;  %v1434_v11 = vsel %vm1378_vm3, %v1429_v42, %v1433_v6 }
 0x224   :  { %v1439_v12 = vrot.slane %v1289_v9, 1  ;;  %v1057_v13 = vpop.f32.mrb[32].mxu0  ;;  %v1436_v14 = vsel %vm1378_vm3, %v1431_v44, %v1435_v8  ;;  %v1583_v15 = vmax.f32 %v1284_v39, %v1434_v11 }
 0x225   :  { %v1230_v16 = vadd.f32 %v6092_v54, %v1057_v13  ;;  %v1059_v17 = vpop.f32.mrb[33].mxu0  ;;  %v1584_v18 = vmax.f32 %v1285_v41, %v1436_v14  ;;  %v1438_v19 = vsel %vm1378_vm3, %v1433_v6, %v1437_v10 }
 0x226   :  { %v1231_v20 = vadd.f32 %v6096_v55, %v1059_v17  ;;  %v1061_v21 = vpop.f32.mrb[34].mxu0  ;;  %v1643_v22 = vpack.c.bf16 %v1583_v15, %v1581_v61  ;;  %v1440_v23 = vsel %vm1378_vm3, %v1435_v8, %v1439_v12  ;;  %v1585_v24 = vmax.f32 %v1286_v62, %v1438_v19 }
 0x227   :  { %v1290_v25 = vmax.f32 %v1230_v16, 0.0  ;;  %v1232_v26 = vadd.f32 %v6092_v54, %v1061_v21  ;;  %v1063_v27 = vpop.f32.mrb[35].mxu0  ;;  %v1644_v28 = vpack.c.bf16 %v1584_v18, %v1582_v3  ;;  %v1586_v29 = vmax.f32 %v1287_v4, %v1440_v23 }
 0x228   :  { %v1291_v30 = vmax.f32 %v1231_v20, 0.0  ;;  %v1233_v31 = vadd.f32 %v6096_v55, %v1063_v27 }
 0x229   :  { %v1441_v32 = vrot.slane %v1290_v25, 1  ;;  %v1292_v33 = vmax.f32 %v1232_v26, 0.0  ;;  %1767 = vmatprep.subr.bf16.mxu1 %v1644_v28 }
 0x22a   :  { %v1443_v34 = vrot.slane %v1291_v30, 1  ;;  %v1293_v35 = vmax.f32 %v1233_v31, 0.0  ;;  %1768 = vmatpush1.bf16.msra.mxu1 %v1643_v22 }
 0x22b   :  { %v1445_v36 = vrot.slane %v1292_v33, 1  ;;  %v1442_v37 = vsel %vm1378_vm3, %v1437_v10, %v1441_v32 }
 0x22c   :  { %v1447_v38 = vrot.slane %v1293_v35, 1  ;;  %v1067_v39 = vpop.f32.mrb[36].mxu0  ;;  %v1444_v40 = vsel %vm1378_vm3, %v1439_v12, %v1443_v34  ;;  %v1587_v41 = vmax.f32 %v1288_v7, %v1442_v37 }
 0x22d   :  { %v1234_v42 = vadd.f32 %v6092_v54, %v1067_v39  ;;  %v1069_v43 = vpop.f32.mrb[37].mxu0  ;;  %v1588_v44 = vmax.f32 %v1289_v9, %v1444_v40  ;;  %v1446_v45 = vsel %vm1378_vm3, %v1441_v32, %v1445_v36 }
 0x22e   :  { %v1235_v46 = vadd.f32 %v6096_v55, %v1069_v43  ;;  %v1071_v47 = vpop.f32.mrb[38].mxu0  ;;  %v1645_v48 = vpack.c.bf16 %v1587_v41, %v1585_v24  ;;  %v1448_v49 = vsel %vm1378_vm3, %v1443_v34, %v1447_v38  ;;  %v1589_v52 = vmax.f32 %v1290_v25, %v1446_v45 }
 0x22f   :  { %v1294_v56 = vmax.f32 %v1234_v42, 0.0  ;;  %v1236_v57 = vadd.f32 %v6092_v54, %v1071_v47  ;;  %v1073_v58 = vpop.f32.mrb[39].mxu0  ;;  %v1646_v59 = vpack.c.bf16 %v1588_v44, %v1586_v29  ;;  %v1590_v60 = vmax.f32 %v1291_v30, %v1448_v49 }
 0x230   :  { %v1295_v61 = vmax.f32 %v1235_v46, 0.0  ;;  %v1237_v62 = vadd.f32 %v6096_v55, %v1073_v58 }
 0x231   :  { %v1449_v63 = vrot.slane %v1294_v56, 1  ;;  %v1296_v0 = vmax.f32 %v1236_v57, 0.0  ;;  %1769 = vmatprep.subr.bf16.mxu1 %v1646_v59 }
 0x232   :  { %v1451_v2 = vrot.slane %v1295_v61, 1  ;;  %v1297_v3 = vmax.f32 %v1237_v62, 0.0  ;;  %1770 = vmatpush1.bf16.msra.mxu1 %v1645_v48 }
 0x233   :  { %v1453_v4 = vrot.slane %v1296_v0, 1  ;;  %v1450_v5 = vsel %vm1378_vm3, %v1445_v36, %v1449_v63 }
 0x234   :  { %v1455_v6 = vrot.slane %v1297_v3, 1  ;;  %v1077_v7 = vpop.f32.mrb[40].mxu0  ;;  %v1452_v8 = vsel %vm1378_vm3, %v1447_v38, %v1451_v2  ;;  %v1591_v9 = vmax.f32 %v1292_v33, %v1450_v5 }
 0x235   :  { %v1238_v10 = vadd.f32 %v6092_v54, %v1077_v7  ;;  %v1079_v11 = vpop.f32.mrb[41].mxu0  ;;  %v1592_v12 = vmax.f32 %v1293_v35, %v1452_v8  ;;  %v1454_v13 = vsel %vm1378_vm3, %v1449_v63, %v1453_v4 }
 0x236   :  { %v1239_v14 = vadd.f32 %v6096_v55, %v1079_v11  ;;  %v1081_v15 = vpop.f32.mrb[42].mxu0  ;;  %v1647_v16 = vpack.c.bf16 %v1591_v9, %v1589_v52  ;;  %v1456_v17 = vsel %vm1378_vm3, %v1451_v2, %v1455_v6  ;;  %v1593_v18 = vmax.f32 %v1294_v56, %v1454_v13 }
 0x237   :  { %v1298_v19 = vmax.f32 %v1238_v10, 0.0  ;;  %v1240_v20 = vadd.f32 %v6092_v54, %v1081_v15  ;;  %v1083_v21 = vpop.f32.mrb[43].mxu0  ;;  %v1648_v22 = vpack.c.bf16 %v1592_v12, %v1590_v60  ;;  %v1594_v23 = vmax.f32 %v1295_v61, %v1456_v17 }
 0x238   :  { %v1299_v24 = vmax.f32 %v1239_v14, 0.0  ;;  %v1241_v25 = vadd.f32 %v6096_v55, %v1083_v21 }
 0x239   :  { %v1457_v26 = vrot.slane %v1298_v19, 1  ;;  %v1300_v27 = vmax.f32 %v1240_v20, 0.0  ;;  %1771 = vmatprep.subr.bf16.mxu1 %v1648_v22 }
 0x23a   :  { %v1459_v28 = vrot.slane %v1299_v24, 1  ;;  %v1301_v29 = vmax.f32 %v1241_v25, 0.0  ;;  %1772 = vmatpush1.bf16.msra.mxu1 %v1647_v16 }
 0x23b   :  { %v1461_v30 = vrot.slane %v1300_v27, 1  ;;  %v1458_v31 = vsel %vm1378_vm3, %v1453_v4, %v1457_v26 }
 0x23c   :  { %v1463_v32 = vrot.slane %v1301_v29, 1  ;;  %v1087_v33 = vpop.f32.mrb[44].mxu0  ;;  %v1460_v34 = vsel %vm1378_vm3, %v1455_v6, %v1459_v28  ;;  %v1595_v35 = vmax.f32 %v1296_v0, %v1458_v31 }
 0x23d   :  { %v1242_v36 = vadd.f32 %v6092_v54, %v1087_v33  ;;  %v1089_v37 = vpop.f32.mrb[45].mxu0  ;;  %v1596_v38 = vmax.f32 %v1297_v3, %v1460_v34  ;;  %v1462_v39 = vsel %vm1378_vm3, %v1457_v26, %v1461_v30 }
 0x23e   :  { %v1243_v40 = vadd.f32 %v6096_v55, %v1089_v37  ;;  %v1091_v41 = vpop.f32.mrb[46].mxu0  ;;  %v1649_v42 = vpack.c.bf16 %v1595_v35, %v1593_v18  ;;  %v1464_v43 = vsel %vm1378_vm3, %v1459_v28, %v1463_v32  ;;  %v1597_v44 = vmax.f32 %v1298_v19, %v1462_v39 }
 0x23f   :  { %v1302_v45 = vmax.f32 %v1242_v36, 0.0  ;;  %v1244_v46 = vadd.f32 %v6092_v54, %v1091_v41  ;;  %v1093_v47 = vpop.f32.mrb[47].mxu0  ;;  %v1650_v48 = vpack.c.bf16 %v1596_v38, %v1594_v23  ;;  %v1598_v49 = vmax.f32 %v1299_v24, %v1464_v43 }
 0x240   :  { %v1303_v52 = vmax.f32 %v1243_v40, 0.0  ;;  %v1245_v56 = vadd.f32 %v6096_v55, %v1093_v47 }
 0x241   :  { %v1465_v57 = vrot.slane %v1302_v45, 1  ;;  %v1304_v58 = vmax.f32 %v1244_v46, 0.0  ;;  %1773 = vmatprep.subr.bf16.mxu1 %v1650_v48 }
 0x242   :  { %v1467_v59 = vrot.slane %v1303_v52, 1  ;;  %v1305_v60 = vmax.f32 %v1245_v56, 0.0  ;;  %1774 = vmatpush1.bf16.msra.mxu1 %v1649_v42 }
 0x243   :  { %v1469_v61 = vrot.slane %v1304_v58, 1  ;;  %v1466_v62 = vsel %vm1378_vm3, %v1461_v30, %v1465_v57 }
 0x244   :  { %v1471_v63 = vrot.slane %v1305_v60, 1  ;;  %v1097_v0 = vpop.f32.mrb[48].mxu0  ;;  %v1468_v2 = vsel %vm1378_vm3, %v1463_v32, %v1467_v59  ;;  %v1599_v3 = vmax.f32 %v1300_v27, %v1466_v62 }
 0x245   :  { %v1246_v4 = vadd.f32 %v6092_v54, %v1097_v0  ;;  %v1099_v5 = vpop.f32.mrb[49].mxu0  ;;  %v1600_v6 = vmax.f32 %v1301_v29, %v1468_v2  ;;  %v1470_v7 = vsel %vm1378_vm3, %v1465_v57, %v1469_v61 }
 0x246   :  { %v1247_v8 = vadd.f32 %v6096_v55, %v1099_v5  ;;  %v1101_v9 = vpop.f32.mrb[50].mxu0  ;;  %v1651_v10 = vpack.c.bf16 %v1599_v3, %v1597_v44  ;;  %v1472_v11 = vsel %vm1378_vm3, %v1467_v59, %v1471_v63  ;;  %v1601_v12 = vmax.f32 %v1302_v45, %v1470_v7 }
 0x247   :  { %v1306_v13 = vmax.f32 %v1246_v4, 0.0  ;;  %v1248_v14 = vadd.f32 %v6092_v54, %v1101_v9  ;;  %v1103_v15 = vpop.f32.mrb[51].mxu0  ;;  %v1652_v16 = vpack.c.bf16 %v1600_v6, %v1598_v49  ;;  %v1602_v17 = vmax.f32 %v1303_v52, %v1472_v11 }
 0x248   :  { %v1307_v18 = vmax.f32 %v1247_v8, 0.0  ;;  %v1249_v19 = vadd.f32 %v6096_v55, %v1103_v15 }
 0x249   :  { %v1473_v20 = vrot.slane %v1306_v13, 1  ;;  %v1308_v21 = vmax.f32 %v1248_v14, 0.0  ;;  %1775 = vmatprep.subr.bf16.mxu1 %v1652_v16 }
 0x24a   :  { %v1475_v22 = vrot.slane %v1307_v18, 1  ;;  %v1309_v23 = vmax.f32 %v1249_v19, 0.0  ;;  %1776 = vmatpush1.bf16.msra.mxu1 %v1651_v10 }
 0x24b   :  { %v1477_v24 = vrot.slane %v1308_v21, 1  ;;  %v1474_v25 = vsel %vm1378_vm3, %v1469_v61, %v1473_v20 }
 0x24c   :  { %v1479_v26 = vrot.slane %v1309_v23, 1  ;;  %v1107_v27 = vpop.f32.mrb[52].mxu0  ;;  %v1476_v28 = vsel %vm1378_vm3, %v1471_v63, %v1475_v22  ;;  %v1603_v29 = vmax.f32 %v1304_v58, %v1474_v25  ;;  %v5485_v25 = vmov 65535  }
 0x24d   :  { %v1250_v30 = vadd.f32 %v6092_v54, %v1107_v27  ;;  %v1109_v31 = vpop.f32.mrb[53].mxu0  ;;  %v1604_v32 = vmax.f32 %v1305_v60, %v1476_v28  ;;  %v1478_v33 = vsel %vm1378_vm3, %v1473_v20, %v1477_v24 }
 0x24e   :  { %v1251_v34 = vadd.f32 %v6096_v55, %v1109_v31  ;;  %v1111_v35 = vpop.f32.mrb[54].mxu0  ;;  %v1653_v36 = vpack.c.bf16 %v1603_v29, %v1601_v12  ;;  %v1480_v37 = vsel %vm1378_vm3, %v1475_v22, %v1479_v26  ;;  %v1605_v38 = vmax.f32 %v1306_v13, %v1478_v33 }
 0x24f   :  { %v1310_v39 = vmax.f32 %v1250_v30, 0.0  ;;  %v1252_v40 = vadd.f32 %v6092_v54, %v1111_v35  ;;  %v1113_v41 = vpop.f32.mrb[55].mxu0  ;;  %v1654_v42 = vpack.c.bf16 %v1604_v32, %v1602_v17  ;;  %v1606_v43 = vmax.f32 %v1307_v18, %v1480_v37  ;;  %v5313_v37 = vld [vmem:[%s7168_s4] ss:$8 sps:$4 sm:$0xff]  }
 0x250   :  { %v1311_v44 = vmax.f32 %v1251_v34, 0.0  ;;  %v1253_v45 = vadd.f32 %v6096_v55, %v1113_v41  ;;  %v5318_v41 = vld [vmem:[%s7168_s4 + $0x10] ss:$8 sps:$4 sm:$0xff]  }
 0x251   :  { %v1481_v46 = vrot.slane %v1310_v39, 1  ;;  %v1312_v47 = vmax.f32 %v1252_v40, 0.0  ;;  %1777 = vmatprep.subr.bf16.mxu1 %v1654_v42  ;;  %v5335_v40 = vld [vmem:[%s7169_s2 + $0x8] sm:$0xff]  }
 0x252   :  { %v1483_v48 = vrot.slane %v1311_v44, 1  ;;  %v1313_v49 = vmax.f32 %v1253_v45, 0.0  ;;  %1778 = vmatpush1.bf16.msra.mxu1 %v1653_v36  ;;  %v5319_v42 = vld [vmem:[%s7168_s4 + $0x24] ss:$8 sps:$4 sm:$0xff]   ;;  %v5321_v45 = vld [vmem:[%s7168_s4 + $0x20] ss:$8 sps:$4 sm:$0xff]  }
 0x253   :  { %v1485_v52 = vrot.slane %v1312_v47, 1  ;;  %v1482_v56 = vsel %vm1378_vm3, %v1477_v24, %v1481_v46 }
 0x254   :  { %v1487_v57 = vrot.slane %v1313_v49, 1  ;;  %v1117_v58 = vpop.f32.mrb[56].mxu0  ;;  %v1484_v59 = vsel %vm1378_vm3, %v1479_v26, %v1483_v48  ;;  %v1607_v60 = vmax.f32 %v1308_v21, %v1482_v56  ;;  %v5340_v56 = vld [vmem:[%s7169_s2 + $0x30] sm:$0xff]  }
 0x255   :  { %v1254_v61 = vadd.f32 %v6092_v54, %v1117_v58  ;;  %v1119_v62 = vpop.f32.mrb[57].mxu0  ;;  %v1608_v63 = vmax.f32 %v1309_v23, %v1484_v59  ;;  %v1486_v0 = vsel %vm1378_vm3, %v1481_v46, %v1485_v52  ;;  %v5322_v46 = vld [vmem:[%s7168_s4 + $0x34] ss:$8 sps:$4 sm:$0xff]   ;;  %v5327_v58 = vld [vmem:[%s7168_s4 + $0x40] ss:$8 sps:$4 sm:$0xff]  }
 0x256   :  { %v1255_v2 = vadd.f32 %v6096_v55, %v1119_v62  ;;  %v1121_v3 = vpop.f32.mrb[58].mxu0  ;;  %v1655_v4 = vpack.c.bf16 %v1607_v60, %v1605_v38  ;;  %v1488_v5 = vsel %vm1378_vm3, %v1483_v48, %v1487_v57  ;;  %v1609_v6 = vmax.f32 %v1310_v39, %v1486_v0  ;;  %v5316_v38 = vld [vmem:[%s7168_s4 + $0x14] ss:$8 sps:$4 sm:$0xff]   ;;  %v5334_v39 = vld [vmem:[%s7169_s2] sm:$0xff]   ;;  %v5339_v48 = vld [vmem:[%s7169_s2 + $0x28] sm:$0xff]  }
 0x257   :  { %v1314_v7 = vmax.f32 %v1254_v61, 0.0  ;;  %v1256_v8 = vadd.f32 %v6092_v54, %v1121_v3  ;;  %v1123_v9 = vpop.f32.mrb[59].mxu0  ;;  %v1656_v10 = vpack.c.bf16 %v1608_v63, %v1606_v43  ;;  %v1610_v11 = vmax.f32 %v1311_v44, %v1488_v5  ;;  %v5336_v43 = vld [vmem:[%s7169_s2 + $0x10] sm:$0xff]   ;;  %v5337_v44 = vld [vmem:[%s7169_s2 + $0x18] sm:$0xff]   ;;  %v5342_v60 = vld [vmem:[%s7169_s2 + $0x40] sm:$0xff]  }
 0x258   :  { %v1315_v12 = vmax.f32 %v1255_v2, 0.0  ;;  %v1257_v13 = vadd.f32 %v6096_v55, %v1123_v9  ;;  %v1747_v55 = vsel %vm1746_vm4, 4294967295, %v5485_v25  ;;  %v5328_v59 = vld [vmem:[%s7168_s4 + $0x54] ss:$8 sps:$4 sm:$0xff]   ;;  %v5330_v61 = vld [vmem:[%s7168_s4 + $0x50] ss:$8 sps:$4 sm:$0xff]  }
 0x259   :  { %v1489_v14 = vrot.slane %v1314_v7, 1  ;;  %v1316_v15 = vmax.f32 %v1256_v8, 0.0  ;;  %1779 = vmatprep.subr.bf16.mxu1 %v1656_v10  ;;  %v6221_v33 = vsel %vm1378_vm3, %v1747_v55, 0  ;;  %v5331_v62 = vld [vmem:[%s7168_s4 + $0x64] ss:$8 sps:$4 sm:$0xff]  }
 0x25a   :  { %v1491_v16 = vrot.slane %v1315_v12, 1  ;;  %v1317_v17 = vmax.f32 %v1257_v13, 0.0  ;;  %1780 = vmatpush1.bf16.msra.mxu1 %v1655_v4  ;;  %v5333_v63 = vld [vmem:[%s7168_s4 + $0x60] ss:$8 sps:$4 sm:$0xff]   ;;  %v5344_v2 = vld [vmem:[%s7169_s2 + $0x50] ss:$0 sps:$4 sm:$0xff]  }
 0x25b   :  { %v1493_v18 = vrot.slane %v1316_v15, 1  ;;  %v1490_v19 = vsel %vm1378_vm3, %v1485_v52, %v1489_v14  ;;  %v5325_v52 = vld [vmem:[%s7168_s4 + $0x44] ss:$8 sps:$4 sm:$0xff]   ;;  %v1980_v3 = vsel %vm1978_vm5, %v5344_v2, 0  ;;  %v5359_v2 = vld [vmem:[%s7171_s0 + $0x68] ss:$8 sps:$4 sm:$0xff]  }
 0x25c   :  { %v1495_v20 = vrot.slane %v1317_v17, 1  ;;  %v1492_v21 = vsel %vm1378_vm3, %v1487_v57, %v1491_v16  ;;  %v1611_v54 = vmax.f32 %v1312_v47, %v1490_v19  ;;  %v5338_v47 = vld [vmem:[%s7169_s2 + $0x20] sm:$0xff]   ;;  %v5341_v57 = vld [vmem:[%s7169_s2 + $0x38] sm:$0xff]   ;;  %v5343_v0 = vld [vmem:[%s7169_s2 + $0x48] sm:$0xff]  }
 0x25d   :  { %v1494_v22 = vsel %vm1378_vm3, %v1489_v14, %v1493_v18  ;;  %v1615_v23 = vmax.f32 %v1316_v15, %v1493_v18  ;;  %v1612_v24 = vmax.f32 %v1313_v49, %v1492_v21  ;;  %v5324_v49 = vld [vmem:[%s7168_s4 + $0x30] ss:$8 sps:$4 sm:$0xff]   ;;  %v5345_v10 = vld [vmem:[%s7170_s29] sm:$0xff]  }
 0x25e   :  { %v1613_v26 = vmax.f32 %v1314_v7, %v1494_v22  ;;  %v1496_v27 = vsel %vm1378_vm3, %v1491_v16, %v1495_v20  ;;  %v1616_v28 = vmax.f32 %v1317_v17, %v1495_v20  ;;  %v1657_v29 = vpack.c.bf16 %v1611_v54, %v1609_v6  ;;  %v5347_v18 = vld [vmem:[%s7170_s29 + $0x10] sm:$0xff]   ;;  %v5348_v20 = vld [vmem:[%s7170_s29 + $0x18] sm:$0xff]   ;;  %v5349_v25 = vld [vmem:[%s7170_s29 + $0x20] sm:$0xff]  }
 0x25f   :  { %v1614_v30 = vmax.f32 %v1315_v12, %v1496_v27  ;;  %v1658_v31 = vpack.c.bf16 %v1612_v24, %v1610_v11  ;;  %v5346_v12 = vld [vmem:[%s7170_s29 + $0x8] sm:$0xff]  }
 0x260   :  { %v1659_v32 = vpack.c.bf16 %v1615_v23, %v1613_v26  ;;  %v5350_v26 = vld [vmem:[%s7170_s29 + $0x28] sm:$0xff]  }
 0x261   :  { %v1660_v34 = vpack.c.bf16 %v1616_v28, %v1614_v30  ;;  %1781 = vmatprep.subr.bf16.mxu1 %v1658_v31 }
 0x262   :  { %1782 = vmatpush1.bf16.msra.mxu1 %v1657_v29  ;;  %v1750_v36 = vand.u32 %v6221_v33, %v1659_v32  ;;  %v5351_v32 = vld [vmem:[%s7170_s29 + $0x30] sm:$0xff]  }
 0x263   :  { %v1753_v35 = vand.u32 %v6221_v33, %v1660_v34 }
 0x265   :  { %1783 = vmatprep.subr.bf16.mxu1 %v1753_v35  ;;  %v5352_v35 = vld [vmem:[%s7170_s29 + $0x38] sm:$0xff]  }
 0x266   :  { %1784 = vmatpush1.bf16.msra.mxu1 %v1750_v36 }
 0x267   :  { %1982 = vmatprep.subr.bf16.mxu1 %v5484_v1 }
 0x269   :  { %1788 = vmatmul.mubr.bf16.vlgmr.msra.gmra.mrb[0].mxu1 %v5313_v37 }
 0x26a   :  { %4602 = vmatprep.mubr.msk.bf16.mxu1 %vm1724_vm2, %v5316_v38  ;;  %1983 = vmatpush1.bf16.msra.mxu1 %v5334_v39 }
 0x26b   :  { %1984 = vmatprep.subr.bf16.mxu1 %v5484_v1 }
 0x26e   :  { %1985 = vmatpush1.bf16.msra.mxu1 %v5335_v40 }
 0x26f   :  { %1986 = vmatprep.subr.bf16.mxu1 %v5484_v1 }
 0x271   :  { %1798 = vmatmul.mubr.bf16.gmra.mrb[4].mxu1 %v5318_v41  ;;  %v5353_v41 = vld [vmem:[%s7170_s29 + $0x40] sm:$0xff]  }
 0x272   :  { %4603 = vmatprep.mubr.msk.bf16.mxu1 %vm1724_vm2, %v5319_v42  ;;  %1987 = vmatpush1.bf16.msra.mxu1 %v5336_v43  ;;  %v5354_v43 = vld [vmem:[%s7170_s29 + $0x48] sm:$0xff]  }
 0x273   :  { %1988 = vmatprep.subr.bf16.mxu1 %v5484_v1 }
 0x276   :  { %1989 = vmatpush1.bf16.msra.mxu1 %v5337_v44 }
 0x277   :  { %1990 = vmatprep.subr.bf16.mxu1 %v5484_v1 }
 0x279   :  { %1808 = vmatmul.mubr.bf16.gmra.mrb[8].mxu1 %v5321_v45  ;;  %v5355_v45 = vld [vmem:[%s7170_s29 + $0x50] ss:$0 sps:$4 sm:$0xff]  }
 0x27a   :  { %4604 = vmatprep.mubr.msk.bf16.mxu1 %vm1724_vm2, %v5322_v46  ;;  %1991 = vmatpush1.bf16.msra.mxu1 %v5338_v47 }
 0x27b   :  { %1992 = vmatprep.subr.bf16.mxu1 %v5484_v1 }
 0x27e   :  { %1993 = vmatpush1.bf16.msra.mxu1 %v5339_v48 }
 0x27f   :  { %1994 = vmatprep.subr.bf16.mxu1 %v5484_v1 }
 0x281   :  { %1818 = vmatmul.mubr.bf16.gmra.mrb[12].mxu1 %v5324_v49 }
 0x282   :  { %4605 = vmatprep.mubr.msk.bf16.mxu1 %vm1724_vm2, %v5325_v52  ;;  %1995 = vmatpush1.bf16.msra.mxu1 %v5340_v56  ;;  %v2156_v52 = vsel %vm1978_vm5, %v5355_v45, 0 }
 0x283   :  { %1996 = vmatprep.subr.bf16.mxu1 %v5484_v1 }
 0x286   :  { %1997 = vmatpush1.bf16.msra.mxu1 %v5341_v57 }
 0x287   :  { %1998 = vmatprep.subr.bf16.mxu1 %v5484_v1 }
 0x289   :  { %1828 = vmatmul.mubr.bf16.gmra.mrb[16].mxu1 %v5327_v58 }
 0x28a   :  { %4606 = vmatprep.mubr.msk.bf16.mxu1 %vm1724_vm2, %v5328_v59  ;;  %1999 = vmatpush1.bf16.msra.mxu1 %v5342_v60 }
 0x28b   :  { %2000 = vmatprep.subr.bf16.mxu1 %v5484_v1 }
 0x28e   :  { %2001 = vmatpush1.bf16.msra.mxu1 %v5343_v0  ;;  %v5361_v0 = vld [vmem:[%s7171_s0 + $0x6c] ss:$8 sps:$4 sm:$0xff]  }
 0x28f   :  { %2002 = vmatprep.subr.bf16.mxu1 %v5484_v1 }
 0x291   :  { %1838 = vmatmul.mubr.bf16.gmra.mrb[20].mxu1 %v5330_v61 }
 0x292   :  { %4607 = vmatprep.mubr.msk.bf16.mxu1 %vm1724_vm2, %v5331_v62  ;;  %2003 = vmatpush1.bf16.msra.mxu1 %v1980_v3  ;;  %v5358_v62 = vld [vmem:[%s7171_s0 + $0x5c] ss:$8 sps:$4 sm:$0xff]  }
 0x293   :  { %2158 = vmatprep.subr.bf16.mxu1 %v5484_v1  ;;  %v5364_v3 = vld [vmem:[%s7171_s0 + $0x7c] ss:$8 sps:$4 sm:$0xff]  }
 0x299   :  { %1848 = vmatmul.mubr.bf16.gmra.mrb[24].mxu1 %v5333_v63  ;;  %v5356_v63 = vld [vmem:[%s7171_s0 + $0x58] ss:$8 sps:$4 sm:$0xff]  }
 0x33c   :  { %v1789_v4 = vpop.f32.mrb[0].mxu1 }
 0x33d   :  { %v1791_v5 = vpop.f32.mrb[1].mxu1 }
 0x33e   :  { %v1793_v6 = vpop.f32.mrb[2].mxu1 }
 0x33f   :  { %v6316_v7 = vpack.c.bf16 %v1793_v6, %v1789_v4  ;;  %v1795_v8 = vpop.f32.mrb[3].mxu1  ;;  %v5362_v4 = vld [vmem:[%s7171_s0 + $0x78] ss:$8 sps:$4 sm:$0xff]   ;;  %v5365_v6 = vld [vmem:[%s7171_s0 + $0x88] ss:$8 sps:$4 sm:$0xff]  }
 0x340   :  { %v6318_v9 = vpack.c.bf16 %v1795_v8, %v1791_v5  ;;  %v5367_v5 = vld [vmem:[%s7171_s0 + $0x8c] ss:$8 sps:$4 sm:$0xff]   ;;  %v5368_v8 = vld [vmem:[%s7171_s0 + $0x98] ss:$8 sps:$4 sm:$0xff]  }
 0x342   :  { %4619 = vmatprep.mubr.msk.bf16.mxu1 %vm1956_vm6, %v6318_v9 }
 0x343   :  { %2015 = vmatmul.mubr.bf16.vlgmr.msra.gmra.mrb[28].mxu1 %v6316_v7 }
 0x344   :  { %v1799_v11 = vpop.f32.mrb[4].mxu1  ;;  %2159 = vmatpush1.bf16.msra.mxu1 %v5345_v10 }
 0x345   :  { %v1801_v13 = vpop.f32.mrb[5].mxu1  ;;  %2160 = vmatprep.subr.bf16.mxu1 %v5484_v1 }
 0x346   :  { %v1803_v14 = vpop.f32.mrb[6].mxu1 }
 0x347   :  { %v6330_v15 = vpack.c.bf16 %v1803_v14, %v1799_v11  ;;  %v1805_v16 = vpop.f32.mrb[7].mxu1 }
 0x348   :  { %v6332_v17 = vpack.c.bf16 %v1805_v16, %v1801_v13  ;;  %2161 = vmatpush1.bf16.msra.mxu1 %v5346_v12  ;;  %v5375_v13 = vld [vmem:[%s7171_s0 + $0x4] ss:$8 sps:$4 sm:$0xff]  }
 0x349   :  { %2162 = vmatprep.subr.bf16.mxu1 %v5484_v1 }
 0x34a   :  { %4620 = vmatprep.mubr.msk.bf16.mxu1 %vm1956_vm6, %v6332_v17 }
 0x34b   :  { %2023 = vmatmul.mubr.bf16.gmra.mrb[32].mxu1 %v6330_v15 }
 0x34c   :  { %v1809_v19 = vpop.f32.mrb[8].mxu1  ;;  %2163 = vmatpush1.bf16.msra.mxu1 %v5347_v18 }
 0x34d   :  { %v1811_v21 = vpop.f32.mrb[9].mxu1  ;;  %2164 = vmatprep.subr.bf16.mxu1 %v5484_v1 }
 0x34e   :  { %v1813_v54 = vpop.f32.mrb[10].mxu1 }
 0x34f   :  { %v6345_v22 = vpack.c.bf16 %v1813_v54, %v1809_v19  ;;  %v1815_v23 = vpop.f32.mrb[11].mxu1 }
 0x350   :  { %v1884_v24 = vpack.c.bf16 %v1815_v23, %v1811_v21  ;;  %2165 = vmatpush1.bf16.msra.mxu1 %v5348_v20 }
 0x351   :  { %2166 = vmatprep.subr.bf16.mxu1 %v5484_v1 }
 0x352   :  { %4621 = vmatprep.mubr.msk.bf16.mxu1 %vm1956_vm6, %v1884_v24 }
 0x353   :  { %2031 = vmatmul.mubr.bf16.gmra.mrb[36].mxu1 %v6345_v22 }
 0x354   :  { %v1819_v55 = vpop.f32.mrb[12].mxu1  ;;  %2167 = vmatpush1.bf16.msra.mxu1 %v5349_v25 }
 0x355   :  { %v1821_v27 = vpop.f32.mrb[13].mxu1  ;;  %2168 = vmatprep.subr.bf16.mxu1 %v5484_v1 }
 0x356   :  { %v1823_v28 = vpop.f32.mrb[14].mxu1 }
 0x357   :  { %v1885_v29 = vpack.c.bf16 %v1823_v28, %v1819_v55  ;;  %v1825_v30 = vpop.f32.mrb[15].mxu1 }
 0x358   :  { %v1886_v31 = vpack.c.bf16 %v1825_v30, %v1821_v27  ;;  %2169 = vmatpush1.bf16.msra.mxu1 %v5350_v26 }
 0x359   :  { %2170 = vmatprep.subr.bf16.mxu1 %v5484_v1 }
 0x35a   :  { %4622 = vmatprep.mubr.msk.bf16.mxu1 %vm1956_vm6, %v1886_v31 }
 0x35b   :  { %2039 = vmatmul.mubr.bf16.gmra.mrb[40].mxu1 %v1885_v29 }
 0x35c   :  { %v1829_v34 = vpop.f32.mrb[16].mxu1  ;;  %2171 = vmatpush1.bf16.msra.mxu1 %v5351_v32 }
 0x35d   :  { %v1831_v36 = vpop.f32.mrb[17].mxu1  ;;  %2172 = vmatprep.subr.bf16.mxu1 %v5484_v1 }
 0x35e   :  { %v1833_v37 = vpop.f32.mrb[18].mxu1 }
 0x35f   :  { %v1887_v38 = vpack.c.bf16 %v1833_v37, %v1829_v34  ;;  %v1835_v39 = vpop.f32.mrb[19].mxu1 }
 0x360   :  { %v1888_v40 = vpack.c.bf16 %v1835_v39, %v1831_v36  ;;  %2173 = vmatpush1.bf16.msra.mxu1 %v5352_v35 }
 0x361   :  { %2174 = vmatprep.subr.bf16.mxu1 %v5484_v1 }
 0x362   :  { %4623 = vmatprep.mubr.msk.bf16.mxu1 %vm1956_vm6, %v1888_v40 }
 0x363   :  { %2047 = vmatmul.mubr.bf16.gmra.mrb[44].mxu1 %v1887_v38 }
 0x364   :  { %v1839_v42 = vpop.f32.mrb[20].mxu1  ;;  %2175 = vmatpush1.bf16.msra.mxu1 %v5353_v41 }
 0x365   :  { %v1841_v44 = vpop.f32.mrb[21].mxu1  ;;  %2176 = vmatprep.subr.bf16.mxu1 %v5484_v1 }
 0x366   :  { %v1843_v46 = vpop.f32.mrb[22].mxu1 }
 0x367   :  { %v1889_v47 = vpack.c.bf16 %v1843_v46, %v1839_v42  ;;  %v1845_v48 = vpop.f32.mrb[23].mxu1  ;;  %v6452_v42 = vld [vmem:[%s7172_s25] ss:$0 sm:$0xff] }
 0x368   :  { %v1890_v49 = vpack.c.bf16 %v1845_v48, %v1841_v44  ;;  %2177 = vmatpush1.bf16.msra.mxu1 %v5354_v43 }
 0x369   :  { %2178 = vmatprep.subr.bf16.mxu1 %v5484_v1 }
 0x36a   :  { %4624 = vmatprep.mubr.msk.bf16.mxu1 %vm1956_vm6, %v1890_v49 }
 0x36b   :  { %2055 = vmatmul.mubr.bf16.gmra.mrb[48].mxu1 %v1889_v47 }
 0x36c   :  { %v1849_v56 = vpop.f32.mrb[24].mxu1  ;;  %2179 = vmatpush1.bf16.msra.mxu1 %v2156_v52 }
 0x36d   :  { %v1851_v57 = vpop.f32.mrb[25].mxu1  ;;  %2473 = vmatprep.subr.bf16.mxu1 %v5358_v62 }
 0x36e   :  { %v1853_v58 = vpop.f32.mrb[26].mxu1 }
 0x36f   :  { %v1891_v59 = vpack.c.bf16 %v1853_v58, %v1849_v56  ;;  %v1855_v60 = vpop.f32.mrb[27].mxu1 }
 0x370   :  { %v1892_v61 = vpack.c.bf16 %v1855_v60, %v1851_v57 }
 0x372   :  { %4625 = vmatprep.mubr.msk.bf16.mxu1 %vm1956_vm6, %v1892_v61 }
 0x373   :  { %2063 = vmatmul.mubr.bf16.gmra.mrb[52].mxu1 %v1891_v59 }
 0x374   :  { %4637 = vmatprep.mubr.msk.bf16.mxu1 %vm1956_vm6, %v6318_v9  ;;  %v4656_v9 = vld [vmem:[%s7171_s0 + $0xa8] sm:$0x33] }
 0x375   :  { %v4668_v10 = vcombine.high %v4656_v9, %v4656_v9  ;;  %v4667_v11 = vcombine.low %v4656_v9, %v4656_v9 }
 0x377   :  { %v2468_v12 = vsel %vm2466_vm7, %v4667_v11, 0 }
 0x37b   :  { %2191 = vmatmul.mubr.bf16.vlgmr.msra.gmra.mrb[56].mxu1 %v6316_v7  ;;  %v5370_v7 = vld [vmem:[%s7171_s0 + $0x9c] ss:$8 sps:$4 sm:$0xff]  }
 0x37c   :  { %4638 = vmatprep.mubr.msk.bf16.mxu1 %vm1956_vm6, %v6332_v17  ;;  %2474 = vmatpush1.bf16.msra.mxu1 %v5356_v63 }
 0x37d   :  { %2475 = vmatprep.subr.bf16.mxu1 %v5361_v0 }
 0x380   :  { %2476 = vmatpush1.bf16.msra.mxu1 %v5359_v2 }
 0x381   :  { %2477 = vmatprep.subr.bf16.mxu1 %v5364_v3 }
 0x383   :  { %2199 = vmatmul.mubr.bf16.gmra.mrb[60].mxu1 %v6330_v15 }
 0x384   :  { %4639 = vmatprep.mubr.msk.bf16.mxu1 %vm1956_vm6, %v1884_v24  ;;  %2478 = vmatpush1.bf16.msra.mxu1 %v5362_v4 }
 0x385   :  { %2479 = vmatprep.subr.bf16.mxu1 %v5367_v5 }
 0x388   :  { %2480 = vmatpush1.bf16.msra.mxu1 %v5365_v6 }
 0x389   :  { %2481 = vmatprep.subr.bf16.mxu1 %v5370_v7 }
 0x38b   :  { %2207 = vmatmul.mubr.bf16.gmra.mrb[64].mxu1 %v6345_v22 }
 0x38c   :  { %4640 = vmatprep.mubr.msk.bf16.mxu1 %vm1956_vm6, %v1886_v31  ;;  %2482 = vmatpush1.bf16.msra.mxu1 %v5368_v8 }
 0x38d   :  { %4669 = vmatprep.subr.msk.bf16.mxu1 %vm2466_vm7, %v4668_v10 }
 0x390   :  { %2484 = vmatpush1.bf16.msra.mxu1 %v2468_v12 }
 0x391   :  { %2651 = vmatprep.subr.bf16.mxu1 %v5375_v13 }
 0x393   :  { %2215 = vmatmul.mubr.bf16.gmra.mrb[68].mxu1 %v1885_v29 }
 0x394   :  { %4641 = vmatprep.mubr.msk.bf16.mxu1 %vm1956_vm6, %v1888_v40 }
 0x39b   :  { %2223 = vmatmul.mubr.bf16.gmra.mrb[72].mxu1 %v1887_v38 }
 0x39c   :  { %4642 = vmatprep.mubr.msk.bf16.mxu1 %vm1956_vm6, %v1890_v49  ;;  %v6458_v49 = vld [vmem:[%s7135_s7] ss:$0 sm:$0xff] }
 0x3a3   :  { %2231 = vmatmul.mubr.bf16.gmra.mrb[76].mxu1 %v1889_v47 }
 0x3a4   :  { %4643 = vmatprep.mubr.msk.bf16.mxu1 %vm1956_vm6, %v1892_v61 }
 0x3ab   :  { %2239 = vmatmul.mubr.bf16.gmra.mrb[80].mxu1 %v1891_v59 }
 0x3ac   :  { %2505 = vmatprep.mubr.bf16.mxu1 %v5484_v1 }
 0x416   :  { %v2016_v14 = vpop.f32.mrb[28].mxu1 }
 0x417   :  { %v2018_v15 = vpop.f32.mrb[29].mxu1 }
 0x418   :  { %v2019_v16 = vpop.f32.mrb[30].mxu1 }
 0x419   :  { %v2021_v17 = vpop.f32.mrb[31].mxu1 }
 0x41e   :  { %v2024_v18 = vpop.f32.mrb[32].mxu1 }
 0x41f   :  { %v2026_v19 = vpop.f32.mrb[33].mxu1 }
 0x420   :  { %v2027_v20 = vpop.f32.mrb[34].mxu1 }
 0x421   :  { %v2029_v21 = vpop.f32.mrb[35].mxu1 }
 0x422   :  { %v5373_v21 = vld [vmem:[%s7171_s0] ss:$8 sps:$4 sm:$0xff]  }
 0x426   :  { %v2032_v54 = vpop.f32.mrb[36].mxu1 }
 0x427   :  { %v2034_v22 = vpop.f32.mrb[37].mxu1 }
 0x428   :  { %v2035_v23 = vpop.f32.mrb[38].mxu1 }
 0x429   :  { %v2037_v24 = vpop.f32.mrb[39].mxu1 }
 0x42e   :  { %v6433_v25 = vpop.f32.mrb[40].mxu1 }
 0x42f   :  { %v2042_v55 = vpop.f32.mrb[41].mxu1 }
 0x430   :  { %v6435_v26 = vpop.f32.mrb[42].mxu1 }
 0x431   :  { %v2045_v27 = vpop.f32.mrb[43].mxu1 }
 0x436   :  { %v6437_v28 = vpop.f32.mrb[44].mxu1 }
 0x437   :  { %v2050_v29 = vpop.f32.mrb[45].mxu1 }
 0x438   :  { %v6439_v30 = vpop.f32.mrb[46].mxu1 }
 0x439   :  { %v2053_v31 = vpop.f32.mrb[47].mxu1 }
 0x43e   :  { %v6441_v32 = vpop.f32.mrb[48].mxu1 }
 0x43f   :  { %v2058_v34 = vpop.f32.mrb[49].mxu1 }
 0x440   :  { %v6443_v35 = vpop.f32.mrb[50].mxu1  ;;  %v5376_v34 = vld [vmem:[%s7171_s0 + $0x10] ss:$8 sps:$4 sm:$0xff]  }
 0x441   :  { %v2061_v36 = vpop.f32.mrb[51].mxu1 }
 0x446   :  { %v6445_v37 = vpop.f32.mrb[52].mxu1 }
 0x447   :  { %v2066_v38 = vpop.f32.mrb[53].mxu1 }
 0x448   :  { %v6447_v39 = vpop.f32.mrb[54].mxu1  ;;  %v5381_v38 = vld [vmem:[%s7171_s0 + $0x24] ss:$8 sps:$4 sm:$0xff]  }
 0x449   :  { %v2069_v40 = vpop.f32.mrb[55].mxu1 }
 0x44e   :  { %v2192_v41 = vpop.f32.mrb[56].mxu1 }
 0x44f   :  { %v2247_v43 = vmax.f32 %v2016_v14, %v2192_v41  ;;  %v2194_v44 = vpop.f32.mrb[57].mxu1 }
 0x450   :  { %v2195_v45 = vpop.f32.mrb[58].mxu1 }
 0x451   :  { %v2268_v46 = vmul.f32 %v6452_v42, %v2247_v43  ;;  %v2248_v47 = vmax.f32 %v2019_v16, %v2195_v45  ;;  %v2197_v48 = vpop.f32.mrb[59].mxu1 }
 0x452   :  { %v5379_v48 = vld [vmem:[%s7171_s0 + $0x20] ss:$8 sps:$4 sm:$0xff]  }
 0x453   :  { %v2269_v52 = vmul.f32 %v6452_v42, %v2248_v47  ;;  %v2289_v56 = vadd.f32 %v6458_v49, %v2268_v46 }
 0x455   :  { %v2290_v57 = vadd.f32 %v6458_v49, %v2269_v52  ;;  %v5384_v52 = vld [vmem:[%s7171_s0 + $0x34] ss:$8 sps:$4 sm:$0xff]  }
 0x456   :  { %v2200_v58 = vpop.f32.mrb[60].mxu1 }
 0x457   :  { %v6463_v59 = vpack.c.bf16 %v2290_v57, %v2289_v56  ;;  %v2249_v60 = vmax.f32 %v2024_v18, %v2200_v58  ;;  %v2202_v61 = vpop.f32.mrb[61].mxu1 }
 0x458   :  { %v2203_v62 = vpop.f32.mrb[62].mxu1 }
 0x459   :  { %v2270_v63 = vmul.f32 %v6452_v42, %v2249_v60  ;;  %v2250_v0 = vmax.f32 %v2027_v20, %v2203_v62  ;;  %v2205_v2 = vpop.f32.mrb[63].mxu1  ;;  %v2337_v3 = vshll.u32 %v6463_v59, 16  ;;  %v2335_v13 = vshrl.u32 %v6463_v59, 16 }
 0x45a   :  { %v5387_v2 = vld [vmem:[%s7171_s0 + $0x44] ss:$8 sps:$4 sm:$0xff]  }
 0x45b   :  { %v2271_v4 = vmul.f32 %v6452_v42, %v2250_v0  ;;  %v2291_v5 = vadd.f32 %v6458_v49, %v2270_v63  ;;  %v2339_v11 = vrot.slane %v2337_v3, 1  ;;  %v5382_v63 = vld [vmem:[%s7171_s0 + $0x30] ss:$8 sps:$4 sm:$0xff]  }
 0x45d   :  { %v2292_v6 = vadd.f32 %v6458_v49, %v2271_v4  ;;  %v2340_v19 = vor.u32 %v2339_v11, %v2335_v13 }
 0x45e   :  { %v2208_v7 = vpop.f32.mrb[64].mxu1 }
 0x45f   :  { %v6470_v8 = vpack.c.bf16 %v2292_v6, %v2291_v5  ;;  %v2251_v9 = vmax.f32 %v2032_v54, %v2208_v7  ;;  %v2210_v10 = vpop.f32.mrb[65].mxu1  ;;  %v5378_v54 = vld [vmem:[%s7171_s0 + $0x14] ss:$8 sps:$4 sm:$0xff]  }
 0x460   :  { %v2211_v12 = vpop.f32.mrb[66].mxu1  ;;  %v2313_v7 = vld [vmem:[%s7171_s0 + $0x50] sm:$0x33] }
 0x461   :  { %v2272_v14 = vmul.f32 %v6452_v42, %v2251_v9  ;;  %v2252_v15 = vmax.f32 %v2035_v23, %v2211_v12  ;;  %v2213_v16 = vpop.f32.mrb[67].mxu1  ;;  %v2342_v17 = vshll.u32 %v6470_v8, 16  ;;  %v5385_v12 = vld [vmem:[%s7171_s0 + $0x40] ss:$8 sps:$4 sm:$0xff]   ;;  %v4687_v13 = vcombine.low %v2313_v7, %v2313_v7 }
 0x463   :  { %v2273_v18 = vmul.f32 %v6452_v42, %v2252_v15  ;;  %v2344_v20 = vrot.slane %v2342_v17, 1  ;;  %v2293_v22 = vadd.f32 %v6458_v49, %v2272_v14 }
 0x465   :  { %v2294_v23 = vadd.f32 %v6458_v49, %v2273_v18  ;;  %v2345_v24 = vsel %vm2333_vm8, %v2340_v19, %v2344_v20 }
 0x466   :  { %v2216_v55 = vpop.f32.mrb[68].mxu1  ;;  %4670 = vmatmul.mubr.msk.bf16.vlgmr.msra.gmra.mrb[84].mxu1 %vm2444_vm9, %v2345_v24 }
 0x467   :  { %v6486_v27 = vpack.c.bf16 %v2294_v23, %v2293_v22  ;;  %v2253_v29 = vmax.f32 %v6433_v25, %v2216_v55  ;;  %v2218_v31 = vpop.f32.mrb[69].mxu1  ;;  %2515 = vmatprep.mubr.bf16.mxu1 %v5484_v1  ;;  %2652 = vmatpush1.bf16.msra.mxu1 %v5373_v21  ;;  %v2346_v25 = vshrl.u32 %v6470_v8, 16  ;;  %v5392_v22 = vld [vmem:[%s7171_s0 + $0xb4] ss:$8 sps:$4 sm:$0xff]  }
 0x468   :  { %v2219_v36 = vpop.f32.mrb[70].mxu1  ;;  %2653 = vmatprep.subr.bf16.mxu1 %v5378_v54  ;;  %v2646_v54 = vsel %vm2466_vm7, %v4687_v13, 0  ;;  %v5402_v13 = vld [vmem:[%s7171_s0 + $0xf0] ss:$8 sps:$4 sm:$0xff]  }
 0x469   :  { %v2274_v40 = vmul.f32 %v6452_v42, %v2253_v29  ;;  %v2254_v41 = vmax.f32 %v6435_v26, %v2219_v36  ;;  %v2221_v43 = vpop.f32.mrb[71].mxu1  ;;  %v2350_v44 = vshll.u32 %v6486_v27, 16  ;;  %v2348_v46 = vor.u32 %v2346_v25, %v2344_v20 }
 0x46b   :  { %v2275_v45 = vmul.f32 %v6452_v42, %v2254_v41  ;;  %v2352_v47 = vrot.slane %v2350_v44, 1  ;;  %2654 = vmatpush1.bf16.msra.mxu1 %v5376_v34  ;;  %v2295_v26 = vadd.f32 %v6458_v49, %v2274_v40 }
 0x46c   :  { %2655 = vmatprep.subr.bf16.mxu1 %v5381_v38 }
 0x46d   :  { %v2296_v56 = vadd.f32 %v6458_v49, %v2275_v45  ;;  %v2353_v57 = vsel %vm2333_vm8, %v2348_v46, %v2352_v47 }
 0x46e   :  { %v2224_v58 = vpop.f32.mrb[72].mxu1  ;;  %4671 = vmatmul.mubr.msk.bf16.gmra.mrb[88].mxu1 %vm2444_vm9, %v2353_v57 }
 0x46f   :  { %v6511_v60 = vpack.c.bf16 %v2296_v56, %v2295_v26  ;;  %v2255_v61 = vmax.f32 %v6437_v28, %v2224_v58  ;;  %v2226_v62 = vpop.f32.mrb[73].mxu1  ;;  %2525 = vmatprep.mubr.bf16.mxu1 %v5484_v1  ;;  %2656 = vmatpush1.bf16.msra.mxu1 %v5379_v48  ;;  %v2354_v28 = vshrl.u32 %v6486_v27, 16 }
 0x470   :  { %v2227_v0 = vpop.f32.mrb[74].mxu1  ;;  %2657 = vmatprep.subr.bf16.mxu1 %v5384_v52 }
 0x471   :  { %v2276_v3 = vmul.f32 %v6452_v42, %v2255_v61  ;;  %v2256_v4 = vmax.f32 %v6439_v30, %v2227_v0  ;;  %v2229_v5 = vpop.f32.mrb[75].mxu1  ;;  %v2358_v6 = vshll.u32 %v6511_v60, 16  ;;  %v2356_v10 = vor.u32 %v2354_v28, %v2352_v47  ;;  %v5395_v28 = vld [vmem:[%s7171_s0 + $0xc4] ss:$8 sps:$4 sm:$0xff]  }
 0x472   :  { %v4688_v30 = vcombine.high %v2313_v7, %v2313_v7  ;;  %v5390_v5 = vld [vmem:[%s7171_s0 + $0xb0] ss:$8 sps:$4 sm:$0xff]   ;;  %v5398_v7 = vld [vmem:[%s7171_s0 + $0xd4] ss:$8 sps:$4 sm:$0xff]  }
 0x473   :  { %v2277_v9 = vmul.f32 %v6452_v42, %v2256_v4  ;;  %v2360_v11 = vrot.slane %v2358_v6, 1  ;;  %2658 = vmatpush1.bf16.msra.mxu1 %v5382_v63  ;;  %v2297_v14 = vadd.f32 %v6458_v49, %v2276_v3  ;;  %v5393_v6 = vld [vmem:[%s7171_s0 + $0xc0] ss:$8 sps:$4 sm:$0xff]  }
 0x474   :  { %2659 = vmatprep.subr.bf16.mxu1 %v5387_v2 }
 0x475   :  { %v2298_v15 = vadd.f32 %v6458_v49, %v2277_v9  ;;  %v2361_v16 = vsel %vm2333_vm8, %v2356_v10, %v2360_v11  ;;  %v5396_v9 = vld [vmem:[%s7171_s0 + $0xd0] ss:$8 sps:$4 sm:$0xff]   ;;  %v5401_v10 = vld [vmem:[%s7171_s0 + $0xe4] ss:$8 sps:$4 sm:$0xff]  }
 0x476   :  { %v2232_v17 = vpop.f32.mrb[76].mxu1  ;;  %4672 = vmatmul.mubr.msk.bf16.gmra.mrb[92].mxu1 %vm2444_vm9, %v2361_v16 }
 0x477   :  { %v6536_v18 = vpack.c.bf16 %v2298_v15, %v2297_v14  ;;  %v2257_v19 = vmax.f32 %v6441_v32, %v2232_v17  ;;  %v2234_v20 = vpop.f32.mrb[77].mxu1  ;;  %2535 = vmatprep.mubr.bf16.mxu1 %v5484_v1  ;;  %2660 = vmatpush1.bf16.msra.mxu1 %v5385_v12  ;;  %v2362_v32 = vshrl.u32 %v6511_v60, 16  ;;  %v5404_v12 = vld [vmem:[%s7171_s0 + $0xf4] ss:$8 sps:$4 sm:$0xff]   ;;  %v2775_v17 = vrot.slane %v6470_v8, 1 }
 0x478   :  { %v2235_v21 = vpop.f32.mrb[78].mxu1  ;;  %4689 = vmatprep.subr.msk.bf16.mxu1 %vm2466_vm7, %v4688_v30  ;;  %v4707_v30 = vld [vmem:[%s7171_s0 + $0x100] sm:$0x33] }
 0x479   :  { %v2278_v23 = vmul.f32 %v6452_v42, %v2257_v19  ;;  %v2258_v24 = vmax.f32 %v6443_v35, %v2235_v21  ;;  %v2237_v55 = vpop.f32.mrb[79].mxu1  ;;  %v2366_v29 = vshll.u32 %v6536_v18, 16  ;;  %v2364_v34 = vor.u32 %v2362_v32, %v2360_v11  ;;  %v5399_v11 = vld [vmem:[%s7171_s0 + $0xe0] ss:$8 sps:$4 sm:$0xff]  }
 0x47a   :  { %v2370_v52 = vshrl.u32 %v6536_v18, 16  ;;  %v4719_v14 = vcombine.high %v4707_v30, %v4707_v30  ;;  %v4718_v15 = vcombine.low %v4707_v30, %v4707_v30  ;;  %v2774_v19 = vrot.slane %v6463_v59, 1  ;;  %v5412_v32 = vld [vmem:[%s7137_s11 + $0x8] sm:$0xff]  }
 0x47b   :  { %v2279_v31 = vmul.f32 %v6452_v42, %v2258_v24  ;;  %v2368_v36 = vrot.slane %v2366_v29, 1  ;;  %2662 = vmatpush1.bf16.msra.mxu1 %v2646_v54  ;;  %v2299_v38 = vadd.f32 %v6458_v49, %v2278_v23  ;;  %v2777_v21 = vrot.slane %v6486_v27, 1  ;;  %v5414_v29 = vld [vmem:[%s7137_s11 + $0x10] sm:$0xff]  }
 0x47c   :  { %2869 = vmatprep.subr.bf16.mxu1 %v5392_v22  ;;  %v2864_v16 = vsel %vm2466_vm7, %v4718_v15, 0  ;;  %v2776_v20 = vsel %vm1378_vm3, %v2774_v19, %v2775_v17  ;;  %v2779_v22 = vrot.slane %v6511_v60, 1 }
 0x47d   :  { %v2300_v40 = vadd.f32 %v6458_v49, %v2279_v31  ;;  %v2369_v41 = vsel %vm2333_vm8, %v2364_v34, %v2368_v36  ;;  %v2372_v57 = vor.u32 %v2370_v52, %v2368_v36  ;;  %v2778_v54 = vsel %vm1378_vm3, %v2775_v17, %v2777_v21  ;;  %v5416_v31 = vld [vmem:[%s7137_s11 + $0x18] sm:$0xff]   ;;  %v5418_v34 = vld [vmem:[%s7137_s11 + $0x20] sm:$0xff]   ;;  %v5420_v36 = vld [vmem:[%s7137_s11 + $0x28] sm:$0xff]  }
 0x47e   :  { %v2240_v43 = vpop.f32.mrb[80].mxu1  ;;  %4673 = vmatmul.mubr.msk.bf16.gmra.mrb[96].mxu1 %vm2444_vm9, %v2369_v41  ;;  %v5426_v41 = vld [vmem:[%s7137_s11 + $0x40] sm:$0xff]  }
 0x47f   :  { %v6554_v35 = vpack.c.bf16 %v2300_v40, %v2299_v38  ;;  %v2259_v25 = vmax.f32 %v6445_v37, %v2240_v43  ;;  %v2242_v44 = vpop.f32.mrb[81].mxu1  ;;  %2545 = vmatprep.mubr.bf16.mxu1 %v5484_v1  ;;  %v5422_v38 = vld [vmem:[%s7137_s11 + $0x30] sm:$0xff]   ;;  %v5424_v40 = vld [vmem:[%s7137_s11 + $0x38] sm:$0xff]   ;;  %v5428_v43 = vld [vmem:[%s7137_s11 + $0x48] sm:$0xff]  }
 0x480   :  { %v2243_v45 = vpop.f32.mrb[82].mxu1 }
 0x481   :  { %v2280_v46 = vmul.f32 %v6452_v42, %v2259_v25  ;;  %v2260_v47 = vmax.f32 %v6447_v39, %v2243_v45  ;;  %v2245_v48 = vpop.f32.mrb[83].mxu1  ;;  %v2374_v26 = vshll.u32 %v6554_v35, 16  ;;  %v2378_v39 = vshrl.u32 %v6554_v35, 16 }
 0x483   :  { %v2281_v56 = vmul.f32 %v6452_v42, %v2260_v47  ;;  %v2376_v58 = vrot.slane %v2374_v26, 1  ;;  %v2301_v61 = vadd.f32 %v6458_v49, %v2280_v46 }
 0x485   :  { %v2302_v37 = vadd.f32 %v6458_v49, %v2281_v56  ;;  %v2377_v62 = vsel %vm2333_vm8, %v2372_v57, %v2376_v58  ;;  %v2380_v2 = vor.u32 %v2378_v39, %v2376_v58 }
 0x486   :  { %4674 = vmatmul.mubr.msk.bf16.gmra.mrb[100].mxu1 %vm2444_vm9, %v2377_v62 }
 0x487   :  { %v6567_v63 = vpack.c.bf16 %v2302_v37, %v2301_v61  ;;  %2555 = vmatprep.mubr.bf16.mxu1 %v5484_v1 }
 0x489   :  { %v2382_v0 = vshll.u32 %v6567_v63, 16  ;;  %v2386_v49 = vshrl.u32 %v6567_v63, 16 }
 0x48b   :  { %v2384_v42 = vrot.slane %v2382_v0, 1 }
 0x48d   :  { %v2385_v3 = vsel %vm2333_vm8, %v2380_v2, %v2384_v42  ;;  %v2388_v4 = vor.u32 %v2386_v49, %v2384_v42 }
 0x48e   :  { %4675 = vmatmul.mubr.msk.bf16.gmra.mrb[104].mxu1 %vm2444_vm9, %v2385_v3 }
 0x48f   :  { %2565 = vmatprep.mubr.bf16.mxu1 %v5484_v1 }
 0x496   :  { %4676 = vmatmul.mubr.msk.bf16.gmra.mrb[108].mxu1 %vm2444_vm9, %v2388_v4 }
 0x497   :  { %2683 = vmatprep.mubr.bf16.mxu1 %v5484_v1 }
 0x49e   :  { %4690 = vmatmul.mubr.msk.bf16.vlgmr.msra.gmra.mrb[84].mxu1 %vm2444_vm9, %v6463_v59  ;;  %v2781_v59 = vrot.slane %v6536_v18, 1 }
 0x49f   :  { %2693 = vmatprep.mubr.bf16.mxu1 %v5484_v1  ;;  %2870 = vmatpush1.bf16.msra.mxu1 %v5390_v5 }
 0x4a0   :  { %2871 = vmatprep.subr.bf16.mxu1 %v5395_v28  ;;  %v2782_v23 = vsel %vm1378_vm3, %v2779_v22, %v2781_v59 }
 0x4a3   :  { %2872 = vmatpush1.bf16.msra.mxu1 %v5393_v6 }
 0x4a4   :  { %2873 = vmatprep.subr.bf16.mxu1 %v5398_v7 }
 0x4a6   :  { %4691 = vmatmul.mubr.msk.bf16.gmra.mrb[88].mxu1 %vm2444_vm9, %v6470_v8  ;;  %v2780_v8 = vsel %vm1378_vm3, %v2777_v21, %v2779_v22 }
 0x4a7   :  { %2703 = vmatprep.mubr.bf16.mxu1 %v5484_v1  ;;  %2874 = vmatpush1.bf16.msra.mxu1 %v5396_v9 }
 0x4a8   :  { %2875 = vmatprep.subr.bf16.mxu1 %v5401_v10 }
 0x4ab   :  { %2876 = vmatpush1.bf16.msra.mxu1 %v5399_v11 }
 0x4ac   :  { %2877 = vmatprep.subr.bf16.mxu1 %v5404_v12 }
 0x4ae   :  { %4692 = vmatmul.mubr.msk.bf16.gmra.mrb[92].mxu1 %vm2444_vm9, %v6486_v27  ;;  %v2783_v27 = vrot.slane %v6554_v35, 1 }
 0x4af   :  { %2713 = vmatprep.mubr.bf16.mxu1 %v5484_v1  ;;  %2878 = vmatpush1.bf16.msra.mxu1 %v5402_v13 }
 0x4b0   :  { %4720 = vmatprep.subr.msk.bf16.mxu1 %vm2466_vm7, %v4719_v14  ;;  %v2784_v24 = vsel %vm1378_vm3, %v2781_v59, %v2783_v27 }
 0x4b3   :  { %2880 = vmatpush1.bf16.msra.mxu1 %v2864_v16 }
 0x4b4   :  { %3431 = vmatprep.subr.bf16.mxu1 %v5484_v1 }
 0x4b6   :  { %4693 = vmatmul.mubr.msk.bf16.gmra.mrb[96].mxu1 %vm2444_vm9, %v6511_v60  ;;  %v2785_v60 = vrot.slane %v6567_v63, 1 }
 0x4b7   :  { %2723 = vmatprep.mubr.bf16.mxu1 %v5484_v1 }
 0x4b8   :  { %v2786_v55 = vsel %vm1378_vm3, %v2783_v27, %v2785_v60 }
 0x4be   :  { %4694 = vmatmul.mubr.msk.bf16.gmra.mrb[100].mxu1 %vm2444_vm9, %v6536_v18  ;;  %v5410_v18 = vld [vmem:[%s7137_s11] sm:$0xff]  }
 0x4bf   :  { %2733 = vmatprep.mubr.bf16.mxu1 %v5484_v1 }
 0x4c6   :  { %4695 = vmatmul.mubr.msk.bf16.gmra.mrb[104].mxu1 %vm2444_vm9, %v6554_v35  ;;  %v3000_v35 = vld [vmem:[%s7139_s9] sm:$0x3] }
 0x4c7   :  { %2743 = vmatprep.mubr.bf16.mxu1 %v5484_v1  ;;  %v6702_v25 = vrot.slane %v3000_v35, %v1190_v51  ;;  %v6707_v44 = vrot.slane %v3000_v35, %v1194_v53 }
 0x4ce   :  { %4696 = vmatmul.mubr.msk.bf16.gmra.mrb[108].mxu1 %vm2444_vm9, %v6567_v63 }
 0x4cf   :  { %2901 = vmatprep.mubr.bf16.mxu1 %v5484_v1 }
 0x4d6   :  { %4721 = vmatmul.mubr.msk.bf16.vlgmr.msra.gmra.mrb[84].mxu1 %vm2444_vm9, %v2776_v20 }
 0x4d7   :  { %2911 = vmatprep.mubr.bf16.mxu1 %v5484_v1  ;;  %3432 = vmatpush1.bf16.msra.mxu1 %v5410_v18 }
 0x4d8   :  { %3433 = vmatprep.subr.bf16.mxu1 %v5484_v1 }
 0x4db   :  { %3434 = vmatpush1.bf16.msra.mxu1 %v5412_v32 }
 0x4dc   :  { %3435 = vmatprep.subr.bf16.mxu1 %v5484_v1 }
 0x4de   :  { %4722 = vmatmul.mubr.msk.bf16.gmra.mrb[88].mxu1 %vm2444_vm9, %v2778_v54 }
 0x4df   :  { %2921 = vmatprep.mubr.bf16.mxu1 %v5484_v1  ;;  %3436 = vmatpush1.bf16.msra.mxu1 %v5414_v29 }
 0x4e0   :  { %3437 = vmatprep.subr.bf16.mxu1 %v5484_v1 }
 0x4e3   :  { %3438 = vmatpush1.bf16.msra.mxu1 %v5416_v31 }
 0x4e4   :  { %3439 = vmatprep.subr.bf16.mxu1 %v5484_v1 }
 0x4e6   :  { %4723 = vmatmul.mubr.msk.bf16.gmra.mrb[92].mxu1 %vm2444_vm9, %v2780_v8 }
 0x4e7   :  { %2931 = vmatprep.mubr.bf16.mxu1 %v5484_v1  ;;  %3440 = vmatpush1.bf16.msra.mxu1 %v5418_v34 }
 0x4e8   :  { %3441 = vmatprep.subr.bf16.mxu1 %v5484_v1 }
 0x4eb   :  { %3442 = vmatpush1.bf16.msra.mxu1 %v5420_v36 }
 0x4ec   :  { %3443 = vmatprep.subr.bf16.mxu1 %v5484_v1 }
 0x4ee   :  { %4724 = vmatmul.mubr.msk.bf16.gmra.mrb[96].mxu1 %vm2444_vm9, %v2782_v23 }
 0x4ef   :  { %2941 = vmatprep.mubr.bf16.mxu1 %v5484_v1  ;;  %3444 = vmatpush1.bf16.msra.mxu1 %v5422_v38 }
 0x4f0   :  { %3445 = vmatprep.subr.bf16.mxu1 %v5484_v1 }
 0x4f3   :  { %3446 = vmatpush1.bf16.msra.mxu1 %v5424_v40 }
 0x4f4   :  { %3447 = vmatprep.subr.bf16.mxu1 %v5484_v1 }
 0x4f6   :  { %4725 = vmatmul.mubr.msk.bf16.gmra.mrb[100].mxu1 %vm2444_vm9, %v2784_v24 }
 0x4f7   :  { %2951 = vmatprep.mubr.bf16.mxu1 %v5484_v1  ;;  %3448 = vmatpush1.bf16.msra.mxu1 %v5426_v41 }
 0x4f8   :  { %3449 = vmatprep.subr.bf16.mxu1 %v5484_v1 }
 0x4fb   :  { %3450 = vmatpush1.bf16.msra.mxu1 %v5428_v43 }
 0x4fc   :  { %3451 = vmatprep.subr.bf16.mxu1 %v5484_v1 }
 0x4fe   :  { %4726 = vmatmul.mubr.msk.bf16.gmra.mrb[104].mxu1 %vm2444_vm9, %v2786_v55 }
 0x4ff   :  { %2961 = vmatprep.mubr.bf16.mxu1 %v5484_v1 }
 0x506   :  { %4727 = vmatmul.mubr.msk.bf16.gmra.mrb[108].mxu1 %vm2444_vm9, %v2785_v60 }
 0x5a9   :  { %v2903_v45 = vpop.f32.mrb[84].mxu1 }
 0x5aa   :  { %v3012_v46 = vadd.f32 %v6702_v25, %v2903_v45  ;;  %v2905_v47 = vpop.f32.mrb[85].mxu1 }
 0x5ab   :  { %v3013_v48 = vadd.f32 %v6707_v44, %v2905_v47  ;;  %v2907_v52 = vpop.f32.mrb[86].mxu1 }
 0x5ac   :  { %v3040_v26 = vmax.f32 %v3012_v46, 0.0  ;;  %v3014_v56 = vadd.f32 %v6702_v25, %v2907_v52  ;;  %v2909_v57 = vpop.f32.mrb[87].mxu1 }
 0x5ad   :  { %v3041_v58 = vmax.f32 %v3013_v48, 0.0  ;;  %v3015_v51 = vadd.f32 %v6707_v44, %v2909_v57 }
 0x5ae   :  { %v3042_v61 = vmax.f32 %v3014_v56, 0.0  ;;  %v3096_v62 = vrot.slane %v3040_v26, 1 }
 0x5af   :  { %v3043_v37 = vmax.f32 %v3015_v51, 0.0  ;;  %v3099_v53 = vrot.slane %v3041_v58, 1 }
 0x5b0   :  { %v3097_v50 = vrot.slane %v3042_v61, 1 }
 0x5b1   :  { %v3100_v63 = vrot.slane %v3043_v37, 1  ;;  %v2913_v39 = vpop.f32.mrb[88].mxu1 }
 0x5b2   :  { %v3098_v0 = vsel %vm1378_vm3, %v3096_v62, %v3097_v50  ;;  %v3016_v2 = vadd.f32 %v6702_v25, %v2913_v39  ;;  %v2915_v42 = vpop.f32.mrb[89].mxu1 }
 0x5b3   :  { %v3178_v3 = vmax.f32 %v3040_v26, %v3098_v0  ;;  %v3017_v49 = vadd.f32 %v6707_v44, %v2915_v42  ;;  %v2917_v4 = vpop.f32.mrb[90].mxu1  ;;  %v3101_v5 = vsel %vm1378_vm3, %v3099_v53, %v3100_v63 }
 0x5b4   :  { %v3044_v28 = vmax.f32 %v3016_v2, 0.0  ;;  %v3018_v6 = vadd.f32 %v6702_v25, %v2917_v4  ;;  %v2919_v7 = vpop.f32.mrb[91].mxu1  ;;  %v3179_v9 = vmax.f32 %v3041_v58, %v3101_v5 }
 0x5b5   :  { %v3045_v10 = vmax.f32 %v3017_v49, 0.0  ;;  %v3019_v11 = vadd.f32 %v6707_v44, %v2919_v7 }
 0x5b6   :  { %v3102_v12 = vrot.slane %v3044_v28, 1  ;;  %v3046_v30 = vmax.f32 %v3018_v6, 0.0 }
 0x5b7   :  { %v3104_v13 = vrot.slane %v3045_v10, 1  ;;  %v3047_v14 = vmax.f32 %v3019_v11, 0.0 }
 0x5b8   :  { %v3103_v15 = vsel %vm1378_vm3, %v3097_v50, %v3102_v12  ;;  %v3106_v16 = vrot.slane %v3046_v30, 1 }
 0x5b9   :  { %v3180_v17 = vmax.f32 %v3042_v61, %v3103_v15  ;;  %v3108_v19 = vrot.slane %v3047_v14, 1  ;;  %v2923_v20 = vpop.f32.mrb[92].mxu1  ;;  %v3105_v21 = vsel %vm1378_vm3, %v3100_v63, %v3104_v13 }
 0x5ba   :  { %v3107_v54 = vsel %vm1378_vm3, %v3102_v12, %v3106_v16  ;;  %v3020_v22 = vadd.f32 %v6702_v25, %v2923_v20  ;;  %v2925_v8 = vpop.f32.mrb[93].mxu1  ;;  %v3181_v59 = vmax.f32 %v3043_v37, %v3105_v21 }
 0x5bb   :  { %v3182_v23 = vmax.f32 %v3044_v28, %v3107_v54  ;;  %v3021_v27 = vadd.f32 %v6707_v44, %v2925_v8  ;;  %v2927_v24 = vpop.f32.mrb[94].mxu1  ;;  %v3212_v60 = vpack.c.bf16 %v3180_v17, %v3178_v3  ;;  %v3109_v55 = vsel %vm1378_vm3, %v3104_v13, %v3108_v19 }
 0x5bc   :  { %v3048_v18 = vmax.f32 %v3020_v22, 0.0  ;;  %v3022_v32 = vadd.f32 %v6702_v25, %v2927_v24  ;;  %v2929_v29 = vpop.f32.mrb[95].mxu1  ;;  %v3213_v31 = vpack.c.bf16 %v3181_v59, %v3179_v9  ;;  %v3183_v34 = vmax.f32 %v3045_v10, %v3109_v55 }
 0x5bd   :  { %v3049_v36 = vmax.f32 %v3021_v27, 0.0  ;;  %v3023_v38 = vadd.f32 %v6707_v44, %v2929_v29 }
 0x5be   :  { %v3110_v40 = vrot.slane %v3048_v18, 1  ;;  %v3050_v41 = vmax.f32 %v3022_v32, 0.0  ;;  %3256 = vmatprep.subr.bf16.mxu0 %v3213_v31 }
 0x5bf   :  { %v3112_v43 = vrot.slane %v3049_v36, 1  ;;  %v3051_v35 = vmax.f32 %v3023_v38, 0.0  ;;  %3257 = vmatpush1.bf16.msra.mxu0 %v3212_v60 }
 0x5c0   :  { %v3111_v45 = vsel %vm1378_vm3, %v3106_v16, %v3110_v40  ;;  %v3114_v46 = vrot.slane %v3050_v41, 1 }
 0x5c1   :  { %v3184_v47 = vmax.f32 %v3046_v30, %v3111_v45  ;;  %v3116_v48 = vrot.slane %v3051_v35, 1  ;;  %v2933_v52 = vpop.f32.mrb[96].mxu1  ;;  %v3113_v26 = vsel %vm1378_vm3, %v3108_v19, %v3112_v43 }
 0x5c2   :  { %v3115_v56 = vsel %vm1378_vm3, %v3110_v40, %v3114_v46  ;;  %v3024_v57 = vadd.f32 %v6702_v25, %v2933_v52  ;;  %v2935_v58 = vpop.f32.mrb[97].mxu1  ;;  %v3185_v51 = vmax.f32 %v3047_v14, %v3113_v26 }
 0x5c3   :  { %v3186_v61 = vmax.f32 %v3048_v18, %v3115_v56  ;;  %v3025_v37 = vadd.f32 %v6707_v44, %v2935_v58  ;;  %v2937_v62 = vpop.f32.mrb[98].mxu1  ;;  %v3214_v50 = vpack.c.bf16 %v3184_v47, %v3182_v23  ;;  %v3117_v53 = vsel %vm1378_vm3, %v3112_v43, %v3116_v48 }
 0x5c4   :  { %v3052_v63 = vmax.f32 %v3024_v57, 0.0  ;;  %v3026_v39 = vadd.f32 %v6702_v25, %v2937_v62  ;;  %v2939_v0 = vpop.f32.mrb[99].mxu1  ;;  %v3215_v2 = vpack.c.bf16 %v3185_v51, %v3183_v34  ;;  %v3187_v42 = vmax.f32 %v3049_v36, %v3117_v53 }
 0x5c5   :  { %v3053_v3 = vmax.f32 %v3025_v37, 0.0  ;;  %v3027_v49 = vadd.f32 %v6707_v44, %v2939_v0 }
 0x5c6   :  { %v3118_v4 = vrot.slane %v3052_v63, 1  ;;  %v3054_v5 = vmax.f32 %v3026_v39, 0.0  ;;  %3258 = vmatprep.subr.bf16.mxu0 %v3215_v2 }
 0x5c7   :  { %v3120_v28 = vrot.slane %v3053_v3, 1  ;;  %v3055_v6 = vmax.f32 %v3027_v49, 0.0  ;;  %3259 = vmatpush1.bf16.msra.mxu0 %v3214_v50 }
 0x5c8   :  { %v3119_v7 = vsel %vm1378_vm3, %v3114_v46, %v3118_v4  ;;  %v3122_v9 = vrot.slane %v3054_v5, 1 }
 0x5c9   :  { %v3188_v10 = vmax.f32 %v3050_v41, %v3119_v7  ;;  %v3124_v11 = vrot.slane %v3055_v6, 1  ;;  %v2943_v12 = vpop.f32.mrb[100].mxu1  ;;  %v3121_v30 = vsel %vm1378_vm3, %v3116_v48, %v3120_v28 }
 0x5ca   :  { %v3123_v13 = vsel %vm1378_vm3, %v3118_v4, %v3122_v9  ;;  %v3028_v14 = vadd.f32 %v6702_v25, %v2943_v12  ;;  %v2945_v15 = vpop.f32.mrb[101].mxu1  ;;  %v3189_v16 = vmax.f32 %v3051_v35, %v3121_v30 }
 0x5cb   :  { %v3190_v17 = vmax.f32 %v3052_v63, %v3123_v13  ;;  %v3029_v19 = vadd.f32 %v6707_v44, %v2945_v15  ;;  %v2947_v20 = vpop.f32.mrb[102].mxu1  ;;  %v3216_v21 = vpack.c.bf16 %v3188_v10, %v3186_v61  ;;  %v3125_v54 = vsel %vm1378_vm3, %v3120_v28, %v3124_v11 }
 0x5cc   :  { %v3056_v22 = vmax.f32 %v3028_v14, 0.0  ;;  %v3030_v8 = vadd.f32 %v6702_v25, %v2947_v20  ;;  %v2949_v59 = vpop.f32.mrb[103].mxu1  ;;  %v3217_v23 = vpack.c.bf16 %v3189_v16, %v3187_v42  ;;  %v3191_v27 = vmax.f32 %v3053_v3, %v3125_v54 }
 0x5cd   :  { %v3057_v24 = vmax.f32 %v3029_v19, 0.0  ;;  %v3031_v60 = vadd.f32 %v6707_v44, %v2949_v59 }
 0x5ce   :  { %v3126_v55 = vrot.slane %v3056_v22, 1  ;;  %v3058_v18 = vmax.f32 %v3030_v8, 0.0  ;;  %3260 = vmatprep.subr.bf16.mxu0 %v3217_v23 }
 0x5cf   :  { %v3128_v32 = vrot.slane %v3057_v24, 1  ;;  %v3059_v29 = vmax.f32 %v3031_v60, 0.0  ;;  %3261 = vmatpush1.bf16.msra.mxu0 %v3216_v21 }
 0x5d0   :  { %v3127_v31 = vsel %vm1378_vm3, %v3122_v9, %v3126_v55  ;;  %v3130_v34 = vrot.slane %v3058_v18, 1 }
 0x5d1   :  { %v3192_v36 = vmax.f32 %v3054_v5, %v3127_v31  ;;  %v3132_v38 = vrot.slane %v3059_v29, 1  ;;  %v2953_v40 = vpop.f32.mrb[104].mxu1  ;;  %v3129_v41 = vsel %vm1378_vm3, %v3124_v11, %v3128_v32 }
 0x5d2   :  { %v3131_v43 = vsel %vm1378_vm3, %v3126_v55, %v3130_v34  ;;  %v3032_v35 = vadd.f32 %v6702_v25, %v2953_v40  ;;  %v2955_v45 = vpop.f32.mrb[105].mxu1  ;;  %v3193_v46 = vmax.f32 %v3055_v6, %v3129_v41 }
 0x5d3   :  { %v3194_v47 = vmax.f32 %v3056_v22, %v3131_v43  ;;  %v3033_v48 = vadd.f32 %v6707_v44, %v2955_v45  ;;  %v2957_v52 = vpop.f32.mrb[106].mxu1  ;;  %v3218_v26 = vpack.c.bf16 %v3192_v36, %v3190_v17  ;;  %v3133_v56 = vsel %vm1378_vm3, %v3128_v32, %v3132_v38  ;;  %v5407_v45 = vld [vmem:[%s7136_s10] sm:$0xff]  }
 0x5d4   :  { %v3060_v57 = vmax.f32 %v3032_v35, 0.0  ;;  %v3034_v58 = vadd.f32 %v6702_v25, %v2957_v52  ;;  %v2959_v51 = vpop.f32.mrb[107].mxu1  ;;  %v3219_v61 = vpack.c.bf16 %v3193_v46, %v3191_v27  ;;  %v3195_v37 = vmax.f32 %v3057_v24, %v3133_v56  ;;  %v5411_v46 = vld [vmem:[%s7138_s12] sm:$0xff]   ;;  %v5417_v52 = vld [vmem:[%s7138_s12 + $0x18] sm:$0xff]  }
 0x5d5   :  { %v3061_v62 = vmax.f32 %v3033_v48, 0.0  ;;  %v3035_v50 = vadd.f32 %v6707_v44, %v2959_v51  ;;  %v5415_v48 = vld [vmem:[%s7138_s12 + $0x10] sm:$0xff]   ;;  %v5419_v56 = vld [vmem:[%s7138_s12 + $0x20] sm:$0xff]   ;;  %v5425_v51 = vld [vmem:[%s7138_s12 + $0x38] sm:$0xff]  }
 0x5d6   :  { %v3134_v53 = vrot.slane %v3060_v57, 1  ;;  %v3062_v63 = vmax.f32 %v3034_v58, 0.0  ;;  %3262 = vmatprep.subr.bf16.mxu0 %v3219_v61  ;;  %v5423_v58 = vld [vmem:[%s7138_s12 + $0x30] sm:$0xff]   ;;  %v5427_v61 = vld [vmem:[%s7138_s12 + $0x40] sm:$0xff]  }
 0x5d7   :  { %v3136_v39 = vrot.slane %v3061_v62, 1  ;;  %v3063_v0 = vmax.f32 %v3035_v50, 0.0  ;;  %3263 = vmatpush1.bf16.msra.mxu0 %v3218_v26  ;;  %v5409_v26 = vld [vmem:[%s7136_s10 + $0x10] sm:$0xff]  }
 0x5d8   :  { %v3135_v2 = vsel %vm1378_vm3, %v3130_v34, %v3134_v53  ;;  %v3138_v42 = vrot.slane %v3062_v63, 1  ;;  %v5431_v50 = vld [vmem:[%s7138_s12 + $0x50] sm:$0xff]  }
 0x5d9   :  { %v3196_v3 = vmax.f32 %v3058_v18, %v3135_v2  ;;  %v3140_v49 = vrot.slane %v3063_v0, 1  ;;  %v2963_v4 = vpop.f32.mrb[108].mxu1  ;;  %v3137_v5 = vsel %vm1378_vm3, %v3132_v38, %v3136_v39 }
 0x5da   :  { %v3139_v28 = vsel %vm1378_vm3, %v3134_v53, %v3138_v42  ;;  %v3036_v6 = vadd.f32 %v6702_v25, %v2963_v4  ;;  %v2965_v7 = vpop.f32.mrb[109].mxu1  ;;  %v3197_v9 = vmax.f32 %v3059_v29, %v3137_v5  ;;  %v5432_v53 = vld [vmem:[%s7137_s11 + $0x58] sm:$0xff]   ;;  %v5434_v4 = vld [vmem:[%s7140_s15 + $0x30] sm:$0xff]  }
 0x5db   :  { %v3198_v10 = vmax.f32 %v3060_v57, %v3139_v28  ;;  %v3037_v11 = vadd.f32 %v6707_v44, %v2965_v7  ;;  %v2967_v12 = vpop.f32.mrb[110].mxu1  ;;  %v3220_v30 = vpack.c.bf16 %v3196_v3, %v3194_v47  ;;  %v3141_v13 = vsel %vm1378_vm3, %v3136_v39, %v3140_v49  ;;  %v5408_v47 = vld [vmem:[%s7136_s10 + $0x8] sm:$0xff]   ;;  %v5435_v28 = vld [vmem:[%s7140_s15 + $0x38] sm:$0xff]  }
 0x5dc   :  { %v3064_v14 = vmax.f32 %v3036_v6, 0.0  ;;  %v3038_v15 = vadd.f32 %v6702_v25, %v2967_v12  ;;  %v2969_v16 = vpop.f32.mrb[111].mxu1  ;;  %v3221_v17 = vpack.c.bf16 %v3197_v9, %v3195_v37  ;;  %v3199_v19 = vmax.f32 %v3061_v62, %v3141_v13  ;;  %v5421_v57 = vld [vmem:[%s7138_s12 + $0x28] sm:$0xff]   ;;  %v5430_v62 = vld [vmem:[%s7137_s11 + $0x50] sm:$0xff]   ;;  %v5436_v12 = vld [vmem:[%s7140_s15 + $0x40] sm:$0xff]  }
 0x5dd   :  { %v3065_v20 = vmax.f32 %v3037_v11, 0.0  ;;  %v3039_v21 = vadd.f32 %v6707_v44, %v2969_v16  ;;  %v5429_v37 = vld [vmem:[%s7138_s12 + $0x48] sm:$0xff]   ;;  %3452 = vmatpush1.bf16.msra.mxu1 %v5430_v62  ;;  %v5486_v39 = vmov 0.0   ;;  %v5458_v62 = vld [vmem:[%s7140_s15 + $0xc0] sm:$0xff]  }
 0x5de   :  { %v3142_v54 = vrot.slane %v3064_v14, 1  ;;  %v3066_v22 = vmax.f32 %v3038_v15, 0.0  ;;  %3264 = vmatprep.subr.bf16.mxu0 %v3221_v17  ;;  %3453 = vmatprep.subr.bf16.mxu1 %v5484_v1  ;;  %v5437_v13 = vld [vmem:[%s7140_s15 + $0x48] sm:$0xff]  }
 0x5df   :  { %v3144_v8 = vrot.slane %v3065_v20, 1  ;;  %v3067_v59 = vmax.f32 %v3039_v21, 0.0  ;;  %3265 = vmatpush1.bf16.msra.mxu0 %v3220_v30  ;;  %v5439_v21 = vld [vmem:[%s7140_s15 + $0x58] sm:$0xff]  }
 0x5e0   :  { %v3143_v23 = vsel %vm1378_vm3, %v3138_v42, %v3142_v54  ;;  %v3146_v27 = vrot.slane %v3066_v22, 1 }
 0x5e1   :  { %v3200_v24 = vmax.f32 %v3062_v63, %v3143_v23  ;;  %v3148_v60 = vrot.slane %v3067_v59, 1  ;;  %v3145_v55 = vsel %vm1378_vm3, %v3140_v49, %v3144_v8  ;;  %v5433_v63 = vld [vmem:[%s7138_s12 + $0x58] sm:$0xff]   ;;  %3454 = vmatpush1.bf16.msra.mxu1 %v5432_v53  ;;  %v5454_v23 = vld [vmem:[%s7140_s15 + $0x80] sm:$0xff]   ;;  %v5442_v53 = vld [vmem:[%s7140_s15 + $0x10] sm:$0xff]  }
 0x5e2   :  { %v3147_v25 = vsel %vm1378_vm3, %v3142_v54, %v3146_v27  ;;  %v3204_v18 = vmax.f32 %v3066_v22, %v3146_v27  ;;  %v3201_v32 = vmax.f32 %v3063_v0, %v3145_v55  ;;  %4947 = vmatprep.subr.bf16.mxu1 %v5486_v39  ;;  %v5446_v54 = vld [vmem:[%s7140_s15 + $0x60] sm:$0xff]   ;;  %v5448_v22 = vld [vmem:[%s7140_s15 + $0x68] sm:$0xff]  }
 0x5e3   :  { %v3202_v29 = vmax.f32 %v3064_v14, %v3147_v25  ;;  %v3149_v44 = vsel %vm1378_vm3, %v3144_v8, %v3148_v60  ;;  %v3205_v31 = vmax.f32 %v3067_v59, %v3148_v60  ;;  %v3222_v34 = vpack.c.bf16 %v3200_v24, %v3198_v10  ;;  %v5450_v8 = vld [vmem:[%s7140_s15 + $0x70] sm:$0xff]   ;;  %v5452_v59 = vld [vmem:[%s7140_s15 + $0x78] sm:$0xff]   ;;  %v5456_v27 = vld [vmem:[%s7140_s15 + $0x88] sm:$0xff]  }
 0x5e4   :  { %v3203_v36 = vmax.f32 %v3065_v20, %v3149_v44  ;;  %v3223_v38 = vpack.c.bf16 %v3201_v32, %v3199_v19  ;;  %v5438_v20 = vld [vmem:[%s7140_s15 + $0x50] sm:$0xff]  }
 0x5e5   :  { %v3224_v40 = vpack.c.bf16 %v3204_v18, %v3202_v29 }
 0x5e6   :  { %v3225_v41 = vpack.c.bf16 %v3205_v31, %v3203_v36  ;;  %3266 = vmatprep.subr.bf16.mxu0 %v3223_v38  ;;  %v6903_v36 = vld [vmem:[%s7142_s13] ss:$0 sm:$0xff] }
 0x5e7   :  { %3267 = vmatpush1.bf16.msra.mxu0 %v3222_v34  ;;  %v3251_v35 = vand.u32 %v3224_v40, %v6221_v33  ;;  %v6909_v40 = vld [vmem:[%s7143_s14] ss:$0 sm:$0xff] }
 0x5e8   :  { %v3254_v43 = vand.u32 %v3225_v41, %v6221_v33  ;;  %v5413_v33 = vld [vmem:[%s7138_s12 + $0x8] sm:$0xff]  }
 0x5ea   :  { %3268 = vmatprep.subr.bf16.mxu0 %v3254_v43  ;;  %v5440_v43 = vld [vmem:[%s7140_s15] sm:$0xff]  }
 0x5eb   :  { %3269 = vmatpush1.bf16.msra.mxu0 %v3251_v35 }
 0x5ec   :  { %3584 = vmatprep.subr.bf16.mxu0 %v5484_v1 }
 0x5ee   :  { %4731 = vmatmul.mubr.msk.bf16.vlgmr.msra.gmra.mrb[60].mxu0 %vm1724_vm2, %v5407_v45 }
 0x5ef   :  { %3298 = vmatprep.mubr.bf16.mxu0 %v5484_v1  ;;  %3585 = vmatpush1.bf16.msra.mxu0 %v5411_v46 }
 0x5f0   :  { %3586 = vmatprep.subr.bf16.mxu0 %v5484_v1 }
 0x5f3   :  { %3587 = vmatpush1.bf16.msra.mxu0 %v5413_v33 }
 0x5f4   :  { %3588 = vmatprep.subr.bf16.mxu0 %v5484_v1 }
 0x5f6   :  { %4732 = vmatmul.mubr.msk.bf16.gmra.mrb[64].mxu0 %vm1724_vm2, %v5408_v47 }
 0x5f7   :  { %3308 = vmatprep.mubr.bf16.mxu0 %v5484_v1  ;;  %3589 = vmatpush1.bf16.msra.mxu0 %v5415_v48 }
 0x5f8   :  { %3590 = vmatprep.subr.bf16.mxu0 %v5484_v1 }
 0x5fb   :  { %3591 = vmatpush1.bf16.msra.mxu0 %v5417_v52 }
 0x5fc   :  { %3592 = vmatprep.subr.bf16.mxu0 %v5484_v1 }
 0x5fe   :  { %4733 = vmatmul.mubr.msk.bf16.gmra.mrb[68].mxu0 %vm1724_vm2, %v5409_v26 }
 0x5ff   :  { %3593 = vmatpush1.bf16.msra.mxu0 %v5419_v56 }
 0x600   :  { %3594 = vmatprep.subr.bf16.mxu0 %v5484_v1 }
 0x603   :  { %3595 = vmatpush1.bf16.msra.mxu0 %v5421_v57 }
 0x604   :  { %3596 = vmatprep.subr.bf16.mxu0 %v5484_v1 }
 0x607   :  { %3597 = vmatpush1.bf16.msra.mxu0 %v5423_v58 }
 0x608   :  { %3598 = vmatprep.subr.bf16.mxu0 %v5484_v1 }
 0x60b   :  { %3599 = vmatpush1.bf16.msra.mxu0 %v5425_v51 }
 0x60c   :  { %3600 = vmatprep.subr.bf16.mxu0 %v5484_v1 }
 0x60f   :  { %3601 = vmatpush1.bf16.msra.mxu0 %v5427_v61  ;;  %v5441_v61 = vld [vmem:[%s7140_s15 + $0x8] sm:$0xff]  }
 0x610   :  { %3602 = vmatprep.subr.bf16.mxu0 %v5484_v1 }
 0x613   :  { %3603 = vmatpush1.bf16.msra.mxu0 %v5429_v37 }
 0x614   :  { %3604 = vmatprep.subr.bf16.mxu0 %v5484_v1 }
 0x617   :  { %3605 = vmatpush1.bf16.msra.mxu0 %v5431_v50 }
 0x618   :  { %3606 = vmatprep.subr.bf16.mxu0 %v5484_v1 }
 0x61b   :  { %3607 = vmatpush1.bf16.msra.mxu0 %v5433_v63 }
 0x61c   :  { %4979 = vmatprep.subr.bf16.mxu0 %v5486_v39 }
 0x6c1   :  { %v3290_v0 = vpop.f32.mrb[60].mxu0 }
 0x6c2   :  { %v3292_v2 = vpop.f32.mrb[61].mxu0 }
 0x6c3   :  { %v3294_v42 = vpop.f32.mrb[62].mxu0 }
 0x6c4   :  { %v3343_v3 = vpack.c.bf16 %v3294_v42, %v3290_v0  ;;  %v3296_v1 = vpop.f32.mrb[63].mxu0 }
 0x6c5   :  { %v3344_v49 = vpack.c.bf16 %v3296_v1, %v3292_v2  ;;  %v5460_v1 = vld [vmem:[%s7140_s15 + $0xc8] sm:$0xff]  }
 0x6c7   :  { %4746 = vmatprep.mubr.msk.bf16.mxu1 %vm3421_vm10, %v3344_v49  ;;  %4761 = vmatprep.mubr.msk.bf16.mxu0 %vm3421_vm10, %v3344_v49 }
 0x6c8   :  { %3464 = vmatmul.mubr.bf16.vlgmr.msra.gmra.mrb[112].mxu1 %v3343_v3  ;;  %3617 = vmatmul.mubr.bf16.vlgmr.msra.gmra.mrb[72].mxu0 %v3343_v3 }
 0x6c9   :  { %v3300_v5 = vpop.f32.mrb[64].mxu0  ;;  %4948 = vmatpush3.bf16.msra.mxu1 %v5434_v4  ;;  %4980 = vmatpush3.bf16.msra.mxu0 %v5446_v54  ;;  %v5468_v54 = vld [vmem:[%s7140_s15 + $0xe8] sm:$0xff]  }
 0x6ca   :  { %v3302_v6 = vpop.f32.mrb[65].mxu0  ;;  %4949 = vmatprep.subr.bf16.mxu1 %v5486_v39  ;;  %4981 = vmatprep.subr.bf16.mxu0 %v5486_v39 }
 0x6cb   :  { %v3304_v7 = vpop.f32.mrb[66].mxu0 }
 0x6cc   :  { %v3345_v9 = vpack.c.bf16 %v3304_v7, %v3300_v5  ;;  %v3306_v10 = vpop.f32.mrb[67].mxu0  ;;  %v5443_v7 = vld [vmem:[%s7140_s15 + $0x18] sm:$0xff]  }
 0x6cd   :  { %v3346_v11 = vpack.c.bf16 %v3306_v10, %v3302_v6  ;;  %4950 = vmatpush3.bf16.msra.mxu1 %v5435_v28  ;;  %4982 = vmatpush3.bf16.msra.mxu0 %v5448_v22  ;;  %v5462_v10 = vld [vmem:[%s7140_s15 + $0xd0] sm:$0xff]   ;;  %v5449_v22 = vld [vmem:[%s7140_s15 + $0x98] sm:$0xff]  }
 0x6ce   :  { %4951 = vmatprep.subr.bf16.mxu1 %v5486_v39  ;;  %4983 = vmatprep.subr.bf16.mxu0 %v5486_v39 }
 0x6cf   :  { %4747 = vmatprep.mubr.msk.bf16.mxu1 %vm3421_vm10, %v3346_v11  ;;  %4762 = vmatprep.mubr.msk.bf16.mxu0 %vm3421_vm10, %v3346_v11 }
 0x6d0   :  { %3472 = vmatmul.mubr.bf16.gmra.mrb[116].mxu1 %v3345_v9  ;;  %3625 = vmatmul.mubr.bf16.gmra.mrb[76].mxu0 %v3345_v9 }
 0x6d1   :  { %v3310_v30 = vpop.f32.mrb[68].mxu0  ;;  %4952 = vmatpush3.bf16.msra.mxu1 %v5436_v12  ;;  %4984 = vmatpush3.bf16.msra.mxu0 %v5450_v8  ;;  %v5444_v12 = vld [vmem:[%s7140_s15 + $0x20] sm:$0xff]  }
 0x6d2   :  { %v3312_v14 = vpop.f32.mrb[69].mxu0  ;;  %4953 = vmatprep.subr.bf16.mxu1 %v5486_v39  ;;  %4985 = vmatprep.subr.bf16.mxu0 %v5486_v39 }
 0x6d3   :  { %v3314_v15 = vpop.f32.mrb[70].mxu0 }
 0x6d4   :  { %v3347_v16 = vpack.c.bf16 %v3314_v15, %v3310_v30  ;;  %v3316_v17 = vpop.f32.mrb[71].mxu0 }
 0x6d5   :  { %v3348_v19 = vpack.c.bf16 %v3316_v17, %v3312_v14  ;;  %4954 = vmatpush3.bf16.msra.mxu1 %v5437_v13  ;;  %4986 = vmatpush3.bf16.msra.mxu0 %v5452_v59  ;;  %v5464_v13 = vld [vmem:[%s7140_s15 + $0xd8] sm:$0xff]   ;;  %v5445_v14 = vld [vmem:[%s7140_s15 + $0x28] sm:$0xff]   ;;  %v5466_v17 = vld [vmem:[%s7140_s15 + $0xe0] sm:$0xff]  }
 0x6d6   :  { %4955 = vmatprep.subr.bf16.mxu1 %v5486_v39  ;;  %4987 = vmatprep.subr.bf16.mxu0 %v5486_v39  ;;  %v5470_v59 = vld [vmem:[%s7141_s19] sm:$0xff]  }
 0x6d7   :  { %4748 = vmatprep.mubr.msk.bf16.mxu1 %vm3421_vm10, %v3348_v19  ;;  %4763 = vmatprep.mubr.msk.bf16.mxu0 %vm3421_vm10, %v3348_v19  ;;  %v5447_v19 = vld [vmem:[%s7140_s15 + $0x90] sm:$0xff]  }
 0x6d8   :  { %3480 = vmatmul.mubr.bf16.gmra.mrb[120].mxu1 %v3347_v16  ;;  %3633 = vmatmul.mubr.bf16.gmra.mrb[80].mxu0 %v3347_v16 }
 0x6d9   :  { %4956 = vmatpush3.bf16.msra.mxu1 %v5438_v20  ;;  %4959 = vmatprep.mubr.msk.bf16.mxu1 %vm5487_vm11, %v5486_v39 }
 0x6da   :  { %4957 = vmatprep.subr.bf16.mxu1 %v5486_v39  ;;  %4991 = vmatprep.mubr.msk.bf16.mxu0 %vm5487_vm11, %v5486_v39 }
 0x6db   :  { %4988 = vmatpush3.bf16.msra.mxu0 %v5454_v23  ;;  %v5451_v23 = vld [vmem:[%s7140_s15 + $0xa0] sm:$0xff]  }
 0x6dc   :  { %4989 = vmatprep.subr.bf16.mxu0 %v5486_v39 }
 0x6dd   :  { %4958 = vmatpush3.bf16.msra.mxu1 %v5439_v21 }
 0x6de   :  { %4963 = vmatprep.subr.bf16.mxu1 %v5486_v39 }
 0x6df   :  { %4990 = vmatpush3.bf16.msra.mxu0 %v5456_v27  ;;  %v5471_v27 = vld [vmem:[%s7141_s19 + $0x8] sm:$0xff]  }
 0x6e0   :  { %5011 = vmatprep.subr.bf16.mxu0 %v5486_v39 }
 0x79b   :  { %v6894_v24 = vpop.f32.mrb[112].mxu1  ;;  %v6896_v60 = vpop.f32.mrb[72].mxu0 }
 0x79c   :  { %v3641_v55 = vmax.f32 %v6894_v24, %v6896_v60  ;;  %v3467_v25 = vpop.f32.mrb[113].mxu1  ;;  %v3620_v18 = vpop.f32.mrb[73].mxu0  ;;  %v5453_v24 = vld [vmem:[%s7140_s15 + $0xa8] sm:$0xff]   ;;  %v5455_v60 = vld [vmem:[%s7140_s15 + $0xb0] sm:$0xff]  }
 0x79d   :  { %v3468_v32 = vpop.f32.mrb[114].mxu1  ;;  %v3621_v29 = vpop.f32.mrb[74].mxu0  ;;  %v5457_v25 = vld [vmem:[%s7140_s15 + $0xb8] sm:$0xff]  }
 0x79e   :  { %v3642_v44 = vmax.f32 %v3468_v32, %v3621_v29  ;;  %v3470_v31 = vpop.f32.mrb[115].mxu1  ;;  %v3623_v34 = vpop.f32.mrb[75].mxu0  ;;  %v3654_v30 = vmul.f32 %v6903_v36, %v3641_v55  ;;  %v5459_v32 = vld [vmem:[%s7140_s15 + $0xf0] sm:$0xff]  }
 0x79f   :  { %v5463_v31 = vld [vmem:[%s7140_s15 + $0x100] sm:$0xff]   ;;  %v5465_v34 = vld [vmem:[%s7140_s15 + $0x108] sm:$0xff]  }
 0x7a0   :  { %v3655_v38 = vmul.f32 %v6903_v36, %v3642_v44  ;;  %v3667_v15 = vadd.f32 %v6909_v40, %v3654_v30  ;;  %v5461_v44 = vld [vmem:[%s7140_s15 + $0xf8] sm:$0xff]  }
 0x7a2   :  { %v3668_v41 = vadd.f32 %v6909_v40, %v3655_v38  ;;  %v3685_v20 = vpack.c.bf16 %v3667_v15, %v3667_v15  ;;  %v5469_v38 = vld [vmem:[%s7140_s15 + $0x118] sm:$0xff]  }
 0x7a3   :  { %v3473_v35 = vpop.f32.mrb[116].mxu1  ;;  %v3626_v45 = vpop.f32.mrb[76].mxu0 }
 0x7a4   :  { %v3699_v46 = vpack.c.bf16 %v3668_v41, %v3668_v41  ;;  %v3643_v33 = vmax.f32 %v3473_v35, %v3626_v45  ;;  %v3475_v47 = vpop.f32.mrb[117].mxu1  ;;  %v3628_v48 = vpop.f32.mrb[77].mxu0  ;;  %v5472_v41 = vld [vmem:[%s7141_s19 + $0x10] sm:$0xff]   ;;  %v5474_v35 = vld [vmem:[%s7141_s19 + $0x20] sm:$0xff]   ;;  %v5475_v45 = vld [vmem:[%s7141_s19 + $0x28] sm:$0xff]  }
 0x7a5   :  { %v6915_v52 = vpop.f32.mrb[118].mxu1  ;;  %v6917_v26 = vpop.f32.mrb[78].mxu0  ;;  %v5478_v48 = vld [vmem:[%s7144_s21] sm:$0xff]  }
 0x7a6   :  { %4960 = vmatmul.mubr.msk.bf16.vlgmr.msra.gmra.mrb[124].mxu1 %vm3736_vm12, %v3699_v46  ;;  %v3656_v56 = vmul.f32 %v6903_v36, %v3643_v33  ;;  %v3644_v57 = vmax.f32 %v6915_v52, %v6917_v26  ;;  %v3478_v58 = vpop.f32.mrb[119].mxu1  ;;  %v3631_v51 = vpop.f32.mrb[79].mxu0  ;;  %v5476_v46 = vld [vmem:[%s7141_s19 + $0x30] sm:$0xff]   ;;  %v5477_v33 = vld [vmem:[%s7141_s19 + $0x38] ss:$0 sps:$4 sm:$0xff]   ;;  %v5479_v52 = vld [vmem:[%s7144_s21 + $0x8] sm:$0xff]  }
 0x7a7   :  { %4964 = vmatpush3.bf16.msra.mxu1 %v5440_v43  ;;  %4975 = vmatprep.mubr.msk.bf16.mxu1 %vm5487_vm11, %v5486_v39  ;;  %v5473_v43 = vld [vmem:[%s7141_s19 + $0x18] sm:$0xff]   ;;  %v4333_v47 = vsel %vm1978_vm5, %v5477_v33, 0  ;;  %v5480_v26 = vld [vmem:[%s7144_s21 + $0x10] sm:$0xff]  }
 0x7a8   :  { %4965 = vmatprep.subr.bf16.mxu1 %v5486_v39  ;;  %v3669_v37 = vadd.f32 %v6909_v40, %v3656_v56  ;;  %v3657_v55 = vmul.f32 %v6903_v36, %v3644_v57  ;;  %v5481_v56 = vld [vmem:[%s7144_s21 + $0x18] sm:$0xff]  }
 0x7aa   :  { %v3872_v50 = vpack.c.bf16 %v3669_v37, %v3669_v37  ;;  %v3670_v18 = vadd.f32 %v6909_v40, %v3657_v55 }
 0x7ab   :  { %4966 = vmatpush3.bf16.msra.mxu1 %v5441_v61  ;;  %v3481_v63 = vpop.f32.mrb[120].mxu1  ;;  %v3634_v0 = vpop.f32.mrb[80].mxu0 }
 0x7ac   :  { %4967 = vmatprep.subr.bf16.mxu1 %v5486_v39  ;;  %4992 = vmatmul.mubr.msk.bf16.vlgmr.msra.gmra.mrb[84].mxu0 %vm3736_vm12, %v3872_v50  ;;  %v3645_v2 = vmax.f32 %v3481_v63, %v3634_v0  ;;  %v3483_v42 = vpop.f32.mrb[121].mxu1  ;;  %v3636_v3 = vpop.f32.mrb[81].mxu0  ;;  %v3966_v29 = vpack.c.bf16 %v3670_v18, %v3670_v18 }
 0x7ad   :  { %5012 = vmatpush3.bf16.msra.mxu0 %v5458_v62  ;;  %v3484_v49 = vpop.f32.mrb[122].mxu1  ;;  %v3637_v4 = vpop.f32.mrb[82].mxu0  ;;  %5023 = vmatprep.mubr.msk.bf16.mxu0 %vm5487_vm11, %v5486_v39 }
 0x7ae   :  { %5013 = vmatprep.subr.bf16.mxu0 %v5486_v39  ;;  %v3646_v5 = vmax.f32 %v3484_v49, %v3637_v4  ;;  %v3486_v28 = vpop.f32.mrb[123].mxu1  ;;  %v3639_v6 = vpop.f32.mrb[83].mxu0  ;;  %v3658_v16 = vmul.f32 %v6903_v36, %v3645_v2 }
 0x7af   :  { %4968 = vmatpush3.bf16.msra.mxu1 %v5442_v53 }
 0x7b0   :  { %4969 = vmatprep.subr.bf16.mxu1 %v5486_v39  ;;  %v3659_v9 = vmul.f32 %v6903_v36, %v3646_v5  ;;  %v3671_v21 = vadd.f32 %v6909_v40, %v3658_v16  ;;  %v5467_v36 = vld [vmem:[%s7140_s15 + $0x110] sm:$0xff]  }
 0x7b1   :  { %5014 = vmatpush3.bf16.msra.mxu0 %v5460_v1 }
 0x7b2   :  { %5015 = vmatprep.subr.bf16.mxu0 %v5486_v39  ;;  %v6954_v11 = vadd.f32 %v6909_v40, %v3659_v9  ;;  %v4060_v8 = vpack.c.bf16 %v3671_v21, %v3671_v21 }
 0x7b3   :  { %4970 = vmatpush3.bf16.msra.mxu1 %v5443_v7 }
 0x7b4   :  { %4971 = vmatprep.subr.bf16.mxu1 %v5486_v39  ;;  %v4154_v40 = vpack.c.bf16 %v6954_v11, %v6954_v11 }
 0x7b5   :  { %5016 = vmatpush3.bf16.msra.mxu0 %v5462_v10 }
 0x7b6   :  { %5017 = vmatprep.subr.bf16.mxu0 %v5486_v39 }
 0x7b7   :  { %4972 = vmatpush3.bf16.msra.mxu1 %v5444_v12 }
 0x7b8   :  { %4973 = vmatprep.subr.bf16.mxu1 %v5486_v39 }
 0x7b9   :  { %5018 = vmatpush3.bf16.msra.mxu0 %v5464_v13  ;;  %v4868_v13 = vld [vmem:[%s7145_s16] ss:$0 sm:$0xff] }
 0x7ba   :  { %5019 = vmatprep.subr.bf16.mxu0 %v5486_v39 }
 0x7bb   :  { %4974 = vmatpush3.bf16.msra.mxu1 %v5445_v14 }
 0x7bc   :  { %4995 = vmatprep.subr.bf16.mxu1 %v5486_v39 }
 0x7bd   :  { %5020 = vmatpush3.bf16.msra.mxu0 %v5466_v17 }
 0x7be   :  { %4976 = vmatmul.mubr.msk.bf16.vlgmr.msra.gmra.mrb[128].mxu1 %vm3736_vm12, %v3685_v20  ;;  %5021 = vmatprep.subr.bf16.mxu0 %v5486_v39  ;;  %v4869_v20 = vld [vmem:[%s7146_s17] ss:$0 sm:$0xff] }
 0x7bf   :  { %4996 = vmatpush3.bf16.msra.mxu1 %v5447_v19  ;;  %5007 = vmatprep.mubr.msk.bf16.mxu1 %vm5487_vm11, %v5486_v39 }
 0x7c0   :  { %4997 = vmatprep.subr.bf16.mxu1 %v5486_v39 }
 0x7c1   :  { %5022 = vmatpush3.bf16.msra.mxu0 %v5468_v54  ;;  %v4870_v54 = vld [vmem:[%s7147_s18] ss:$0 sm:$0xff] }
 0x7c2   :  { %5043 = vmatprep.subr.bf16.mxu0 %v5486_v39 }
 0x7c3   :  { %4998 = vmatpush3.bf16.msra.mxu1 %v5449_v22 }
 0x7c4   :  { %4999 = vmatprep.subr.bf16.mxu1 %v5486_v39  ;;  %5024 = vmatmul.mubr.msk.bf16.vlgmr.msra.gmra.mrb[88].mxu0 %vm3736_vm12, %v4060_v8 }
 0x7c5   :  { %5044 = vmatpush3.bf16.msra.mxu0 %v5470_v59  ;;  %5059 = vmatprep.mubr.msk.bf16.mxu0 %vm5487_vm11, %v5486_v39 }
 0x7c6   :  { %5045 = vmatprep.subr.bf16.mxu0 %v5486_v39 }
 0x7c7   :  { %5000 = vmatpush3.bf16.msra.mxu1 %v5451_v23  ;;  %v5482_v23 = vld [vmem:[%s7144_s21 + $0x20] sm:$0xff]  }
 0x7c8   :  { %5001 = vmatprep.subr.bf16.mxu1 %v5486_v39 }
 0x7c9   :  { %5046 = vmatpush3.bf16.msra.mxu0 %v5471_v27  ;;  %v5483_v27 = vld [vmem:[%s7144_s21 + $0x28] ss:$0 sps:$4 sm:$0x33]  }
 0x7ca   :  { %5047 = vmatprep.subr.bf16.mxu0 %v5486_v39 }
 0x7cb   :  { %5002 = vmatpush3.bf16.msra.mxu1 %v5453_v24  ;;  %v4432_v24 = vsel %vm2466_vm7, %v5483_v27, 0 }
 0x7cc   :  { %5003 = vmatprep.subr.bf16.mxu1 %v5486_v39 }
 0x7cd   :  { %5048 = vmatpush3.bf16.msra.mxu0 %v5472_v41 }
 0x7ce   :  { %5049 = vmatprep.subr.bf16.mxu0 %v5486_v39 }
 0x7cf   :  { %5004 = vmatpush3.bf16.msra.mxu1 %v5455_v60  ;;  %v4871_v60 = vld [vmem:[%s7148_s20] ss:$0 sm:$0xff] }
 0x7d0   :  { %5005 = vmatprep.subr.bf16.mxu1 %v5486_v39 }
 0x7d1   :  { %5050 = vmatpush3.bf16.msra.mxu0 %v5473_v43 }
 0x7d2   :  { %5051 = vmatprep.subr.bf16.mxu0 %v5486_v39 }
 0x7d3   :  { %5006 = vmatpush3.bf16.msra.mxu1 %v5457_v25 }
 0x7d4   :  { %5027 = vmatprep.subr.bf16.mxu1 %v5486_v39 }
 0x7d5   :  { %5052 = vmatpush3.bf16.msra.mxu0 %v5474_v35 }
 0x7d6   :  { %5008 = vmatmul.mubr.msk.bf16.vlgmr.msra.gmra.mrb[132].mxu1 %vm3736_vm12, %v3966_v29  ;;  %5053 = vmatprep.subr.bf16.mxu0 %v5486_v39 }
 0x7d7   :  { %5028 = vmatpush3.bf16.msra.mxu1 %v5459_v32  ;;  %5039 = vmatprep.mubr.msk.bf16.mxu1 %vm5487_vm11, %v5486_v39 }
 0x7d8   :  { %5029 = vmatprep.subr.bf16.mxu1 %v5486_v39 }
 0x7d9   :  { %5054 = vmatpush3.bf16.msra.mxu0 %v5475_v45 }
 0x7da   :  { %5055 = vmatprep.subr.bf16.mxu0 %v5486_v39 }
 0x7db   :  { %5030 = vmatpush3.bf16.msra.mxu1 %v5461_v44 }
 0x7dc   :  { %5031 = vmatprep.subr.bf16.mxu1 %v5486_v39 }
 0x7dd   :  { %5056 = vmatpush3.bf16.msra.mxu0 %v5476_v46 }
 0x7de   :  { %5057 = vmatprep.subr.bf16.mxu0 %v5486_v39 }
 0x7df   :  { %5032 = vmatpush3.bf16.msra.mxu1 %v5463_v31 }
 0x7e0   :  { %5033 = vmatprep.subr.bf16.mxu1 %v5486_v39 }
 0x7e1   :  { %5058 = vmatpush3.bf16.msra.mxu0 %v4333_v47 }
 0x7e3   :  { %5034 = vmatpush3.bf16.msra.mxu1 %v5465_v34 }
 0x7e4   :  { %5035 = vmatprep.subr.bf16.mxu1 %v5486_v39 }
 0x7e7   :  { %5036 = vmatpush3.bf16.msra.mxu1 %v5467_v36 }
 0x7e8   :  { %5037 = vmatprep.subr.bf16.mxu1 %v5486_v39 }
 0x7eb   :  { %5038 = vmatpush3.bf16.msra.mxu1 %v5469_v38 }
 0x7ec   :  { %5063 = vmatprep.subr.bf16.mxu1 %v5486_v39 }
 0x7ee   :  { %5040 = vmatmul.mubr.msk.bf16.vlgmr.msra.gmra.mrb[136].mxu1 %vm3736_vm12, %v4154_v40 }
 0x7ef   :  { %5075 = vmatprep.mubr.msk.bf16.mxu1 %vm5487_vm11, %v5486_v39  ;;  %5064 = vmatpush3.bf16.msra.mxu1 %v5478_v48 }
 0x7f0   :  { %5065 = vmatprep.subr.bf16.mxu1 %v5486_v39 }
 0x7f3   :  { %5066 = vmatpush3.bf16.msra.mxu1 %v5479_v52 }
 0x7f4   :  { %5067 = vmatprep.subr.bf16.mxu1 %v5486_v39 }
 0x7f7   :  { %5068 = vmatpush3.bf16.msra.mxu1 %v5480_v26 }
 0x7f8   :  { %5069 = vmatprep.subr.bf16.mxu1 %v5486_v39 }
 0x7fb   :  { %5070 = vmatpush3.bf16.msra.mxu1 %v5481_v56 }
 0x7fc   :  { %5071 = vmatprep.subr.bf16.mxu1 %v5486_v39 }
 0x7ff   :  { %5072 = vmatpush3.bf16.msra.mxu1 %v5482_v23 }
 0x800   :  { %5073 = vmatprep.subr.bf16.mxu1 %v5486_v39  ;;  %v4881_v39 = vld [vmem:[%s7149_s22] ss:$0 sm:$0xff] }
 0x803   :  { %5074 = vmatpush3.bf16.msra.mxu1 %v4432_v24 }
 0x879   :  { %v3774_v57 = vpop.f32.mrb[124].mxu1 }
 0x87a   :  { %v4961_v58 = vpop.f32.mrb[125].mxu1 }
 0x87b   :  { %v3777_v51 = vpop.f32.mrb[126].mxu1 }
 0x87c   :  { %v4962_v61 = vpop.f32.mrb[127].mxu1 }
 0x87f   :  { %v3946_v37 = vpop.f32.mrb[84].mxu0 }
 0x880   :  { %v4993_v62 = vpop.f32.mrb[85].mxu0 }
 0x881   :  { %v3949_v50 = vpop.f32.mrb[86].mxu0 }
 0x882   :  { %v4994_v53 = vpop.f32.mrb[87].mxu0 }
 0x891   :  { %v3853_v63 = vpop.f32.mrb[128].mxu1 }
 0x892   :  { %v3854_v0 = vadd.f32 %v3853_v63, %v3774_v57  ;;  %v4977_v2 = vpop.f32.mrb[129].mxu1 }
 0x893   :  { %v3856_v42 = vpop.f32.mrb[130].mxu1 }
 0x894   :  { %v3952_v3 = vadd.f32 %v3946_v37, %v3854_v0  ;;  %v4978_v1 = vpop.f32.mrb[131].mxu1 }
 0x897   :  { %v4134_v49 = vpop.f32.mrb[88].mxu0 }
 0x898   :  { %v5025_v4 = vpop.f32.mrb[89].mxu0 }
 0x899   :  { %v4137_v5 = vpop.f32.mrb[90].mxu0 }
 0x89a   :  { %v5026_v28 = vpop.f32.mrb[91].mxu0 }
 0x8a9   :  { %v4040_v6 = vpop.f32.mrb[132].mxu1 }
 0x8aa   :  { %v4046_v7 = vadd.f32 %v4040_v6, %v3952_v3  ;;  %v5009_v9 = vpop.f32.mrb[133].mxu1 }
 0x8ab   :  { %v4043_v10 = vpop.f32.mrb[134].mxu1 }
 0x8ac   :  { %v4140_v11 = vadd.f32 %v4134_v49, %v4046_v7  ;;  %v5010_v12 = vpop.f32.mrb[135].mxu1 }
 0x8c1   :  { %v4228_v30 = vpop.f32.mrb[136].mxu1 }
 0x8c2   :  { %v4234_v14 = vadd.f32 %v4228_v30, %v4140_v11  ;;  %v5041_v15 = vpop.f32.mrb[137].mxu1 }
 0x8c3   :  { %v4231_v16 = vpop.f32.mrb[138].mxu1 }
 0x8c4   :  { %v4242_v17 = vadd.f32 %v4868_v13, %v4234_v14  ;;  %v5042_v19 = vpop.f32.mrb[139].mxu1 }
 0x8c6   :  { %v4243_v21 = vmax.f32 %v4242_v17, 0.0 }
 0x8c8   :  { %v4251_v22 = vmul.f32 %v4869_v20, %v4243_v21 }
 0x8ca   :  { %v4259_v8 = vadd.f32 %v4870_v54, %v4251_v22 }
 0x8cc   :  { %v4275_v59 = vpack.c.bf16 %v4259_v8, %v4259_v8 }
 0x8ce   :  { %5060 = vmatmul.mubr.msk.bf16.vlgmr.msra.gmra.mrb[92].mxu0 %vm4328_vm13, %v4275_v59 }
 0x9a1   :  { %v4369_v55 = vpop.f32.mrb[92].mxu0 }
 0x9a2   :  { %v4370_v25 = vadd.f32 %v4871_v60, %v4369_v55  ;;  %v5061_v18 = vpop.f32.mrb[93].mxu0 }
 0x9a3   :  { %v4372_v32 = vpop.f32.mrb[94].mxu0 }
 0x9a4   :  { %v4375_v29 = vmax.f32 %v4370_v25, 0.0  ;;  %v5062_v44 = vpop.f32.mrb[95].mxu0 }
 0x9a6   :  { %v4387_v31 = vpack.c.bf16 %v4375_v29, %v4375_v29 }
 0x9a8   :  { %5076 = vmatmul.mubr.msk.bf16.vlgmr.msra.gmra.mrb[140].mxu1 %vm2444_vm9, %v4387_v31 }
 0xa7b   :  { %v4468_v34 = vpop.f32.mrb[140].mxu1 }
 0xa7c   :  { %v4469_v36 = vadd.f32 %v4881_v39, %v4468_v34  ;;  %v5077_v38 = vpop.f32.mrb[141].mxu1 }
 0xa7d   :  { %v4471_v40 = vpop.f32.mrb[142].mxu1 }
 0xa7e   :  { %4474 = vst [vmem:[%s7150_s23] sm:$0xff] %v4469_v36  ;;  %v5078_v41 = vpop.f32.mrb[143].mxu1 }

</bundles_post_ra>
